<compile_context>
chip_gen: v7x
topology: tpu7x:2x2x1
jax: 0.10.0
libtpu: 0.0.40
codegen_flags: <defaults>
</compile_context>

<pallas_src>
import jax
import jax.numpy as jnp
from jax.experimental import pallas as pl
from jax.experimental.pallas import tpu as pltpu

INPUT_DIM = 8
LATENT_DIM = 15
H1 = 512
H2 = 256
LANE = 128  # narrow (8 / 15 wide) outputs are padded to one full lane group


def dae_kernel(x_ref,
               w1, b1, w2, b2, w3, b3,      # encoder params (w3/b3 lane-padded)
               w4, b4, w5, b5, w6, b6,      # decoder params (w4 rows / w6,b6 cols padded)
               xrec_ref, z_ref):
    cdt = w1.dtype                     # compute dtype (f32, or bf16 if enabled)
    x = x_ref[...].astype(cdt)

    # ---------------- encoder ----------------
    h = jnp.dot(x, w1[...], preferred_element_type=jnp.float32) + b1[...]
    h = jnp.maximum(h, 0.0).astype(cdt)                              # ReLU
    h = jnp.dot(h, w2[...], preferred_element_type=jnp.float32) + b2[...]
    h = jnp.maximum(h, 0.0).astype(cdt)                              # ReLU
    # (tile, 128); lanes >= LATENT_DIM are exactly zero (zero-padded w3/b3)
    z = jnp.dot(h, w3[...], preferred_element_type=jnp.float32) + b3[...]

    # ---------------- decoder ----------------
    d = jnp.dot(z.astype(cdt), w4[...], preferred_element_type=jnp.float32) + b4[...]
    d = jnp.maximum(d, 0.0).astype(cdt)                              # ReLU
    d = jnp.dot(d, w5[...], preferred_element_type=jnp.float32) + b5[...]
    d = jnp.maximum(d, 0.0).astype(cdt)                              # ReLU
    # (tile, 128); lanes >= INPUT_DIM are zero
    x_recon = jnp.dot(d, w6[...], preferred_element_type=jnp.float32) + b6[...]

    z_ref[...] = z
    xrec_ref[...] = x_recon


def _build_dae_call(B_pad, tile, flat_params, single_buffer_weights):
    grid = (B_pad // tile,)

    def const_spec(a):
        # Same (0,0) block every grid step -> weights stay resident in VMEM.
        if single_buffer_weights:
            return pl.BlockSpec(a.shape, lambda i: (0, 0),
                                pipeline_mode=pl.Buffered(buffer_count=1))
        return pl.BlockSpec(a.shape, lambda i: (0, 0))

    in_specs = [pl.BlockSpec((tile, INPUT_DIM), lambda i: (i, 0))]
    in_specs += [const_spec(a) for a in flat_params]

    out_specs = [pl.BlockSpec((tile, LANE), lambda i: (i, 0)),   # x_recon (padded)
                 pl.BlockSpec((tile, LANE), lambda i: (i, 0))]   # z       (padded)

    out_shape = (
        jax.ShapeDtypeStruct((B_pad, LANE), jnp.float32),
        jax.ShapeDtypeStruct((B_pad, LANE), jnp.float32),
    )

    return pl.pallas_call(
        dae_kernel,
        out_shape=out_shape,
        grid_spec=pltpu.PrefetchScalarGridSpec(
            num_scalar_prefetch=0,
            grid=grid,
            in_specs=in_specs,
            out_specs=out_specs,
        ),
        compiler_params=pltpu.CompilerParams(
            dimension_semantics=("parallel",),
            vmem_limit_bytes=32 * 1024 * 1024,   # safe on v5e/v6e/v7x; plenty for this kernel
        ),
    )


def _pad_params(params, use_bf16):
    """Zero-pad the narrow latent / output dims to 128 lanes (math unchanged)."""
    (w1, b1), (w2, b2), (w3, b3), (w4, b4), (w5, b5), (w6, b6) = params
    w3p = jnp.pad(w3, ((0, 0), (0, LANE - LATENT_DIM)))
    b3p = jnp.pad(b3, ((0, 0), (0, LANE - LATENT_DIM)))
    w4p = jnp.pad(w4, ((0, LANE - LATENT_DIM), (0, 0)))
    w6p = jnp.pad(w6, ((0, 0), (0, LANE - INPUT_DIM)))
    b6p = jnp.pad(b6, ((0, 0), (0, LANE - INPUT_DIM)))
    padded = [(w1, b1), (w2, b2), (w3p, b3p), (w4p, b4), (w5, b5), (w6p, b6p)]
    if use_bf16:
        # bf16 matmul inputs, f32 accumulation & biases (gate behind flag).
        padded = [(w.astype(jnp.bfloat16), b) for (w, b) in padded]
    flat = []
    for w, b in padded:
        flat.extend([w, b])
    return flat


def _pick_tile(B, requested):
    tile = min(max(requested, 8), max(B, 8))
    return max(8, (tile // 8) * 8)


def dae_forward(x, params, *, batch_tile=256, use_bf16=False):
    """Runs the full DAE forward pass. Returns (x_recon, z), shapes (B,8)/(B,15)."""
    B, fin = x.shape
    assert fin == INPUT_DIM

    flat_params = _pad_params(params, use_bf16)
    tile = _pick_tile(B, batch_tile)
    B_pad = pl.cdiv(B, tile) * tile
    x_in = x if B_pad == B else jnp.pad(x, ((0, B_pad - B), (0, 0)))

    last_err = None
    # Prefer single-buffered (grid-constant) weights; fall back to default
    # double-buffering if this JAX build rejects Buffered(1).
    for single_buffer in (True, False):
        try:
            call = _build_dae_call(B_pad, tile, flat_params, single_buffer)
            xrec_pad, z_pad = call(x_in, *flat_params)
            jax.block_until_ready((xrec_pad, z_pad))
            return xrec_pad[:B, :INPUT_DIM], z_pad[:B, :LATENT_DIM]
        except Exception as e:  # pragma: no cover - fallback path
            last_err = e
    raise last_err


def init_params(key):
    """Deterministic synthetic parameters matching the nn.Linear shapes.
    Weights stored as (in_features, out_features); biases as (1, out)."""
    dims = [(INPUT_DIM, H1), (H1, H2), (H2, LATENT_DIM),     # encoder
            (LATENT_DIM, H2), (H2, H1), (H1, INPUT_DIM)]     # decoder
    params = []
    for din, dout in dims:
        kw, kb, key = jax.random.split(key, 3)
        scale = 1.0 / jnp.sqrt(jnp.float32(din))
        w = jax.random.uniform(kw, (din, dout), jnp.float32, -scale, scale)
        b = jax.random.uniform(kb, (1, dout), jnp.float32, -scale, scale)
        params.append((w, b))
    return params


def dae_reference(x, params):
    """Pure-JAX reference for correctness checking."""
    (w1, b1), (w2, b2), (w3, b3), (w4, b4), (w5, b5), (w6, b6) = params
    h = jnp.maximum(x @ w1 + b1, 0.0)
    h = jnp.maximum(h @ w2 + b2, 0.0)
    z = h @ w3 + b3
    d = jnp.maximum(z @ w4 + b4, 0.0)
    d = jnp.maximum(d @ w5 + b5, 0.0)
    x_recon = d @ w6 + b6
    return x_recon, z


if __name__ == "__main__":
    key = jax.random.PRNGKey(0)
    kx, kp = jax.random.split(key)
    params = init_params(kp)

    # Small batch: whole batch handled in a single grid step (no pipeline overhead).
    batch = 16
    x = jax.random.normal(kx, (batch, INPUT_DIM), jnp.float32)
    x_recon, z = dae_forward(x, params)
    jax.block_until_ready((x_recon, z))

    xr_ref, z_ref_ = dae_reference(x, params)
    assert x_recon.shape == (batch, INPUT_DIM)
    assert z.shape == (batch, LATENT_DIM)
    assert jnp.allclose(x_recon, xr_ref, atol=1e-5, rtol=1e-5)
    assert jnp.allclose(z, z_ref_, atol=1e-5, rtol=1e-5)

    # Larger batch: exercises the multi-step grid (256-row tiles, 2 steps —
    # also the configuration that shards across both TensorCores on v7x).
    big = 512
    xb = jax.random.normal(kx, (big, INPUT_DIM), jnp.float32)
    xrb, zb = dae_forward(xb, params, batch_tile=256)
    jax.block_until_ready((xrb, zb))
    xrb_ref, zb_ref = dae_reference(xb, params)
    assert jnp.allclose(xrb, xrb_ref, atol=1e-4, rtol=1e-4)
    assert jnp.allclose(zb, zb_ref, atol=1e-4, rtol=1e-4)

    print("KERNEL_OK")
</pallas_src>

<mosaic_0001>
module attributes {stable_mosaic.version = 11 : i64} {
  func.func @dae_kernel(%arg0: i32, %arg1: memref<16x8xf32, #tpu.memory_space<vmem>>, %arg2: memref<8x512xf32, #tpu.memory_space<vmem>>, %arg3: memref<1x512xf32, #tpu.memory_space<vmem>>, %arg4: memref<512x256xf32, #tpu.memory_space<vmem>>, %arg5: memref<1x256xf32, #tpu.memory_space<vmem>>, %arg6: memref<256x128xf32, #tpu.memory_space<vmem>>, %arg7: memref<1x128xf32, #tpu.memory_space<vmem>>, %arg8: memref<128x256xf32, #tpu.memory_space<vmem>>, %arg9: memref<1x256xf32, #tpu.memory_space<vmem>>, %arg10: memref<256x512xf32, #tpu.memory_space<vmem>>, %arg11: memref<1x512xf32, #tpu.memory_space<vmem>>, %arg12: memref<512x128xf32, #tpu.memory_space<vmem>>, %arg13: memref<1x128xf32, #tpu.memory_space<vmem>>, %arg14: memref<16x128xf32, #tpu.memory_space<vmem>>, %arg15: memref<16x128xf32, #tpu.memory_space<vmem>>) attributes {dimension_semantics = [#tpu.dimension_semantics<parallel>], iteration_bounds = array<i64: 1>, scalar_prefetch = 0 : i64, scratch_operands = 0 : i64, tpu.core_type = #tpu.core_type<tc>, window_params = [{transform_indices = @transform_0, window_bounds = array<i64: 16, 8>}, {pipeline_mode = #tpu.pipeline_mode<synchronous>, transform_indices = @transform_1, window_bounds = array<i64: 8, 512>}, {pipeline_mode = #tpu.pipeline_mode<synchronous>, transform_indices = @transform_2, window_bounds = array<i64: 1, 512>}, {pipeline_mode = #tpu.pipeline_mode<synchronous>, transform_indices = @transform_3, window_bounds = array<i64: 512, 256>}, {pipeline_mode = #tpu.pipeline_mode<synchronous>, transform_indices = @transform_4, window_bounds = array<i64: 1, 256>}, {pipeline_mode = #tpu.pipeline_mode<synchronous>, transform_indices = @transform_5, window_bounds = array<i64: 256, 128>}, {pipeline_mode = #tpu.pipeline_mode<synchronous>, transform_indices = @transform_6, window_bounds = array<i64: 1, 128>}, {pipeline_mode = #tpu.pipeline_mode<synchronous>, transform_indices = @transform_7, window_bounds = array<i64: 128, 256>}, {pipeline_mode = #tpu.pipeline_mode<synchronous>, transform_indices = @transform_8, window_bounds = array<i64: 1, 256>}, {pipeline_mode = #tpu.pipeline_mode<synchronous>, transform_indices = @transform_9, window_bounds = array<i64: 256, 512>}, {pipeline_mode = #tpu.pipeline_mode<synchronous>, transform_indices = @transform_10, window_bounds = array<i64: 1, 512>}, {pipeline_mode = #tpu.pipeline_mode<synchronous>, transform_indices = @transform_11, window_bounds = array<i64: 512, 128>}, {pipeline_mode = #tpu.pipeline_mode<synchronous>, transform_indices = @transform_12, window_bounds = array<i64: 1, 128>}, {transform_indices = @transform_13, window_bounds = array<i64: 16, 128>}, {transform_indices = @transform_14, window_bounds = array<i64: 16, 128>}]} {
    %c0 = arith.constant 0 : index
    %c0_0 = arith.constant 0 : index
    %0 = vector.load %arg1[%c0, %c0_0] : memref<16x8xf32, #tpu.memory_space<vmem>>, vector<16x8xf32>
    %c0_1 = arith.constant 0 : index
    %c0_2 = arith.constant 0 : index
    %1 = vector.load %arg2[%c0_1, %c0_2] : memref<8x512xf32, #tpu.memory_space<vmem>>, vector<8x512xf32>
    %cst = arith.constant dense<0.000000e+00> : vector<16x512xf32>
    %2 = tpu.matmul %0, %1, %cst {dimension_numbers = #tpu.dot_dimension_numbers<[1], [0], [0], [1], [0, 0, 1, 1], [], []>} : vector<16x8xf32>, vector<8x512xf32>, vector<16x512xf32> -> vector<16x512xf32>
    %c0_3 = arith.constant 0 : index
    %c0_4 = arith.constant 0 : index
    %3 = vector.load %arg3[%c0_3, %c0_4] : memref<1x512xf32, #tpu.memory_space<vmem>>, vector<1x512xf32>
    %4 = vector.broadcast %3 : vector<1x512xf32> to vector<16x512xf32>
    %5 = arith.addf %2, %4 : vector<16x512xf32>
    %cst_5 = arith.constant 0.000000e+00 : f32
    %6 = vector.broadcast %cst_5 : f32 to vector<16x512xf32>
    %7 = arith.maximumf %5, %6 : vector<16x512xf32>
    %c0_6 = arith.constant 0 : index
    %c0_7 = arith.constant 0 : index
    %8 = vector.load %arg4[%c0_6, %c0_7] : memref<512x256xf32, #tpu.memory_space<vmem>>, vector<512x256xf32>
    %cst_8 = arith.constant dense<0.000000e+00> : vector<16x256xf32>
    %9 = tpu.matmul %7, %8, %cst_8 {dimension_numbers = #tpu.dot_dimension_numbers<[1], [0], [0], [1], [0, 0, 1, 1], [], []>} : vector<16x512xf32>, vector<512x256xf32>, vector<16x256xf32> -> vector<16x256xf32>
    %c0_9 = arith.constant 0 : index
    %c0_10 = arith.constant 0 : index
    %10 = vector.load %arg5[%c0_9, %c0_10] : memref<1x256xf32, #tpu.memory_space<vmem>>, vector<1x256xf32>
    %11 = vector.broadcast %10 : vector<1x256xf32> to vector<16x256xf32>
    %12 = arith.addf %9, %11 : vector<16x256xf32>
    %cst_11 = arith.constant 0.000000e+00 : f32
    %13 = vector.broadcast %cst_11 : f32 to vector<16x256xf32>
    %14 = arith.maximumf %12, %13 : vector<16x256xf32>
    %c0_12 = arith.constant 0 : index
    %c0_13 = arith.constant 0 : index
    %15 = vector.load %arg6[%c0_12, %c0_13] : memref<256x128xf32, #tpu.memory_space<vmem>>, vector<256x128xf32>
    %cst_14 = arith.constant dense<0.000000e+00> : vector<16x128xf32>
    %16 = tpu.matmul %14, %15, %cst_14 {dimension_numbers = #tpu.dot_dimension_numbers<[1], [0], [0], [1], [0, 0, 1, 1], [], []>} : vector<16x256xf32>, vector<256x128xf32>, vector<16x128xf32> -> vector<16x128xf32>
    %c0_15 = arith.constant 0 : index
    %c0_16 = arith.constant 0 : index
    %17 = vector.load %arg7[%c0_15, %c0_16] : memref<1x128xf32, #tpu.memory_space<vmem>>, vector<1x128xf32>
    %18 = vector.broadcast %17 : vector<1x128xf32> to vector<16x128xf32>
    %19 = arith.addf %16, %18 : vector<16x128xf32>
    %c0_17 = arith.constant 0 : index
    %c0_18 = arith.constant 0 : index
    %20 = vector.load %arg8[%c0_17, %c0_18] : memref<128x256xf32, #tpu.memory_space<vmem>>, vector<128x256xf32>
    %cst_19 = arith.constant dense<0.000000e+00> : vector<16x256xf32>
    %21 = tpu.matmul %19, %20, %cst_19 {dimension_numbers = #tpu.dot_dimension_numbers<[1], [0], [0], [1], [0, 0, 1, 1], [], []>} : vector<16x128xf32>, vector<128x256xf32>, vector<16x256xf32> -> vector<16x256xf32>
    %c0_20 = arith.constant 0 : index
    %c0_21 = arith.constant 0 : index
    %22 = vector.load %arg9[%c0_20, %c0_21] : memref<1x256xf32, #tpu.memory_space<vmem>>, vector<1x256xf32>
    %23 = vector.broadcast %22 : vector<1x256xf32> to vector<16x256xf32>
    %24 = arith.addf %21, %23 : vector<16x256xf32>
    %cst_22 = arith.constant 0.000000e+00 : f32
    %25 = vector.broadcast %cst_22 : f32 to vector<16x256xf32>
    %26 = arith.maximumf %24, %25 : vector<16x256xf32>
    %c0_23 = arith.constant 0 : index
    %c0_24 = arith.constant 0 : index
    %27 = vector.load %arg10[%c0_23, %c0_24] : memref<256x512xf32, #tpu.memory_space<vmem>>, vector<256x512xf32>
    %cst_25 = arith.constant dense<0.000000e+00> : vector<16x512xf32>
    %28 = tpu.matmul %26, %27, %cst_25 {dimension_numbers = #tpu.dot_dimension_numbers<[1], [0], [0], [1], [0, 0, 1, 1], [], []>} : vector<16x256xf32>, vector<256x512xf32>, vector<16x512xf32> -> vector<16x512xf32>
    %c0_26 = arith.constant 0 : index
    %c0_27 = arith.constant 0 : index
    %29 = vector.load %arg11[%c0_26, %c0_27] : memref<1x512xf32, #tpu.memory_space<vmem>>, vector<1x512xf32>
    %30 = vector.broadcast %29 : vector<1x512xf32> to vector<16x512xf32>
    %31 = arith.addf %28, %30 : vector<16x512xf32>
    %cst_28 = arith.constant 0.000000e+00 : f32
    %32 = vector.broadcast %cst_28 : f32 to vector<16x512xf32>
    %33 = arith.maximumf %31, %32 : vector<16x512xf32>
    %c0_29 = arith.constant 0 : index
    %c0_30 = arith.constant 0 : index
    %34 = vector.load %arg12[%c0_29, %c0_30] : memref<512x128xf32, #tpu.memory_space<vmem>>, vector<512x128xf32>
    %cst_31 = arith.constant dense<0.000000e+00> : vector<16x128xf32>
    %35 = tpu.matmul %33, %34, %cst_31 {dimension_numbers = #tpu.dot_dimension_numbers<[1], [0], [0], [1], [0, 0, 1, 1], [], []>} : vector<16x512xf32>, vector<512x128xf32>, vector<16x128xf32> -> vector<16x128xf32>
    %c0_32 = arith.constant 0 : index
    %c0_33 = arith.constant 0 : index
    %36 = vector.load %arg13[%c0_32, %c0_33] : memref<1x128xf32, #tpu.memory_space<vmem>>, vector<1x128xf32>
    %37 = vector.broadcast %36 : vector<1x128xf32> to vector<16x128xf32>
    %38 = arith.addf %35, %37 : vector<16x128xf32>
    %c0_34 = arith.constant 0 : index
    %c0_35 = arith.constant 0 : index
    %39 = vector.load %arg15[%c0_34, %c0_35] : memref<16x128xf32, #tpu.memory_space<vmem>>, vector<16x128xf32>
    tpu.vector_store %arg15[%c0_34, %c0_35], %19 {strides = array<i32>} : memref<16x128xf32, #tpu.memory_space<vmem>>, vector<16x128xf32>,
    %c0_36 = arith.constant 0 : index
    %c0_37 = arith.constant 0 : index
    %40 = vector.load %arg14[%c0_36, %c0_37] : memref<16x128xf32, #tpu.memory_space<vmem>>, vector<16x128xf32>
    tpu.vector_store %arg14[%c0_36, %c0_37], %38 {strides = array<i32>} : memref<16x128xf32, #tpu.memory_space<vmem>>, vector<16x128xf32>,
    return
  }
  func.func @transform_0(%arg0: i32) -> (i32, i32) {
    %c0_i32 = arith.constant 0 : i32
    %c0_i32_0 = arith.constant 0 : i32
    return %arg0, %c0_i32 : i32, i32
  }
  func.func @transform_1(%arg0: i32) -> (i32, i32) {
    %c0_i32 = arith.constant 0 : i32
    %c0_i32_0 = arith.constant 0 : i32
    %c0_i32_1 = arith.constant 0 : i32
    return %c0_i32, %c0_i32_0 : i32, i32
  }
  func.func @transform_2(%arg0: i32) -> (i32, i32) {
    %c0_i32 = arith.constant 0 : i32
    %c0_i32_0 = arith.constant 0 : i32
    %c0_i32_1 = arith.constant 0 : i32
    return %c0_i32, %c0_i32_0 : i32, i32
  }
  func.func @transform_3(%arg0: i32) -> (i32, i32) {
    %c0_i32 = arith.constant 0 : i32
    %c0_i32_0 = arith.constant 0 : i32
    %c0_i32_1 = arith.constant 0 : i32
    return %c0_i32, %c0_i32_0 : i32, i32
  }
  func.func @transform_4(%arg0: i32) -> (i32, i32) {
    %c0_i32 = arith.constant 0 : i32
    %c0_i32_0 = arith.constant 0 : i32
    %c0_i32_1 = arith.constant 0 : i32
    return %c0_i32, %c0_i32_0 : i32, i32
  }
  func.func @transform_5(%arg0: i32) -> (i32, i32) {
    %c0_i32 = arith.constant 0 : i32
    %c0_i32_0 = arith.constant 0 : i32
    %c0_i32_1 = arith.constant 0 : i32
    return %c0_i32, %c0_i32_0 : i32, i32
  }
  func.func @transform_6(%arg0: i32) -> (i32, i32) {
    %c0_i32 = arith.constant 0 : i32
    %c0_i32_0 = arith.constant 0 : i32
    %c0_i32_1 = arith.constant 0 : i32
    return %c0_i32, %c0_i32_0 : i32, i32
  }
  func.func @transform_7(%arg0: i32) -> (i32, i32) {
    %c0_i32 = arith.constant 0 : i32
    %c0_i32_0 = arith.constant 0 : i32
    %c0_i32_1 = arith.constant 0 : i32
    return %c0_i32, %c0_i32_0 : i32, i32
  }
  func.func @transform_8(%arg0: i32) -> (i32, i32) {
    %c0_i32 = arith.constant 0 : i32
    %c0_i32_0 = arith.constant 0 : i32
    %c0_i32_1 = arith.constant 0 : i32
    return %c0_i32, %c0_i32_0 : i32, i32
  }
  func.func @transform_9(%arg0: i32) -> (i32, i32) {
    %c0_i32 = arith.constant 0 : i32
    %c0_i32_0 = arith.constant 0 : i32
    %c0_i32_1 = arith.constant 0 : i32
    return %c0_i32, %c0_i32_0 : i32, i32
  }
  func.func @transform_10(%arg0: i32) -> (i32, i32) {
    %c0_i32 = arith.constant 0 : i32
    %c0_i32_0 = arith.constant 0 : i32
    %c0_i32_1 = arith.constant 0 : i32
    return %c0_i32, %c0_i32_0 : i32, i32
  }
  func.func @transform_11(%arg0: i32) -> (i32, i32) {
    %c0_i32 = arith.constant 0 : i32
    %c0_i32_0 = arith.constant 0 : i32
    %c0_i32_1 = arith.constant 0 : i32
    return %c0_i32, %c0_i32_0 : i32, i32
  }
  func.func @transform_12(%arg0: i32) -> (i32, i32) {
    %c0_i32 = arith.constant 0 : i32
    %c0_i32_0 = arith.constant 0 : i32
    %c0_i32_1 = arith.constant 0 : i32
    return %c0_i32, %c0_i32_0 : i32, i32
  }
  func.func @transform_13(%arg0: i32) -> (i32, i32) {
    %c0_i32 = arith.constant 0 : i32
    %c0_i32_0 = arith.constant 0 : i32
    return %arg0, %c0_i32 : i32, i32
  }
  func.func @transform_14(%arg0: i32) -> (i32, i32) {
    %c0_i32 = arith.constant 0 : i32
    %c0_i32_0 = arith.constant 0 : i32
    return %arg0, %c0_i32 : i32, i32
  }
}

module attributes {stable_mosaic.version = 11 : i64} {
  func.func @dae_kernel(%arg0: i32, %arg1: memref<16x8xf32, #tpu.memory_space<vmem>>, %arg2: memref<8x512xf32, #tpu.memory_space<vmem>>, %arg3: memref<1x512xf32, #tpu.memory_space<vmem>>, %arg4: memref<512x256xf32, #tpu.memory_space<vmem>>, %arg5: memref<1x256xf32, #tpu.memory_space<vmem>>, %arg6: memref<256x128xf32, #tpu.memory_space<vmem>>, %arg7: memref<1x128xf32, #tpu.memory_space<vmem>>, %arg8: memref<128x256xf32, #tpu.memory_space<vmem>>, %arg9: memref<1x256xf32, #tpu.memory_space<vmem>>, %arg10: memref<256x512xf32, #tpu.memory_space<vmem>>, %arg11: memref<1x512xf32, #tpu.memory_space<vmem>>, %arg12: memref<512x128xf32, #tpu.memory_space<vmem>>, %arg13: memref<1x128xf32, #tpu.memory_space<vmem>>, %arg14: memref<16x128xf32, #tpu.memory_space<vmem>>, %arg15: memref<16x128xf32, #tpu.memory_space<vmem>>) attributes {dimension_semantics = [#tpu.dimension_semantics<parallel>], iteration_bounds = array<i64: 1>, scalar_prefetch = 0 : i64, scratch_operands = 0 : i64, tpu.core_type = #tpu.core_type<tc>, window_params = [{transform_indices = @transform_0, window_bounds = array<i64: 16, 8>}, {pipeline_mode = #tpu.pipeline_mode<synchronous>, transform_indices = @transform_1, window_bounds = array<i64: 8, 512>}, {pipeline_mode = #tpu.pipeline_mode<synchronous>, transform_indices = @transform_2, window_bounds = array<i64: 1, 512>}, {pipeline_mode = #tpu.pipeline_mode<synchronous>, transform_indices = @transform_3, window_bounds = array<i64: 512, 256>}, {pipeline_mode = #tpu.pipeline_mode<synchronous>, transform_indices = @transform_4, window_bounds = array<i64: 1, 256>}, {pipeline_mode = #tpu.pipeline_mode<synchronous>, transform_indices = @transform_5, window_bounds = array<i64: 256, 128>}, {pipeline_mode = #tpu.pipeline_mode<synchronous>, transform_indices = @transform_6, window_bounds = array<i64: 1, 128>}, {pipeline_mode = #tpu.pipeline_mode<synchronous>, transform_indices = @transform_7, window_bounds = array<i64: 128, 256>}, {pipeline_mode = #tpu.pipeline_mode<synchronous>, transform_indices = @transform_8, window_bounds = array<i64: 1, 256>}, {pipeline_mode = #tpu.pipeline_mode<synchronous>, transform_indices = @transform_9, window_bounds = array<i64: 256, 512>}, {pipeline_mode = #tpu.pipeline_mode<synchronous>, transform_indices = @transform_10, window_bounds = array<i64: 1, 512>}, {pipeline_mode = #tpu.pipeline_mode<synchronous>, transform_indices = @transform_11, window_bounds = array<i64: 512, 128>}, {pipeline_mode = #tpu.pipeline_mode<synchronous>, transform_indices = @transform_12, window_bounds = array<i64: 1, 128>}, {transform_indices = @transform_13, window_bounds = array<i64: 16, 128>}, {transform_indices = @transform_14, window_bounds = array<i64: 16, 128>}]} {
    %c0 = arith.constant 0 : index
    %c0_0 = arith.constant 0 : index
    %0 = vector.load %arg1[%c0, %c0_0] : memref<16x8xf32, #tpu.memory_space<vmem>>, vector<16x8xf32>
    %c0_1 = arith.constant 0 : index
    %c0_2 = arith.constant 0 : index
    %1 = vector.load %arg2[%c0_1, %c0_2] : memref<8x512xf32, #tpu.memory_space<vmem>>, vector<8x512xf32>
    %cst = arith.constant dense<0.000000e+00> : vector<16x512xf32>
    %2 = tpu.matmul %0, %1, %cst {dimension_numbers = #tpu.dot_dimension_numbers<[1], [0], [0], [1], [0, 0, 1, 1], [], []>} : vector<16x8xf32>, vector<8x512xf32>, vector<16x512xf32> -> vector<16x512xf32>
    %c0_3 = arith.constant 0 : index
    %c0_4 = arith.constant 0 : index
    %3 = vector.load %arg3[%c0_3, %c0_4] : memref<1x512xf32, #tpu.memory_space<vmem>>, vector<1x512xf32>
    %4 = vector.broadcast %3 : vector<1x512xf32> to vector<16x512xf32>
    %5 = arith.addf %2, %4 : vector<16x512xf32>
    %cst_5 = arith.constant 0.000000e+00 : f32
    %6 = vector.broadcast %cst_5 : f32 to vector<16x512xf32>
    %7 = arith.maximumf %5, %6 : vector<16x512xf32>
    %c0_6 = arith.constant 0 : index
    %c0_7 = arith.constant 0 : index
    %8 = vector.load %arg4[%c0_6, %c0_7] : memref<512x256xf32, #tpu.memory_space<vmem>>, vector<512x256xf32>
    %cst_8 = arith.constant dense<0.000000e+00> : vector<16x256xf32>
    %9 = tpu.matmul %7, %8, %cst_8 {dimension_numbers = #tpu.dot_dimension_numbers<[1], [0], [0], [1], [0, 0, 1, 1], [], []>} : vector<16x512xf32>, vector<512x256xf32>, vector<16x256xf32> -> vector<16x256xf32>
    %c0_9 = arith.constant 0 : index
    %c0_10 = arith.constant 0 : index
    %10 = vector.load %arg5[%c0_9, %c0_10] : memref<1x256xf32, #tpu.memory_space<vmem>>, vector<1x256xf32>
    %11 = vector.broadcast %10 : vector<1x256xf32> to vector<16x256xf32>
    %12 = arith.addf %9, %11 : vector<16x256xf32>
    %cst_11 = arith.constant 0.000000e+00 : f32
    %13 = vector.broadcast %cst_11 : f32 to vector<16x256xf32>
    %14 = arith.maximumf %12, %13 : vector<16x256xf32>
    %c0_12 = arith.constant 0 : index
    %c0_13 = arith.constant 0 : index
    %15 = vector.load %arg6[%c0_12, %c0_13] : memref<256x128xf32, #tpu.memory_space<vmem>>, vector<256x128xf32>
    %cst_14 = arith.constant dense<0.000000e+00> : vector<16x128xf32>
    %16 = tpu.matmul %14, %15, %cst_14 {dimension_numbers = #tpu.dot_dimension_numbers<[1], [0], [0], [1], [0, 0, 1, 1], [], []>} : vector<16x256xf32>, vector<256x128xf32>, vector<16x128xf32> -> vector<16x128xf32>
    %c0_15 = arith.constant 0 : index
    %c0_16 = arith.constant 0 : index
    %17 = vector.load %arg7[%c0_15, %c0_16] : memref<1x128xf32, #tpu.memory_space<vmem>>, vector<1x128xf32>
    %18 = vector.broadcast %17 : vector<1x128xf32> to vector<16x128xf32>
    %19 = arith.addf %16, %18 : vector<16x128xf32>
    %c0_17 = arith.constant 0 : index
    %c0_18 = arith.constant 0 : index
    %20 = vector.load %arg8[%c0_17, %c0_18] : memref<128x256xf32, #tpu.memory_space<vmem>>, vector<128x256xf32>
    %cst_19 = arith.constant dense<0.000000e+00> : vector<16x256xf32>
    %21 = tpu.matmul %19, %20, %cst_19 {dimension_numbers = #tpu.dot_dimension_numbers<[1], [0], [0], [1], [0, 0, 1, 1], [], []>} : vector<16x128xf32>, vector<128x256xf32>, vector<16x256xf32> -> vector<16x256xf32>
    %c0_20 = arith.constant 0 : index
    %c0_21 = arith.constant 0 : index
    %22 = vector.load %arg9[%c0_20, %c0_21] : memref<1x256xf32, #tpu.memory_space<vmem>>, vector<1x256xf32>
    %23 = vector.broadcast %22 : vector<1x256xf32> to vector<16x256xf32>
    %24 = arith.addf %21, %23 : vector<16x256xf32>
    %cst_22 = arith.constant 0.000000e+00 : f32
    %25 = vector.broadcast %cst_22 : f32 to vector<16x256xf32>
    %26 = arith.maximumf %24, %25 : vector<16x256xf32>
    %c0_23 = arith.constant 0 : index
    %c0_24 = arith.constant 0 : index
    %27 = vector.load %arg10[%c0_23, %c0_24] : memref<256x512xf32, #tpu.memory_space<vmem>>, vector<256x512xf32>
    %cst_25 = arith.constant dense<0.000000e+00> : vector<16x512xf32>
    %28 = tpu.matmul %26, %27, %cst_25 {dimension_numbers = #tpu.dot_dimension_numbers<[1], [0], [0], [1], [0, 0, 1, 1], [], []>} : vector<16x256xf32>, vector<256x512xf32>, vector<16x512xf32> -> vector<16x512xf32>
    %c0_26 = arith.constant 0 : index
    %c0_27 = arith.constant 0 : index
    %29 = vector.load %arg11[%c0_26, %c0_27] : memref<1x512xf32, #tpu.memory_space<vmem>>, vector<1x512xf32>
    %30 = vector.broadcast %29 : vector<1x512xf32> to vector<16x512xf32>
    %31 = arith.addf %28, %30 : vector<16x512xf32>
    %cst_28 = arith.constant 0.000000e+00 : f32
    %32 = vector.broadcast %cst_28 : f32 to vector<16x512xf32>
    %33 = arith.maximumf %31, %32 : vector<16x512xf32>
    %c0_29 = arith.constant 0 : index
    %c0_30 = arith.constant 0 : index
    %34 = vector.load %arg12[%c0_29, %c0_30] : memref<512x128xf32, #tpu.memory_space<vmem>>, vector<512x128xf32>
    %cst_31 = arith.constant dense<0.000000e+00> : vector<16x128xf32>
    %35 = tpu.matmul %33, %34, %cst_31 {dimension_numbers = #tpu.dot_dimension_numbers<[1], [0], [0], [1], [0, 0, 1, 1], [], []>} : vector<16x512xf32>, vector<512x128xf32>, vector<16x128xf32> -> vector<16x128xf32>
    %c0_32 = arith.constant 0 : index
    %c0_33 = arith.constant 0 : index
    %36 = vector.load %arg13[%c0_32, %c0_33] : memref<1x128xf32, #tpu.memory_space<vmem>>, vector<1x128xf32>
    %37 = vector.broadcast %36 : vector<1x128xf32> to vector<16x128xf32>
    %38 = arith.addf %35, %37 : vector<16x128xf32>
    %c0_34 = arith.constant 0 : index
    %c0_35 = arith.constant 0 : index
    %39 = vector.load %arg15[%c0_34, %c0_35] : memref<16x128xf32, #tpu.memory_space<vmem>>, vector<16x128xf32>
    tpu.vector_store %arg15[%c0_34, %c0_35], %19 {strides = array<i32>} : memref<16x128xf32, #tpu.memory_space<vmem>>, vector<16x128xf32>,
    %c0_36 = arith.constant 0 : index
    %c0_37 = arith.constant 0 : index
    %40 = vector.load %arg14[%c0_36, %c0_37] : memref<16x128xf32, #tpu.memory_space<vmem>>, vector<16x128xf32>
    tpu.vector_store %arg14[%c0_36, %c0_37], %38 {strides = array<i32>} : memref<16x128xf32, #tpu.memory_space<vmem>>, vector<16x128xf32>,
    return
  }
  func.func @transform_0(%arg0: i32) -> (i32, i32) {
    %c0_i32 = arith.constant 0 : i32
    %c0_i32_0 = arith.constant 0 : i32
    return %arg0, %c0_i32 : i32, i32
  }
  func.func @transform_1(%arg0: i32) -> (i32, i32) {
    %c0_i32 = arith.constant 0 : i32
    %c0_i32_0 = arith.constant 0 : i32
    %c0_i32_1 = arith.constant 0 : i32
    return %c0_i32, %c0_i32_0 : i32, i32
  }
  func.func @transform_2(%arg0: i32) -> (i32, i32) {
    %c0_i32 = arith.constant 0 : i32
    %c0_i32_0 = arith.constant 0 : i32
    %c0_i32_1 = arith.constant 0 : i32
    return %c0_i32, %c0_i32_0 : i32, i32
  }
  func.func @transform_3(%arg0: i32) -> (i32, i32) {
    %c0_i32 = arith.constant 0 : i32
    %c0_i32_0 = arith.constant 0 : i32
    %c0_i32_1 = arith.constant 0 : i32
    return %c0_i32, %c0_i32_0 : i32, i32
  }
  func.func @transform_4(%arg0: i32) -> (i32, i32) {
    %c0_i32 = arith.constant 0 : i32
    %c0_i32_0 = arith.constant 0 : i32
    %c0_i32_1 = arith.constant 0 : i32
    return %c0_i32, %c0_i32_0 : i32, i32
  }
  func.func @transform_5(%arg0: i32) -> (i32, i32) {
    %c0_i32 = arith.constant 0 : i32
    %c0_i32_0 = arith.constant 0 : i32
    %c0_i32_1 = arith.constant 0 : i32
    return %c0_i32, %c0_i32_0 : i32, i32
  }
  func.func @transform_6(%arg0: i32) -> (i32, i32) {
    %c0_i32 = arith.constant 0 : i32
    %c0_i32_0 = arith.constant 0 : i32
    %c0_i32_1 = arith.constant 0 : i32
    return %c0_i32, %c0_i32_0 : i32, i32
  }
  func.func @transform_7(%arg0: i32) -> (i32, i32) {
    %c0_i32 = arith.constant 0 : i32
    %c0_i32_0 = arith.constant 0 : i32
    %c0_i32_1 = arith.constant 0 : i32
    return %c0_i32, %c0_i32_0 : i32, i32
  }
  func.func @transform_8(%arg0: i32) -> (i32, i32) {
    %c0_i32 = arith.constant 0 : i32
    %c0_i32_0 = arith.constant 0 : i32
    %c0_i32_1 = arith.constant 0 : i32
    return %c0_i32, %c0_i32_0 : i32, i32
  }
  func.func @transform_9(%arg0: i32) -> (i32, i32) {
    %c0_i32 = arith.constant 0 : i32
    %c0_i32_0 = arith.constant 0 : i32
    %c0_i32_1 = arith.constant 0 : i32
    return %c0_i32, %c0_i32_0 : i32, i32
  }
  func.func @transform_10(%arg0: i32) -> (i32, i32) {
    %c0_i32 = arith.constant 0 : i32
    %c0_i32_0 = arith.constant 0 : i32
    %c0_i32_1 = arith.constant 0 : i32
    return %c0_i32, %c0_i32_0 : i32, i32
  }
  func.func @transform_11(%arg0: i32) -> (i32, i32) {
    %c0_i32 = arith.constant 0 : i32
    %c0_i32_0 = arith.constant 0 : i32
    %c0_i32_1 = arith.constant 0 : i32
    return %c0_i32, %c0_i32_0 : i32, i32
  }
  func.func @transform_12(%arg0: i32) -> (i32, i32) {
    %c0_i32 = arith.constant 0 : i32
    %c0_i32_0 = arith.constant 0 : i32
    %c0_i32_1 = arith.constant 0 : i32
    return %c0_i32, %c0_i32_0 : i32, i32
  }
  func.func @transform_13(%arg0: i32) -> (i32, i32) {
    %c0_i32 = arith.constant 0 : i32
    %c0_i32_0 = arith.constant 0 : i32
    return %arg0, %c0_i32 : i32, i32
  }
  func.func @transform_14(%arg0: i32) -> (i32, i32) {
    %c0_i32 = arith.constant 0 : i32
    %c0_i32_0 = arith.constant 0 : i32
    return %arg0, %c0_i32 : i32, i32
  }
}

</mosaic_0001>

<bundles_post_ra>
// kernel: tpu_custom_call.1
= control target key start
LH: loop header
LB: loop body
LE: loop exit
PB: predicated region body
PF: predicated region fallthrough
CT: control target
= control target key end

     0   :  { %20 = vsyncpa [#allocation3], 0  ;;  %s2446_s0 = inlined_call_operand.vmem [shape: f32[16,8], index: 0, kind: input, shape index: {}]   ;;  %s2447_s1 = inlined_call_operand.hbm [shape: f32[8,512], index: 1, kind: input, shape index: {}]   ;;  %s2448_s2 = inlined_call_operand.vmem [shape: f32[1,512], index: 2, kind: input, shape index: {}]   ;;  %s2449_s3 = inlined_call_operand.hbm [shape: f32[512,256], index: 3, kind: input, shape index: {}]   ;;  %s2450_s4 = inlined_call_operand.vmem [shape: f32[1,256], index: 4, kind: input, shape index: {}]   ;;  %s2451_s5 = inlined_call_operand.hbm [shape: f32[256,128], index: 5, kind: input, shape index: {}]   ;;  %s2452_s6 = inlined_call_operand.vmem [shape: f32[1,128], index: 6, kind: input, shape index: {}]   ;;  %s2453_s7 = inlined_call_operand.hbm [shape: f32[128,256], index: 7, kind: input, shape index: {}]   ;;  %s2454_s8 = inlined_call_operand.vmem [shape: f32[1,256], index: 8, kind: input, shape index: {}]   ;;  %s2455_s9 = inlined_call_operand.hbm [shape: f32[256,512], index: 9, kind: input, shape index: {}]   ;;  %s2456_s10 = inlined_call_operand.vmem [shape: f32[1,512], index: 10, kind: input, shape index: {}]   ;;  %s2457_s11 = inlined_call_operand.hbm [shape: f32[512,128], index: 11, kind: input, shape index: {}]   ;;  %s2458_s12 = inlined_call_operand.vmem [shape: f32[1,128], index: 12, kind: input, shape index: {}]   ;;  %s2459_s13 = inlined_call_operand.hbm [shape: f32[16,128], index: 13, kind: output, shape index: {0}]   ;;  %s2460_s14 = inlined_call_operand.hbm [shape: f32[16,128], index: 14, kind: output, shape index: {1}]  }
   0x1   :  { %21 = vsyncpa [#allocation6], 0 }
   0x2   :  { %22 = vsyncpa [#allocation9], 0 }
   0x3   :  { %23 = vsyncpa [#allocation12], 0 }
   0x4   :  { %24 = vsyncpa [#allocation4], 0 }
   0x5   :  { %25 = vsyncpa [#allocation15], 0  ;;  %s2150_s29 = smov [#allocation5]   ;;  %s1962_s17 = scalar_lea.hbm %s2449_s3, 16384 }
   0x6   :  { %s45_s30 = sshll.u32 %s2150_s29, 4  ;;  %p1963_p0 = scmp.ne.s32.totalorder %s2449_s3, %s1962_s17  ;;  %s46_s30 = int_to_ptr.vmem [resolvable:$true] %s45_s30 }
   0x7   :  { %p1966_p1 = scmp.lt.u32.totalorder %s1962_s17, %s2449_s3 }
   0x9   :  { %p1968_p2 = pnand %p1966_p1, %p1963_p0 }
   0xb   :  { %1971 = shalt.err (!%p1968_p2)
}
   0xc   :  { %s1972_s22 = scalar_lea.vmem %s46_s30, 16384  ;;  %p1977_p4 = scmp.lt.s32.totalorder %s46_s30, %s46_s30 }
   0xd   :  { %p1973_p3 = scmp.ne.s32.totalorder %s46_s30, %s1972_s22  ;;  %p1978_p5 = scmp.lt.s32.totalorder %s1972_s22, %s1972_s22 }
   0xf   :  { %p1979_p6 = por %p1978_p5, %p1977_p4 }
  0x11   :  { %p1980_p7 = pnand %p1979_p6, %p1973_p3 }
  0x13   :  { %1983 = shalt.err (!%p1980_p7)
}
  0x14   :  { %s2151_s23 = smov 256   ;;  %s2152_s24 = smov 16  }
  0x15   :  { %51 = dma.hbm_to_vmem [thread:$0]  %s2449_s3, 16384, %s46_s30, [#allocation6], %s2151_s23, %s2151_s23, %s2152_s24  }
  0x16   :  { %s2153_s27 = smov [#allocation8]   ;;  %s2154_s29 = smov [#allocation2]  }
  0x17   :  { %s73_s28 = sshll.u32 %s2153_s27, 4  ;;  %s34_s15 = sshll.u32 %s2154_s29, 4  ;;  %s74_s28 = int_to_ptr.vmem [resolvable:$true] %s73_s28  ;;  %s35_s15 = int_to_ptr.vmem [resolvable:$true] %s34_s15 }
  0x18   :  { %s1984_s18 = scalar_lea.hbm %s2453_s7, 4096 }
  0x19   :  { %p1985_p8 = scmp.ne.s32.totalorder %s2453_s7, %s1984_s18  ;;  %p1988_p9 = scmp.lt.u32.totalorder %s1984_s18, %s2453_s7 }
  0x1b   :  { %p1990_p10 = pnand %p1988_p9, %p1985_p8 }
  0x1d   :  { %1993 = shalt.err (!%p1990_p10)
}
  0x1e   :  { %s1994_s3 = scalar_lea.vmem %s74_s28, 4096  ;;  %p1999_p12 = scmp.lt.s32.totalorder %s74_s28, %s74_s28 }
  0x1f   :  { %p1995_p11 = scmp.ne.s32.totalorder %s74_s28, %s1994_s3  ;;  %p2000_p13 = scmp.lt.s32.totalorder %s1994_s3, %s1994_s3 }
  0x21   :  { %p2001_p0 = por %p2000_p13, %p1999_p12 }
  0x23   :  { %p2002_p1 = pnand %p2001_p0, %p1995_p11 }
  0x25   :  { %2005 = shalt.err (!%p2002_p1)
}
  0x26   :  { %79 = dma.hbm_to_vmem [thread:$0]  %s2453_s7, 4096, %s74_s28, [#allocation9], %s2151_s23, %s2151_s23, %s2152_s24  }
  0x27   :  { %s2006_s29 = scalar_lea.hbm %s2447_s1, 512 }
  0x28   :  { %p2007_p2 = scmp.ne.s32.totalorder %s2447_s1, %s2006_s29  ;;  %p2010_p3 = scmp.lt.u32.totalorder %s2006_s29, %s2447_s1 }
  0x2a   :  { %p2012_p4 = pnand %p2010_p3, %p2007_p2 }
  0x2c   :  { %2015 = shalt.err (!%p2012_p4)
}
  0x2d   :  { %s2016_s20 = scalar_lea.vmem %s35_s15, 512  ;;  %p2021_p6 = scmp.lt.s32.totalorder %s35_s15, %s35_s15 }
  0x2e   :  { %p2017_p5 = scmp.ne.s32.totalorder %s35_s15, %s2016_s20  ;;  %p2022_p7 = scmp.lt.s32.totalorder %s2016_s20, %s2016_s20 }
  0x30   :  { %p2023_p8 = por %p2022_p7, %p2021_p6 }
  0x32   :  { %p2024_p9 = pnand %p2023_p8, %p2017_p5 }
  0x34   :  { %2027 = shalt.err (!%p2024_p9)
}
  0x35   :  { %37 = dma.hbm_to_vmem [thread:$0]  %s2447_s1, 512, %s35_s15, [#allocation3]  }
  0x36   :  { %s2155_s24 = smov [#allocation7]   ;;  %s2028_s3 = scalar_lea.hbm %s2451_s5, 4096 }
  0x37   :  { %s59_s28 = sshll.u32 %s2155_s24, 4  ;;  %p2029_p10 = scmp.ne.s32.totalorder %s2451_s5, %s2028_s3  ;;  %s60_s28 = int_to_ptr.vmem [resolvable:$true] %s59_s28 }
  0x38   :  { %p2032_p11 = scmp.lt.u32.totalorder %s2028_s3, %s2451_s5 }
  0x3a   :  { %p2034_p12 = pnand %p2032_p11, %p2029_p10 }
  0x3c   :  { %2037 = shalt.err (!%p2034_p12)
}
  0x3d   :  { %s2038_s29 = scalar_lea.vmem %s60_s28, 4096  ;;  %p2043_p0 = scmp.lt.s32.totalorder %s60_s28, %s60_s28 }
  0x3e   :  { %p2039_p13 = scmp.ne.s32.totalorder %s60_s28, %s2038_s29  ;;  %p2044_p1 = scmp.lt.s32.totalorder %s2038_s29, %s2038_s29 }
  0x40   :  { %p2045_p2 = por %p2044_p1, %p2043_p0 }
  0x42   :  { %p2046_p3 = pnand %p2045_p2, %p2039_p13 }
  0x44   :  { %2049 = shalt.err (!%p2046_p3)
}
  0x45   :  { %s2156_s1 = smov 128   ;;  %s2157_s15 = smov 8  }
  0x46   :  { %65 = dma.hbm_to_vmem [thread:$0]  %s2451_s5, 4096, %s60_s28, [#allocation6], %s2156_s1, %s2156_s1, %s2157_s15  }
  0x47   :  { %s2158_s18 = smov [#allocation10]   ;;  %s2050_s23 = scalar_lea.hbm %s2455_s9, 16384 }
  0x48   :  { %s87_s19 = sshll.u32 %s2158_s18, 4  ;;  %p2051_p4 = scmp.ne.s32.totalorder %s2455_s9, %s2050_s23  ;;  %s88_s19 = int_to_ptr.vmem [resolvable:$true] %s87_s19 }
  0x49   :  { %p2054_p5 = scmp.lt.u32.totalorder %s2050_s23, %s2455_s9 }
  0x4b   :  { %p2056_p6 = pnand %p2054_p5, %p2051_p4 }
  0x4d   :  { %2059 = shalt.err (!%p2056_p6)
}
  0x4e   :  { %s2060_s30 = scalar_lea.vmem %s88_s19, 16384  ;;  %p2065_p8 = scmp.lt.s32.totalorder %s88_s19, %s88_s19 }
  0x4f   :  { %p2061_p7 = scmp.ne.s32.totalorder %s88_s19, %s2060_s30  ;;  %p2066_p9 = scmp.lt.s32.totalorder %s2060_s30, %s2060_s30 }
  0x51   :  { %p2067_p10 = por %p2066_p9, %p2065_p8 }
  0x53   :  { %p2068_p11 = pnand %p2067_p10, %p2061_p7 }
  0x55   :  { %2071 = shalt.err (!%p2068_p11)
}
  0x56   :  { %s2159_s5 = smov 512   ;;  %s2160_s28 = smov 32  }
  0x57   :  { %93 = dma.hbm_to_vmem [thread:$0]  %s2455_s9, 16384, %s88_s19, [#allocation9], %s2159_s5, %s2159_s5, %s2160_s28  }
  0x58   :  { %s2161_s27 = smov [#allocation11]   ;;  %s2072_s18 = scalar_lea.hbm %s2457_s11, 8192 }
  0x59   :  { %s101_s29 = sshll.u32 %s2161_s27, 4  ;;  %p2073_p12 = scmp.ne.s32.totalorder %s2457_s11, %s2072_s18  ;;  %s102_s29 = int_to_ptr.vmem [resolvable:$true] %s101_s29 }
  0x5a   :  { %p2076_p13 = scmp.lt.u32.totalorder %s2072_s18, %s2457_s11 }
  0x5c   :  { %p2078_p0 = pnand %p2076_p13, %p2073_p12 }
  0x5e   :  { %2081 = shalt.err (!%p2078_p0)
}
  0x5f   :  { %s2082_s21 = scalar_lea.vmem %s102_s29, 8192  ;;  %p2087_p2 = scmp.lt.s32.totalorder %s102_s29, %s102_s29 }
  0x60   :  { %p2083_p1 = scmp.ne.s32.totalorder %s102_s29, %s2082_s21  ;;  %p2088_p3 = scmp.lt.s32.totalorder %s2082_s21, %s2082_s21 }
  0x62   :  { %p2089_p4 = por %p2088_p3, %p2087_p2 }
  0x64   :  { %p2090_p5 = pnand %p2089_p4, %p2083_p1 }
  0x66   :  { %2093 = shalt.err (!%p2090_p5)
}
  0x67   :  { %107 = dma.hbm_to_vmem [thread:$0]  %s2457_s11, 8192, %s102_s29, [#allocation12], %s2156_s1, %s2156_s1, %s2157_s15  }
  0x68   :  { %2138 = dma.done.wait [#allocation3], 512  }
  0x69   :  { %2139 = vsyncadd [#allocation3], 4294966784 }
  0x6a   :  { %2140 = dma.done.wait [#allocation6], 20480  }
  0x6b   :  { %2141 = vsyncadd [#allocation6], 4294946816 }
  0x6c   :  { %2142 = dma.done.wait [#allocation9], 20480  }
  0x6d   :  { %2143 = vsyncadd [#allocation9], 4294946816 }
  0x6e   :  { %2144 = dma.done.wait [#allocation12], 8192  }
  0x6f   :  { %2145 = vsyncadd [#allocation12], 4294959104  ;;  %v2162_v0 = vmov 0.0   ;;  %v131_v1 = vld [vmem:[#allocation2 + $0x8] sm:$0xff]  ;;  %v130_v2 = vld [vmem:[#allocation2] sm:$0xff]  ;;  %vm156_vm0 = vcmask 64512  }
  0x70   :  { %227 = vmatprep.mubr.f32.mxu0 %v2162_v0  ;;  %304 = vmatprep.mubr.f32.mxu1 %v2162_v0  ;;  %v128_v3 = vld [vmem:[%s2446_s0] sm:$0xff]  ;;  %v133_v4 = vld [vmem:[#allocation2 + $0x18] sm:$0xff]  ;;  %v132_v5 = vld [vmem:[#allocation2 + $0x10] sm:$0xff] }
  0x71   :  { %163 = vmatprep.subr.mxu0 %v131_v1  ;;  %v129_v6 = vld [vmem:[%s2446_s0 + $0x8] sm:$0xff]  ;;  %240 = vmatprep.subr.mxu1 %v133_v4  ;;  %v328_v8 = vld [vmem:[#allocation5 + $0x18] sm:$0xff]  ;;  %v325_v9 = vld [vmem:[#allocation5] sm:$0xff] }
  0x72   :  { %164 = vmatpush1.msra.mxu0 %v130_v2  ;;  %v326_v7 = vld [vmem:[#allocation5 + $0x8] sm:$0xff]  ;;  %241 = vmatpush1.msra.mxu1 %v132_v5  ;;  %v327_v11 = vld [vmem:[#allocation5 + $0x10] sm:$0xff]  ;;  %v332_v13 = vld [vmem:[#allocation5 + $0x38] sm:$0xff] }
  0x73   :  { %1435 = vmatmul.mubr.msk.f32.vlgmr.msra.gmra.mrb[0].mxu0 %vm156_vm0, %v128_v3  ;;  %v1555_v10 = vpack.c.bf16 %v328_v8, %v326_v7  ;;  %v330_v12 = vld [vmem:[#allocation5 + $0x28] sm:$0xff]  ;;  %1437 = vmatmul.mubr.msk.f32.vlgmr.msra.gmra.mrb[0].mxu1 %vm156_vm0, %v128_v3  ;;  %v1557_v14 = vpack.c.bf16 %v327_v11, %v325_v9  ;;  %v329_v16 = vld [vmem:[#allocation5 + $0x20] sm:$0xff]  ;;  %v331_v17 = vld [vmem:[#allocation5 + $0x30] sm:$0xff] }
  0x74   :  { %233 = vmatprep.mubr.f32.mxu0 %v2162_v0  ;;  %v1559_v15 = vpack.c.bf16 %v332_v13, %v330_v12  ;;  %v334_v18 = vld [vmem:[#allocation5 + $0x48] sm:$0xff]  ;;  %310 = vmatprep.mubr.f32.mxu1 %v2162_v0  ;;  %v336_v19 = vld [vmem:[#allocation5 + $0x58] sm:$0xff]  ;;  %v1561_v20 = vpack.c.bf16 %v331_v17, %v329_v16  ;;  %v333_v22 = vld [vmem:[#allocation5 + $0x40] sm:$0xff] }
  0x75   :  { %1556 = vmatprep.subr.bf16.mxu0 %v1555_v10  ;;  %v1563_v21 = vpack.c.bf16 %v336_v19, %v334_v18  ;;  %v335_v23 = vld [vmem:[#allocation5 + $0x50] sm:$0xff]  ;;  %v338_v24 = vld [vmem:[#allocation5 + $0x68] sm:$0xff]  ;;  %v340_v25 = vld [vmem:[#allocation5 + $0x78] sm:$0xff] }
  0x76   :  { %1558 = vmatpush1.bf16.msra.mxu0 %v1557_v14  ;;  %v1565_v26 = vpack.c.bf16 %v335_v23, %v333_v22  ;;  %v1567_v27 = vpack.c.bf16 %v340_v25, %v338_v24  ;;  %v337_v28 = vld [vmem:[#allocation5 + $0x60] sm:$0xff]  ;;  %v339_v29 = vld [vmem:[#allocation5 + $0x70] sm:$0xff]  ;;  %v342_v30 = vld [vmem:[#allocation5 + $0x88] sm:$0xff] }
  0x77   :  { %1436 = vmatmul.mubr.msk.f32.gmra.mrb[2].mxu0 %vm156_vm0, %v129_v6  ;;  %1560 = vmatprep.subr.bf16.mxu0 %v1559_v15  ;;  %v344_v31 = vld [vmem:[#allocation5 + $0x98] sm:$0xff]  ;;  %v1569_v32 = vpack.c.bf16 %v339_v29, %v337_v28  ;;  %v341_v34 = vld [vmem:[#allocation5 + $0x80] sm:$0xff]  ;;  %v343_v35 = vld [vmem:[#allocation5 + $0x90] sm:$0xff] }
  0x78   :  { %1438 = vmatmul.mubr.msk.f32.gmra.mrb[2].mxu1 %vm156_vm0, %v129_v6  ;;  %v1571_v33 = vpack.c.bf16 %v344_v31, %v342_v30  ;;  %v346_v36 = vld [vmem:[#allocation5 + $0xa8] sm:$0xff]  ;;  %v348_v37 = vld [vmem:[#allocation5 + $0xb8] sm:$0xff]  ;;  %v1573_v38 = vpack.c.bf16 %v343_v35, %v341_v34  ;;  %v345_v40 = vld [vmem:[#allocation5 + $0xa0] sm:$0xff] }
  0x79   :  { %v1575_v39 = vpack.c.bf16 %v348_v37, %v346_v36  ;;  %v347_v41 = vld [vmem:[#allocation5 + $0xb0] sm:$0xff]  ;;  %v350_v42 = vld [vmem:[#allocation5 + $0xc8] sm:$0xff]  ;;  %v352_v43 = vld [vmem:[#allocation5 + $0xd8] sm:$0xff] }
  0x7a   :  { %1562 = vmatpush1.bf16.msra.mxu0 %v1561_v20  ;;  %v1577_v44 = vpack.c.bf16 %v347_v41, %v345_v40  ;;  %v1579_v45 = vpack.c.bf16 %v352_v43, %v350_v42  ;;  %v349_v46 = vld [vmem:[#allocation5 + $0xc0] sm:$0xff]  ;;  %v351_v47 = vld [vmem:[#allocation5 + $0xd0] sm:$0xff]  ;;  %v354_v48 = vld [vmem:[#allocation5 + $0xe8] sm:$0xff] }
  0x7b   :  { %1564 = vmatprep.subr.bf16.mxu0 %v1563_v21  ;;  %v356_v49 = vld [vmem:[#allocation5 + $0xf8] sm:$0xff]  ;;  %v1581_v50 = vpack.c.bf16 %v351_v47, %v349_v46  ;;  %v353_v52 = vld [vmem:[#allocation5 + $0xe0] sm:$0xff]  ;;  %v355_v53 = vld [vmem:[#allocation5 + $0xf0] sm:$0xff] }
  0x7c   :  { %v1583_v51 = vpack.c.bf16 %v356_v49, %v354_v48  ;;  %v358_v54 = vld [vmem:[#allocation5 + $0x108] sm:$0xff]  ;;  %v360_v55 = vld [vmem:[#allocation5 + $0x118] sm:$0xff]  ;;  %v1585_v56 = vpack.c.bf16 %v355_v53, %v353_v52  ;;  %v357_v58 = vld [vmem:[#allocation5 + $0x100] sm:$0xff] }
  0x7d   :  { %v1587_v57 = vpack.c.bf16 %v360_v55, %v358_v54  ;;  %v359_v59 = vld [vmem:[#allocation5 + $0x110] sm:$0xff]  ;;  %v362_v60 = vld [vmem:[#allocation5 + $0x128] sm:$0xff]  ;;  %v364_v61 = vld [vmem:[#allocation5 + $0x138] sm:$0xff] }
  0x7e   :  { %1566 = vmatpush1.bf16.msra.mxu0 %v1565_v26  ;;  %v1589_v62 = vpack.c.bf16 %v359_v59, %v357_v58  ;;  %v1591_v63 = vpack.c.bf16 %v364_v61, %v362_v60  ;;  %v361_v1 = vld [vmem:[#allocation5 + $0x120] sm:$0xff]  ;;  %v363_v2 = vld [vmem:[#allocation5 + $0x130] sm:$0xff]  ;;  %v366_v3 = vld [vmem:[#allocation5 + $0x148] sm:$0xff] }
  0x7f   :  { %1568 = vmatprep.subr.bf16.mxu0 %v1567_v27  ;;  %v368_v4 = vld [vmem:[#allocation5 + $0x158] sm:$0xff]  ;;  %v1593_v5 = vpack.c.bf16 %v363_v2, %v361_v1  ;;  %v365_v7 = vld [vmem:[#allocation5 + $0x140] sm:$0xff]  ;;  %v367_v8 = vld [vmem:[#allocation5 + $0x150] sm:$0xff] }
  0x80   :  { %v1595_v6 = vpack.c.bf16 %v368_v4, %v366_v3  ;;  %v370_v9 = vld [vmem:[#allocation5 + $0x168] sm:$0xff]  ;;  %v372_v10 = vld [vmem:[#allocation5 + $0x178] sm:$0xff]  ;;  %v1597_v11 = vpack.c.bf16 %v367_v8, %v365_v7  ;;  %v369_v13 = vld [vmem:[#allocation5 + $0x160] sm:$0xff] }
  0x81   :  { %v1599_v12 = vpack.c.bf16 %v372_v10, %v370_v9  ;;  %v371_v14 = vld [vmem:[#allocation5 + $0x170] sm:$0xff]  ;;  %v374_v15 = vld [vmem:[#allocation5 + $0x188] sm:$0xff]  ;;  %v376_v16 = vld [vmem:[#allocation5 + $0x198] sm:$0xff] }
  0x82   :  { %1570 = vmatpush1.bf16.msra.mxu0 %v1569_v32  ;;  %v1601_v17 = vpack.c.bf16 %v371_v14, %v369_v13  ;;  %v1603_v18 = vpack.c.bf16 %v376_v16, %v374_v15  ;;  %v373_v19 = vld [vmem:[#allocation5 + $0x180] sm:$0xff]  ;;  %v375_v20 = vld [vmem:[#allocation5 + $0x190] sm:$0xff]  ;;  %v378_v21 = vld [vmem:[#allocation5 + $0x1a8] sm:$0xff] }
  0x83   :  { %1572 = vmatprep.subr.bf16.mxu0 %v1571_v33  ;;  %v380_v22 = vld [vmem:[#allocation5 + $0x1b8] sm:$0xff]  ;;  %v1605_v23 = vpack.c.bf16 %v375_v20, %v373_v19  ;;  %v377_v25 = vld [vmem:[#allocation5 + $0x1a0] sm:$0xff]  ;;  %v379_v26 = vld [vmem:[#allocation5 + $0x1b0] sm:$0xff]  ;;  %v136_v19 = vlaneseq }
  0x84   :  { %v1607_v24 = vpack.c.bf16 %v380_v22, %v378_v21  ;;  %v382_v27 = vld [vmem:[#allocation5 + $0x1c8] sm:$0xff]  ;;  %v384_v28 = vld [vmem:[#allocation5 + $0x1d8] sm:$0xff]  ;;  %v1609_v29 = vpack.c.bf16 %v379_v26, %v377_v25  ;;  %v381_v31 = vld [vmem:[#allocation5 + $0x1c0] sm:$0xff] }
  0x85   :  { %v1611_v30 = vpack.c.bf16 %v384_v28, %v382_v27  ;;  %v383_v32 = vld [vmem:[#allocation5 + $0x1d0] sm:$0xff]  ;;  %v386_v34 = vld [vmem:[#allocation5 + $0x1e8] sm:$0xff]  ;;  %v388_v35 = vld [vmem:[#allocation5 + $0x1f8] sm:$0xff]  ;;  %v2332_v20 = vshrl.u32 %v136_v19, 7 }
  0x86   :  { %1574 = vmatpush1.bf16.msra.mxu0 %v1573_v38  ;;  %v1613_v33 = vpack.c.bf16 %v383_v32, %v381_v31  ;;  %v1615_v36 = vpack.c.bf16 %v388_v35, %v386_v34  ;;  %v385_v37 = vld [vmem:[#allocation5 + $0x1e0] sm:$0xff]  ;;  %v387_v38 = vld [vmem:[#allocation5 + $0x1f0] sm:$0xff]  ;;  %v390_v40 = vld [vmem:[#allocation5 + $0x208] sm:$0xff] }
  0x87   :  { %1576 = vmatprep.subr.bf16.mxu0 %v1575_v39  ;;  %v1617_v39 = vpack.c.bf16 %v387_v38, %v385_v37  ;;  %v392_v41 = vld [vmem:[#allocation5 + $0x218] sm:$0xff]  ;;  %v639_v43 = vld [vmem:[#allocation7 + $0x80] sm:$0xff]  ;;  %v624_v47 = vld [vmem:[#allocation7 + $0x8] sm:$0xff]  ;;  %v2335_v21 = vsub.s32 0, %v2332_v20 }
  0x88   :  { %v1619_v42 = vpack.c.bf16 %v392_v41, %v390_v40  ;;  %v641_v48 = vld [vmem:[#allocation7 + $0x90] sm:$0xff]  ;;  %v642_v49 = vld [vmem:[#allocation7 + $0x98] sm:$0xff]  ;;  %v643_v54 = vld [vmem:[#allocation7 + $0xa0] sm:$0xff] }
  0x89   :  { %v625_v52 = vld [vmem:[#allocation7 + $0x10] sm:$0xff]  ;;  %v626_v53 = vld [vmem:[#allocation7 + $0x18] sm:$0xff]  ;;  %v644_v55 = vld [vmem:[#allocation7 + $0xa8] sm:$0xff] }
  0x8a   :  { %1578 = vmatpush1.bf16.msra.mxu0 %v1577_v44  ;;  %v640_v44 = vld [vmem:[#allocation7 + $0x88] sm:$0xff]  ;;  %v627_v58 = vld [vmem:[#allocation7 + $0x20] sm:$0xff]  ;;  %v645_v60 = vld [vmem:[#allocation7 + $0xb0] sm:$0xff] }
  0x8b   :  { %1580 = vmatprep.subr.bf16.mxu0 %v1579_v45  ;;  %v623_v45 = vld [vmem:[#allocation7] sm:$0xff]  ;;  %v1683_v46 = vpack.c.bf16 %v640_v44, %v639_v43  ;;  %v628_v59 = vld [vmem:[#allocation7 + $0x28] sm:$0xff]  ;;  %v646_v61 = vld [vmem:[#allocation7 + $0xb8] sm:$0xff] }
  0x8c   :  { %v629_v1 = vld [vmem:[#allocation7 + $0x30] sm:$0xff]  ;;  %v630_v2 = vld [vmem:[#allocation7 + $0x38] sm:$0xff]  ;;  %v647_v3 = vld [vmem:[#allocation7 + $0xc0] sm:$0xff] }
  0x8d   :  { %1684 = vmatprep.subr.bf16.mxu1 %v1683_v46  ;;  %v648_v4 = vld [vmem:[#allocation7 + $0xc8] sm:$0xff]  ;;  %v631_v7 = vld [vmem:[#allocation7 + $0x40] sm:$0xff]  ;;  %v649_v9 = vld [vmem:[#allocation7 + $0xd0] sm:$0xff] }
  0x8e   :  { %1582 = vmatpush1.bf16.msra.mxu0 %v1581_v50  ;;  %v1685_v50 = vpack.c.bf16 %v624_v47, %v623_v45  ;;  %v632_v8 = vld [vmem:[#allocation7 + $0x48] sm:$0xff]  ;;  %v650_v10 = vld [vmem:[#allocation7 + $0xd8] sm:$0xff]  ;;  %v633_v13 = vld [vmem:[#allocation7 + $0x50] sm:$0xff] }
  0x8f   :  { %1584 = vmatprep.subr.bf16.mxu0 %v1583_v51  ;;  %v1687_v51 = vpack.c.bf16 %v642_v49, %v641_v48  ;;  %v634_v14 = vld [vmem:[#allocation7 + $0x58] sm:$0xff]  ;;  %v651_v15 = vld [vmem:[#allocation7 + $0xe0] sm:$0xff]  ;;  %v652_v16 = vld [vmem:[#allocation7 + $0xe8] sm:$0xff] }
  0x90   :  { %1686 = vmatpush3.bf16.msra.mxu1 %v1685_v50  ;;  %v2340_v22 = vld [vmem:[%s2448_s2] sm:$0xf]  ;;  %v391_v32 = vld [vmem:[#allocation5 + $0x210] sm:$0xff]  ;;  %v394_v35 = vld [vmem:[#allocation5 + $0x228] sm:$0xff] }
  0x91   :  { %1688 = vmatprep.subr.bf16.mxu1 %v1687_v51  ;;  %v139_v25 = vrot.slane %v2340_v22, %v2335_v21  ;;  %v389_v31 = vld [vmem:[#allocation5 + $0x200] sm:$0xff]  ;;  %v395_v45 = vld [vmem:[#allocation5 + $0x230] sm:$0xff]  ;;  %v398_v49 = vld [vmem:[#allocation5 + $0x248] sm:$0xff] }
  0x92   :  { %1586 = vmatpush1.bf16.msra.mxu0 %v1585_v56  ;;  %v1689_v56 = vpack.c.bf16 %v626_v53, %v625_v52  ;;  %v393_v44 = vld [vmem:[#allocation5 + $0x220] sm:$0xff]  ;;  %v400_v50 = vld [vmem:[#allocation5 + $0x258] sm:$0xff] }
  0x93   :  { %1588 = vmatprep.subr.bf16.mxu0 %v1587_v57  ;;  %v1691_v57 = vpack.c.bf16 %v644_v55, %v643_v54  ;;  %v1625_v54 = vpack.c.bf16 %v395_v45, %v393_v44  ;;  %v413_v19 = vld [vmem:[#allocation5 + $0x2c0] sm:$0xff]  ;;  %v427_v45 = vld [vmem:[#allocation5 + $0x330] sm:$0xff] }
  0x94   :  { %1690 = vmatpush3.bf16.msra.mxu1 %v1689_v56  ;;  %v425_v44 = vld [vmem:[#allocation5 + $0x320] sm:$0xff] }
  0x95   :  { %1692 = vmatprep.subr.bf16.mxu1 %v1691_v57  ;;  %v1627_v57 = vpack.c.bf16 %v400_v50, %v398_v49  ;;  %v1657_v49 = vpack.c.bf16 %v427_v45, %v425_v44  ;;  %v453_v44 = vld [vmem:[%s2450_s4] sm:$0x3] }
  0x96   :  { %1590 = vmatpush1.bf16.msra.mxu0 %v1589_v62  ;;  %v1693_v62 = vpack.c.bf16 %v628_v59, %v627_v58  ;;  %v397_v58 = vld [vmem:[#allocation5 + $0x240] sm:$0xff]  ;;  %v399_v59 = vld [vmem:[#allocation5 + $0x250] sm:$0xff]  ;;  %v458_v45 = vrot.slane %v453_v44, %v2335_v21 }
  0x97   :  { %1592 = vmatprep.subr.bf16.mxu0 %v1591_v63  ;;  %v1695_v63 = vpack.c.bf16 %v646_v61, %v645_v60  ;;  %v402_v60 = vld [vmem:[#allocation5 + $0x268] sm:$0xff]  ;;  %v404_v61 = vld [vmem:[#allocation5 + $0x278] sm:$0xff] }
  0x98   :  { %1694 = vmatpush3.bf16.msra.mxu1 %v1693_v62  ;;  %v1629_v62 = vpack.c.bf16 %v399_v59, %v397_v58  ;;  %v433_v58 = vld [vmem:[#allocation5 + $0x360] sm:$0xff]  ;;  %v435_v59 = vld [vmem:[#allocation5 + $0x370] sm:$0xff] }
  0x99   :  { %1696 = vmatprep.subr.bf16.mxu1 %v1695_v63  ;;  %v1631_v63 = vpack.c.bf16 %v404_v61, %v402_v60  ;;  %v438_v60 = vld [vmem:[#allocation5 + $0x388] sm:$0xff]  ;;  %v440_v61 = vld [vmem:[#allocation5 + $0x398] sm:$0xff] }
  0x9a   :  { %1594 = vmatpush1.bf16.msra.mxu0 %v1593_v5  ;;  %v1697_v5 = vpack.c.bf16 %v630_v2, %v629_v1  ;;  %v401_v1 = vld [vmem:[#allocation5 + $0x260] sm:$0xff]  ;;  %v403_v2 = vld [vmem:[#allocation5 + $0x270] sm:$0xff] }
  0x9b   :  { %1596 = vmatprep.subr.bf16.mxu0 %v1595_v6  ;;  %v1699_v6 = vpack.c.bf16 %v648_v4, %v647_v3  ;;  %v406_v3 = vld [vmem:[#allocation5 + $0x288] sm:$0xff]  ;;  %v408_v4 = vld [vmem:[#allocation5 + $0x298] sm:$0xff] }
  0x9c   :  { %1698 = vmatpush3.bf16.msra.mxu1 %v1697_v5  ;;  %v1633_v5 = vpack.c.bf16 %v403_v2, %v401_v1  ;;  %v437_v1 = vld [vmem:[#allocation5 + $0x380] sm:$0xff]  ;;  %v439_v2 = vld [vmem:[#allocation5 + $0x390] sm:$0xff] }
  0x9d   :  { %1700 = vmatprep.subr.bf16.mxu1 %v1699_v6  ;;  %v1635_v6 = vpack.c.bf16 %v408_v4, %v406_v3  ;;  %v442_v3 = vld [vmem:[#allocation5 + $0x3a8] sm:$0xff]  ;;  %v444_v4 = vld [vmem:[#allocation5 + $0x3b8] sm:$0xff] }
  0x9e   :  { %1598 = vmatpush1.bf16.msra.mxu0 %v1597_v11  ;;  %v1701_v11 = vpack.c.bf16 %v632_v8, %v631_v7  ;;  %v405_v7 = vld [vmem:[#allocation5 + $0x280] sm:$0xff]  ;;  %v407_v8 = vld [vmem:[#allocation5 + $0x290] sm:$0xff] }
  0x9f   :  { %1600 = vmatprep.subr.bf16.mxu0 %v1599_v12  ;;  %v1703_v12 = vpack.c.bf16 %v650_v10, %v649_v9  ;;  %v410_v9 = vld [vmem:[#allocation5 + $0x2a8] sm:$0xff]  ;;  %v412_v10 = vld [vmem:[#allocation5 + $0x2b8] sm:$0xff] }
  0xa0   :  { %1702 = vmatpush3.bf16.msra.mxu1 %v1701_v11  ;;  %v1637_v11 = vpack.c.bf16 %v407_v8, %v405_v7  ;;  %v441_v7 = vld [vmem:[#allocation5 + $0x3a0] sm:$0xff]  ;;  %v443_v8 = vld [vmem:[#allocation5 + $0x3b0] sm:$0xff] }
  0xa1   :  { %1704 = vmatprep.subr.bf16.mxu1 %v1703_v12  ;;  %v1639_v12 = vpack.c.bf16 %v412_v10, %v410_v9  ;;  %v446_v9 = vld [vmem:[#allocation5 + $0x3c8] sm:$0xff]  ;;  %v448_v10 = vld [vmem:[#allocation5 + $0x3d8] sm:$0xff] }
  0xa2   :  { %1602 = vmatpush1.bf16.msra.mxu0 %v1601_v17  ;;  %v1705_v17 = vpack.c.bf16 %v634_v14, %v633_v13  ;;  %v409_v13 = vld [vmem:[#allocation5 + $0x2a0] sm:$0xff]  ;;  %v411_v14 = vld [vmem:[#allocation5 + $0x2b0] sm:$0xff] }
  0xa3   :  { %1604 = vmatprep.subr.bf16.mxu0 %v1603_v18  ;;  %v1707_v18 = vpack.c.bf16 %v652_v16, %v651_v15  ;;  %v414_v15 = vld [vmem:[#allocation5 + $0x2c8] sm:$0xff]  ;;  %v416_v16 = vld [vmem:[#allocation5 + $0x2d8] sm:$0xff] }
  0xa4   :  { %1706 = vmatpush3.bf16.msra.mxu1 %v1705_v17  ;;  %v1641_v17 = vpack.c.bf16 %v411_v14, %v409_v13  ;;  %v1675_v13 = vpack.c.bf16 %v448_v10, %v446_v9  ;;  %v445_v14 = vld [vmem:[#allocation5 + $0x3c0] sm:$0xff] }
  0xa5   :  { %1708 = vmatprep.subr.bf16.mxu1 %v1707_v18  ;;  %v1643_v18 = vpack.c.bf16 %v416_v16, %v414_v15  ;;  %v447_v15 = vld [vmem:[#allocation5 + $0x3d0] sm:$0xff]  ;;  %v450_v16 = vld [vmem:[#allocation5 + $0x3e8] sm:$0xff]  ;;  %v745_v10 = vld [vmem:[#allocation8 + $0x40] sm:$0xff] }
  0xa6   :  { %1606 = vmatpush1.bf16.msra.mxu0 %v1605_v23  ;;  %v2343_v23 = vsub.s32 1, %v2332_v20 }
  0xa7   :  { %1608 = vmatprep.subr.bf16.mxu0 %v1607_v24  ;;  %v150_v24 = vsub.s32 3, %v2332_v20 }
  0xa8   :  { %v143_v26 = vrot.slane %v2340_v22, %v2343_v23 }
  0xa9   :  { %v2353_v28 = vrot.slane %v2340_v22, %v150_v24 }
  0xaa   :  { %1610 = vmatpush1.bf16.msra.mxu0 %v1609_v29 }
  0xab   :  { %1612 = vmatprep.subr.bf16.mxu0 %v1611_v30 }
  0xae   :  { %1614 = vmatpush1.bf16.msra.mxu0 %v1613_v33 }
  0xaf   :  { %1616 = vmatprep.subr.bf16.mxu0 %v1615_v36  ;;  %v396_v36 = vld [vmem:[#allocation5 + $0x238] sm:$0xff] }
  0xb0   :  { %v1623_v43 = vpack.c.bf16 %v396_v36, %v394_v35  ;;  %v424_v35 = vld [vmem:[#allocation5 + $0x318] sm:$0xff] }
  0xb2   :  { %1618 = vmatpush1.bf16.msra.mxu0 %v1617_v39  ;;  %v1621_v39 = vpack.c.bf16 %v391_v32, %v389_v31  ;;  %v417_v31 = vld [vmem:[#allocation5 + $0x2e0] sm:$0xff]  ;;  %v419_v32 = vld [vmem:[#allocation5 + $0x2f0] sm:$0xff] }
  0xb3   :  { %1620 = vmatprep.subr.bf16.mxu0 %v1619_v42  ;;  %v1649_v36 = vpack.c.bf16 %v419_v32, %v417_v31 }
 0x146   :  { %v229_v27 = vpop.f32.mrb[0].mxu0  ;;  %v2355_v33 = vpop.f32.mrb[0].mxu1 }
 0x147   :  { %v230_v29 = vadd.f32 %v229_v27, %v139_v25  ;;  %v231_v30 = vpop.f32.mrb[1].mxu0  ;;  %v308_v37 = vpop.f32.mrb[1].mxu1  ;;  %v420_v27 = vld [vmem:[#allocation5 + $0x2f8] sm:$0xff] }
 0x148   :  { %v232_v34 = vadd.f32 %v231_v30, %v143_v26  ;;  %v309_v41 = vadd.f32 %v308_v37, %v2353_v28 }
 0x149   :  { %v317_v42 = vmax.f32 %v230_v29, 0.0 }
 0x14a   :  { %v318_v38 = vmax.f32 %v232_v34, 0.0  ;;  %v235_v40 = vpop.f32.mrb[2].mxu0  ;;  %v320_v56 = vmax.f32 %v309_v41, 0.0  ;;  %v422_v34 = vld [vmem:[#allocation5 + $0x308] sm:$0xff]  ;;  %v428_v41 = vld [vmem:[#allocation5 + $0x338] sm:$0xff] }
 0x14b   :  { %v236_v46 = vadd.f32 %v235_v40, %v139_v25  ;;  %v237_v47 = vpop.f32.mrb[3].mxu0  ;;  %v2358_v48 = vpop.f32.mrb[2].mxu1  ;;  %v415_v25 = vld [vmem:[#allocation5 + $0x2d0] sm:$0xff]  ;;  %v1651_v37 = vpack.c.bf16 %v424_v35, %v422_v34  ;;  %v426_v40 = vld [vmem:[#allocation5 + $0x328] sm:$0xff] }
 0x14c   :  { %529 = vmatprep.mubr.f32.mxu0 %v318_v38  ;;  %v238_v51 = vadd.f32 %v237_v47, %v143_v26  ;;  %v2360_v52 = vpop.f32.mrb[3].mxu1  ;;  %v418_v26 = vld [vmem:[#allocation5 + $0x2e8] sm:$0xff]  ;;  %v1645_v29 = vpack.c.bf16 %v415_v25, %v413_v19  ;;  %v421_v38 = vld [vmem:[#allocation5 + $0x300] sm:$0xff]  ;;  %v432_v47 = vld [vmem:[#allocation5 + $0x358] sm:$0xff] }
 0x14d   :  { %530 = vmatmul.mubr.f32.vlgmr.msra.gmra.mrb[4].mxu0 %v317_v42  ;;  %v321_v53 = vmax.f32 %v236_v46, 0.0  ;;  %v1647_v30 = vpack.c.bf16 %v420_v27, %v418_v26  ;;  %v430_v46 = vld [vmem:[#allocation5 + $0x348] sm:$0xff]  ;;  %v449_v26 = vld [vmem:[#allocation5 + $0x3e0] sm:$0xff]  ;;  %v451_v27 = vld [vmem:[#allocation5 + $0x3f0] sm:$0xff] }
 0x14e   :  { %1622 = vmatpush1.bf16.msra.mxu0 %v1621_v39  ;;  %v322_v55 = vmax.f32 %v238_v51, 0.0  ;;  %v423_v39 = vld [vmem:[#allocation5 + $0x310] sm:$0xff]  ;;  %v1659_v50 = vpack.c.bf16 %v432_v47, %v430_v46  ;;  %v429_v51 = vld [vmem:[#allocation5 + $0x340] sm:$0xff]  ;;  %v462_v46 = vrot.slane %v453_v44, %v2343_v23 }
 0x14f   :  { %1624 = vmatprep.subr.bf16.mxu0 %v1623_v43  ;;  %v1653_v42 = vpack.c.bf16 %v423_v39, %v421_v38  ;;  %v1655_v43 = vpack.c.bf16 %v428_v41, %v426_v40  ;;  %v653_v39 = vld [vmem:[#allocation7 + $0xf0] sm:$0xff]  ;;  %v654_v40 = vld [vmem:[#allocation7 + $0xf8] sm:$0xff] }
 0x150   :  { %535 = vmatprep.mubr.f32.mxu0 %v322_v55  ;;  %v436_v55 = vld [vmem:[#allocation5 + $0x378] sm:$0xff]  ;;  %v1711_v41 = vpack.c.bf16 %v654_v40, %v653_v39  ;;  %v767_v44 = vld [vmem:[#allocation8 + $0xf0] sm:$0xff] }
 0x151   :  { %536 = vmatmul.mubr.f32.gmra.mrb[6].mxu0 %v321_v53  ;;  %v431_v53 = vld [vmem:[#allocation5 + $0x350] sm:$0xff] }
 0x152   :  { %1626 = vmatpush1.bf16.msra.mxu0 %v1625_v54  ;;  %606 = vmatprep.mubr.f32.mxu0 %v320_v56  ;;  %v434_v54 = vld [vmem:[#allocation5 + $0x368] sm:$0xff]  ;;  %v1661_v56 = vpack.c.bf16 %v431_v53, %v429_v51  ;;  %v737_v51 = vld [vmem:[#allocation8] sm:$0xff]  ;;  %v739_v53 = vld [vmem:[#allocation8 + $0x10] sm:$0xff] }
 0x153   :  { %1628 = vmatprep.subr.bf16.mxu0 %v1627_v57  ;;  %v1663_v57 = vpack.c.bf16 %v436_v55, %v434_v54  ;;  %v742_v55 = vld [vmem:[#allocation8 + $0x28] sm:$0xff] }
 0x156   :  { %1630 = vmatpush1.bf16.msra.mxu0 %v1629_v62  ;;  %v1665_v62 = vpack.c.bf16 %v435_v59, %v433_v58  ;;  %v1717_v59 = vpack.c.bf16 %v739_v53, %v737_v51  ;;  %v869_v51 = vld [vmem:[#allocation10 + $0x38] sm:$0xff] }
 0x157   :  { %1632 = vmatprep.subr.bf16.mxu0 %v1631_v63  ;;  %v1667_v63 = vpack.c.bf16 %v440_v61, %v438_v60 }
 0x15a   :  { %1634 = vmatpush1.bf16.msra.mxu0 %v1633_v5  ;;  %v1669_v5 = vpack.c.bf16 %v439_v2, %v437_v1  ;;  %v741_v1 = vld [vmem:[#allocation8 + $0x20] sm:$0xff]  ;;  %v743_v2 = vld [vmem:[#allocation8 + $0x30] sm:$0xff] }
 0x15b   :  { %1636 = vmatprep.subr.bf16.mxu0 %v1635_v6  ;;  %v1671_v6 = vpack.c.bf16 %v444_v4, %v442_v3  ;;  %v746_v4 = vld [vmem:[#allocation8 + $0x48] sm:$0xff] }
 0x15e   :  { %1638 = vmatpush1.bf16.msra.mxu0 %v1637_v11  ;;  %v1673_v11 = vpack.c.bf16 %v443_v8, %v441_v7  ;;  %v1721_v7 = vpack.c.bf16 %v743_v2, %v741_v1  ;;  %v885_v1 = vld [vmem:[#allocation10 + $0xb8] sm:$0xff] }
 0x15f   :  { %1640 = vmatprep.subr.bf16.mxu0 %v1639_v12  ;;  %v146_v12 = vsub.s32 2, %v2332_v20 }
 0x161   :  { %v147_v19 = vrot.slane %v2340_v22, %v146_v12  ;;  %v635_v22 = vld [vmem:[#allocation7 + $0x60] sm:$0xff] }
 0x162   :  { %1642 = vmatpush1.bf16.msra.mxu0 %v1641_v17  ;;  %v452_v17 = vld [vmem:[#allocation5 + $0x3f8] sm:$0xff] }
 0x163   :  { %1644 = vmatprep.subr.bf16.mxu0 %v1643_v18  ;;  %v1677_v18 = vpack.c.bf16 %v447_v15, %v445_v14  ;;  %v1679_v25 = vpack.c.bf16 %v452_v17, %v450_v16  ;;  %v307_v31 = vadd.f32 %v2355_v33, %v147_v19  ;;  %v313_v32 = vadd.f32 %v2358_v48, %v147_v19  ;;  %v738_v48 = vld [vmem:[#allocation8 + $0x8] sm:$0xff]  ;;  %v752_v14 = vld [vmem:[#allocation8 + $0x78] sm:$0xff]  ;;  %v749_v17 = vld [vmem:[#allocation8 + $0x60] sm:$0xff] }
 0x164   :  { %v754_v19 = vld [vmem:[#allocation8 + $0x88] sm:$0xff] }
 0x165   :  { %v319_v35 = vmax.f32 %v307_v31, 0.0  ;;  %v758_v31 = vld [vmem:[#allocation8 + $0xa8] sm:$0xff] }
 0x166   :  { %1646 = vmatpush1.bf16.msra.mxu0 %v1645_v29  ;;  %v1681_v29 = vpack.c.bf16 %v451_v27, %v449_v26 }
 0x167   :  { %1648 = vmatprep.subr.bf16.mxu0 %v1647_v30  ;;  %v315_v30 = vadd.f32 %v2360_v52, %v2353_v28  ;;  %v637_v28 = vld [vmem:[#allocation7 + $0x70] sm:$0xff]  ;;  %v638_v52 = vld [vmem:[#allocation7 + $0x78] sm:$0xff] }
 0x168   :  { %v1713_v33 = vpack.c.bf16 %v638_v52, %v637_v28  ;;  %v763_v28 = vld [vmem:[#allocation8 + $0xd0] sm:$0xff] }
 0x169   :  { %v324_v34 = vmax.f32 %v315_v30, 0.0  ;;  %v755_v30 = vld [vmem:[#allocation8 + $0x90] sm:$0xff] }
 0x16a   :  { %1650 = vmatpush1.bf16.msra.mxu0 %v1649_v36  ;;  %v323_v36 = vmax.f32 %v313_v32, 0.0  ;;  %v760_v32 = vld [vmem:[#allocation8 + $0xb8] sm:$0xff] }
 0x16b   :  { %1652 = vmatprep.subr.bf16.mxu0 %v1651_v37  ;;  %v636_v37 = vld [vmem:[#allocation7 + $0x68] sm:$0xff] }
 0x16c   :  { %v1709_v38 = vpack.c.bf16 %v636_v37, %v635_v22  ;;  %v759_v22 = vld [vmem:[#allocation8 + $0xb0] sm:$0xff]  ;;  %v762_v37 = vld [vmem:[#allocation8 + $0xc8] sm:$0xff] }
 0x16e   :  { %1654 = vmatpush1.bf16.msra.mxu0 %v1653_v42  ;;  %1710 = vmatpush3.bf16.msra.mxu1 %v1709_v38  ;;  %v740_v42 = vld [vmem:[#allocation8 + $0x18] sm:$0xff] }
 0x16f   :  { %1656 = vmatprep.subr.bf16.mxu0 %v1655_v43  ;;  %1712 = vmatprep.subr.bf16.mxu1 %v1711_v41  ;;  %v1715_v43 = vpack.c.bf16 %v740_v42, %v738_v48  ;;  %v764_v38 = vld [vmem:[#allocation8 + $0xd8] sm:$0xff]  ;;  %v761_v41 = vld [vmem:[#allocation8 + $0xc0] sm:$0xff] }
 0x170   :  { %v1739_v40 = vpack.c.bf16 %v764_v38, %v762_v37  ;;  %v1741_v52 = vpack.c.bf16 %v763_v28, %v761_v41  ;;  %v768_v48 = vld [vmem:[#allocation8 + $0xf8] sm:$0xff]  ;;  %v924_v41 = vld [vmem:[#allocation10 + $0x1f0] sm:$0xff] }
 0x171   :  { %v925_v37 = vld [vmem:[#allocation10 + $0x1f8] sm:$0xff] }
 0x172   :  { %1658 = vmatpush1.bf16.msra.mxu0 %v1657_v49  ;;  %1714 = vmatpush3.bf16.msra.mxu1 %v1713_v33  ;;  %v766_v33 = vld [vmem:[#allocation8 + $0xe8] sm:$0xff]  ;;  %v929_v28 = vld [vmem:[#allocation10 + $0x218] sm:$0xff] }
 0x173   :  { %1660 = vmatprep.subr.bf16.mxu0 %v1659_v50  ;;  %1716 = vmatprep.subr.bf16.mxu1 %v1715_v43  ;;  %v1743_v42 = vpack.c.bf16 %v768_v48, %v766_v33  ;;  %v765_v43 = vld [vmem:[#allocation8 + $0xe0] sm:$0xff] }
 0x176   :  { %1662 = vmatpush1.bf16.msra.mxu0 %v1661_v56  ;;  %v744_v56 = vld [vmem:[#allocation8 + $0x38] sm:$0xff] }
 0x177   :  { %1664 = vmatprep.subr.bf16.mxu0 %v1663_v57 }
 0x17a   :  { %1666 = vmatpush1.bf16.msra.mxu0 %v1665_v62 }
 0x17b   :  { %1668 = vmatprep.subr.bf16.mxu0 %v1667_v63  ;;  %v1719_v63 = vpack.c.bf16 %v744_v56, %v742_v55  ;;  %v868_v55 = vld [vmem:[#allocation10 + $0x30] sm:$0xff] }
 0x17e   :  { %1670 = vmatpush1.bf16.msra.mxu0 %v1669_v5  ;;  %v748_v5 = vld [vmem:[#allocation8 + $0x58] sm:$0xff] }
 0x17f   :  { %1672 = vmatprep.subr.bf16.mxu0 %v1671_v6  ;;  %v1723_v9 = vpack.c.bf16 %v748_v5, %v746_v4  ;;  %v884_v4 = vld [vmem:[#allocation10 + $0xb0] sm:$0xff]  ;;  %v889_v5 = vld [vmem:[#allocation10 + $0xd8] sm:$0xff] }
 0x182   :  { %1674 = vmatpush1.bf16.msra.mxu0 %v1673_v11  ;;  %v747_v11 = vld [vmem:[#allocation8 + $0x50] sm:$0xff] }
 0x183   :  { %1676 = vmatprep.subr.bf16.mxu0 %v1675_v13  ;;  %v750_v13 = vld [vmem:[#allocation8 + $0x68] sm:$0xff]  ;;  %v1725_v15 = vpack.c.bf16 %v747_v11, %v745_v10  ;;  %v892_v10 = vld [vmem:[#allocation10 + $0xf0] sm:$0xff]  ;;  %v897_v11 = vld [vmem:[#allocation10 + $0x118] sm:$0xff] }
 0x184   :  { %v1727_v16 = vpack.c.bf16 %v752_v14, %v750_v13  ;;  %v901_v13 = vld [vmem:[#allocation10 + $0x138] sm:$0xff] }
 0x186   :  { %1678 = vmatpush1.bf16.msra.mxu0 %v1677_v18  ;;  %v751_v18 = vld [vmem:[#allocation8 + $0x70] sm:$0xff] }
 0x187   :  { %1680 = vmatprep.subr.bf16.mxu0 %v1679_v25  ;;  %v756_v25 = vld [vmem:[#allocation8 + $0x98] sm:$0xff]  ;;  %v1729_v26 = vpack.c.bf16 %v751_v18, %v749_v17  ;;  %v900_v17 = vld [vmem:[#allocation10 + $0x130] sm:$0xff] }
 0x188   :  { %v1731_v27 = vpack.c.bf16 %v756_v25, %v754_v19  ;;  %v905_v18 = vld [vmem:[#allocation10 + $0x158] sm:$0xff] }
 0x189   :  { %v909_v19 = vld [vmem:[#allocation10 + $0x178] sm:$0xff] }
 0x18a   :  { %1682 = vmatpush1.bf16.msra.mxu0 %v1681_v29  ;;  %v753_v29 = vld [vmem:[#allocation8 + $0x80] sm:$0xff] }
 0x18d   :  { %607 = vmatmul.mubr.f32.vlgmr.msra.gmra.mrb[4].mxu0 %v319_v35  ;;  %v1735_v35 = vpack.c.bf16 %v760_v32, %v758_v31  ;;  %v917_v31 = vld [vmem:[#allocation10 + $0x1b8] sm:$0xff] }
 0x18e   :  { %612 = vmatprep.mubr.f32.mxu0 %v324_v34  ;;  %v1733_v34 = vpack.c.bf16 %v755_v30, %v753_v29  ;;  %v908_v29 = vld [vmem:[#allocation10 + $0x170] sm:$0xff]  ;;  %v913_v30 = vld [vmem:[#allocation10 + $0x198] sm:$0xff] }
 0x191   :  { %613 = vmatmul.mubr.f32.gmra.mrb[6].mxu0 %v323_v36  ;;  %v757_v36 = vld [vmem:[#allocation8 + $0xa0] sm:$0xff] }
 0x192   :  { %v1737_v39 = vpack.c.bf16 %v759_v22, %v757_v36  ;;  %v916_v36 = vld [vmem:[#allocation10 + $0x1b0] sm:$0xff]  ;;  %v921_v22 = vld [vmem:[#allocation10 + $0x1d8] sm:$0xff] }
 0x260   :  { %v608_v47 = vpop.f32.mrb[4].mxu0 }
 0x261   :  { %v1939_v49 = vadd.f32 %v608_v47, %v458_v45  ;;  %v610_v50 = vpop.f32.mrb[5].mxu0  ;;  %v867_v47 = vld [vmem:[#allocation10 + $0x28] sm:$0xff] }
 0x262   :  { %v1940_v54 = vadd.f32 %v610_v50, %v462_v46 }
 0x263   :  { %v619_v60 = vmax.f32 %v1939_v49, 0.0  ;;  %v865_v49 = vld [vmem:[#allocation10 + $0x18] sm:$0xff] }
 0x264   :  { %v620_v57 = vmax.f32 %v1940_v54, 0.0  ;;  %v614_v58 = vpop.f32.mrb[6].mxu0  ;;  %v1811_v53 = vpack.c.bf16 %v869_v51, %v865_v49  ;;  %v864_v54 = vld [vmem:[#allocation10 + $0x10] sm:$0xff]  ;;  %v945_v51 = vld [vmem:[#allocation10 + $0x298] sm:$0xff] }
 0x265   :  { %v1941_v61 = vadd.f32 %v614_v58, %v458_v45  ;;  %v616_v62 = vpop.f32.mrb[7].mxu0  ;;  %v1745_v45 = vpack.c.bf16 %v767_v44, %v765_v43  ;;  %v1813_v56 = vpack.c.bf16 %v868_v55, %v864_v54  ;;  %v877_v58 = vld [vmem:[#allocation10 + $0x78] sm:$0xff]  ;;  %v932_v43 = vld [vmem:[#allocation10 + $0x230] sm:$0xff] }
 0x266   :  { %v1942_v3 = vadd.f32 %v616_v62, %v462_v46  ;;  %726 = vmatprep.mubr.f32.mxu1 %v620_v57  ;;  %v863_v46 = vld [vmem:[#allocation10 + $0x8] sm:$0xff]  ;;  %v873_v57 = vld [vmem:[#allocation10 + $0x58] sm:$0xff]  ;;  %1812 = vmatprep.subr.bf16.mxu0 %v1811_v53  ;;  %v936_v49 = vld [vmem:[#allocation10 + $0x250] sm:$0xff] }
 0x267   :  { %727 = vmatmul.mubr.f32.vlgmr.msra.gmra.mrb[4].mxu1 %v619_v60  ;;  %v621_v8 = vmax.f32 %v1941_v61, 0.0  ;;  %v1747_v50 = vpack.c.bf16 %v867_v47, %v863_v46  ;;  %v872_v60 = vld [vmem:[#allocation10 + $0x50] sm:$0xff]  ;;  %1814 = vmatpush1.bf16.msra.mxu0 %v1813_v56  ;;  %v937_v44 = vld [vmem:[#allocation10 + $0x258] sm:$0xff] }
 0x268   :  { %v622_v6 = vmax.f32 %v1942_v3, 0.0  ;;  %1718 = vmatpush1.bf16.msra.mxu1 %v1717_v59  ;;  %v1815_v59 = vpack.c.bf16 %v877_v58, %v873_v57  ;;  %v876_v61 = vld [vmem:[#allocation10 + $0x70] sm:$0xff]  ;;  %v949_v53 = vld [vmem:[#allocation10 + $0x2b8] sm:$0xff] }
 0x269   :  { %1720 = vmatprep.subr.bf16.mxu1 %v1719_v63  ;;  %v1817_v62 = vpack.c.bf16 %v876_v61, %v872_v60  ;;  %v881_v63 = vld [vmem:[#allocation10 + $0x98] sm:$0xff]  ;;  %v880_v3 = vld [vmem:[#allocation10 + $0x90] sm:$0xff]  ;;  %v1851_v55 = vpack.c.bf16 %v949_v53, %v945_v51  ;;  %v899_v51 = vld [vmem:[#allocation10 + $0x128] sm:$0xff] }
 0x26a   :  { %731 = vmatprep.mubr.f32.mxu1 %v622_v6  ;;  %1816 = vmatprep.subr.bf16.mxu0 %v1815_v59  ;;  %v1819_v2 = vpack.c.bf16 %v885_v1, %v881_v63  ;;  %v1821_v6 = vpack.c.bf16 %v884_v4, %v880_v3  ;;  %v944_v56 = vld [vmem:[#allocation10 + $0x290] sm:$0xff]  ;;  %v953_v58 = vld [vmem:[#allocation10 + $0x2d8] sm:$0xff] }
 0x26b   :  { %732 = vmatmul.mubr.f32.gmra.mrb[6].mxu1 %v621_v8  ;;  %1818 = vmatpush1.bf16.msra.mxu0 %v1817_v62  ;;  %v948_v57 = vld [vmem:[#allocation10 + $0x2b0] sm:$0xff]  ;;  %v957_v59 = vld [vmem:[#allocation10 + $0x2f8] sm:$0xff] }
 0x26c   :  { %1722 = vmatpush1.bf16.msra.mxu1 %v1721_v7  ;;  %845 = vmatprep.mubr.f32.mxu1 %v2162_v0  ;;  %v893_v7 = vld [vmem:[#allocation10 + $0xf8] sm:$0xff]  ;;  %v1853_v60 = vpack.c.bf16 %v948_v57, %v944_v56  ;;  %v1855_v61 = vpack.c.bf16 %v957_v59, %v953_v58  ;;  %v952_v62 = vld [vmem:[#allocation10 + $0x2d0] sm:$0xff]  ;;  %v903_v56 = vld [vmem:[#allocation10 + $0x148] sm:$0xff] }
 0x26d   :  { %1724 = vmatprep.subr.bf16.mxu1 %v1723_v9  ;;  %1820 = vmatprep.subr.bf16.mxu0 %v1819_v2  ;;  %v1823_v8 = vpack.c.bf16 %v893_v7, %v889_v5  ;;  %v888_v9 = vld [vmem:[#allocation10 + $0xd0] sm:$0xff]  ;;  %v961_v1 = vld [vmem:[#allocation10 + $0x318] sm:$0xff]  ;;  %v907_v57 = vld [vmem:[#allocation10 + $0x168] sm:$0xff] }
 0x26e   :  { %v1825_v14 = vpack.c.bf16 %v892_v10, %v888_v9  ;;  %v956_v63 = vld [vmem:[#allocation10 + $0x2f0] sm:$0xff]  ;;  %v965_v2 = vld [vmem:[#allocation10 + $0x338] sm:$0xff]  ;;  %v1767_v59 = vpack.c.bf16 %v907_v57, %v903_v56  ;;  %v978_v56 = vld [vmem:[#allocation10 + $0x3a0] sm:$0xff] }
 0x26f   :  { %1822 = vmatpush1.bf16.msra.mxu0 %v1821_v6  ;;  %v1857_v3 = vpack.c.bf16 %v956_v63, %v952_v62  ;;  %v1859_v4 = vpack.c.bf16 %v965_v2, %v961_v1  ;;  %v960_v5 = vld [vmem:[#allocation10 + $0x310] sm:$0xff]  ;;  %v969_v7 = vld [vmem:[#allocation10 + $0x358] sm:$0xff]  ;;  %v911_v62 = vld [vmem:[#allocation10 + $0x188] sm:$0xff] }
 0x270   :  { %1726 = vmatpush1.bf16.msra.mxu1 %v1725_v15  ;;  %1824 = vmatprep.subr.bf16.mxu0 %v1823_v8  ;;  %v1827_v15 = vpack.c.bf16 %v901_v13, %v897_v11  ;;  %v964_v6 = vld [vmem:[#allocation10 + $0x330] sm:$0xff]  ;;  %v973_v8 = vld [vmem:[#allocation10 + $0x378] sm:$0xff]  ;;  %v915_v63 = vld [vmem:[#allocation10 + $0x1a8] sm:$0xff] }
 0x271   :  { %1728 = vmatprep.subr.bf16.mxu1 %v1727_v16  ;;  %v896_v16 = vld [vmem:[#allocation10 + $0x110] sm:$0xff]  ;;  %v1861_v9 = vpack.c.bf16 %v964_v6, %v960_v5  ;;  %v1863_v10 = vpack.c.bf16 %v973_v8, %v969_v7  ;;  %v1771_v2 = vpack.c.bf16 %v915_v63, %v911_v62  ;;  %v919_v5 = vld [vmem:[#allocation10 + $0x1c8] sm:$0xff]  ;;  %v985_v63 = vld [vmem:[#allocation10 + $0x3d8] sm:$0xff] }
 0x272   :  { %v1829_v25 = vpack.c.bf16 %v900_v17, %v896_v16  ;;  %v968_v11 = vld [vmem:[#allocation10 + $0x350] sm:$0xff]  ;;  %v923_v6 = vld [vmem:[#allocation10 + $0x1e8] sm:$0xff] }
 0x273   :  { %1826 = vmatpush1.bf16.msra.mxu0 %v1825_v14  ;;  %v972_v13 = vld [vmem:[#allocation10 + $0x370] sm:$0xff]  ;;  %v977_v14 = vld [vmem:[#allocation10 + $0x398] sm:$0xff]  ;;  %v1775_v8 = vpack.c.bf16 %v923_v6, %v919_v5  ;;  %v987_v62 = vld [vmem:[#allocation10 + $0x3e8] sm:$0xff] }
 0x274   :  { %1730 = vmatpush1.bf16.msra.mxu1 %v1729_v26  ;;  %1828 = vmatprep.subr.bf16.mxu0 %v1827_v15  ;;  %v1831_v26 = vpack.c.bf16 %v909_v19, %v905_v18  ;;  %v981_v15 = vld [vmem:[#allocation10 + $0x3b8] sm:$0xff]  ;;  %v1865_v16 = vpack.c.bf16 %v972_v13, %v968_v11  ;;  %v862_v19 = vld [vmem:[#allocation10] sm:$0xff]  ;;  %v927_v11 = vld [vmem:[#allocation10 + $0x208] sm:$0xff] }
 0x275   :  { %1732 = vmatprep.subr.bf16.mxu1 %v1731_v27  ;;  %v904_v27 = vld [vmem:[#allocation10 + $0x150] sm:$0xff]  ;;  %v1867_v17 = vpack.c.bf16 %v981_v15, %v977_v14  ;;  %v931_v13 = vld [vmem:[#allocation10 + $0x228] sm:$0xff] }
 0x276   :  { %v1833_v32 = vpack.c.bf16 %v908_v29, %v904_v27  ;;  %v871_v29 = vld [vmem:[#allocation10 + $0x48] sm:$0xff]  ;;  %v1779_v15 = vpack.c.bf16 %v931_v13, %v927_v11  ;;  %v976_v57 = vld [vmem:[#allocation10 + $0x390] sm:$0xff] }
 0x277   :  { %1830 = vmatpush1.bf16.msra.mxu0 %v1829_v25  ;;  %v866_v25 = vld [vmem:[#allocation10 + $0x20] sm:$0xff]  ;;  %v1191_v11 = vld [vmem:[#allocation11 + $0x88] sm:$0xff] }
 0x278   :  { %1734 = vmatpush1.bf16.msra.mxu1 %v1733_v34  ;;  %1832 = vmatprep.subr.bf16.mxu0 %v1831_v26  ;;  %v1835_v34 = vpack.c.bf16 %v917_v31, %v913_v30  ;;  %v1439_v26 = vld [vmem:[%s2452_s6] ss:$0 sm:$0xff]  ;;  %v875_v30 = vld [vmem:[#allocation10 + $0x68] sm:$0xff] }
 0x279   :  { %1736 = vmatprep.subr.bf16.mxu1 %v1735_v35  ;;  %v912_v35 = vld [vmem:[#allocation10 + $0x190] sm:$0xff] }
 0x27a   :  { %v1837_v38 = vpack.c.bf16 %v916_v36, %v912_v35  ;;  %v1751_v36 = vpack.c.bf16 %v875_v30, %v871_v29  ;;  %v938_v29 = vld [vmem:[#allocation10 + $0x260] sm:$0xff]  ;;  %v943_v30 = vld [vmem:[#allocation10 + $0x288] sm:$0xff] }
 0x27b   :  { %1834 = vmatpush1.bf16.msra.mxu0 %v1833_v32  ;;  %v1749_v32 = vpack.c.bf16 %v866_v25, %v862_v19  ;;  %v939_v19 = vld [vmem:[#allocation10 + $0x268] sm:$0xff] }
 0x27c   :  { %1738 = vmatpush1.bf16.msra.mxu1 %v1737_v39  ;;  %1836 = vmatprep.subr.bf16.mxu0 %v1835_v34  ;;  %v1839_v39 = vpack.c.bf16 %v925_v37, %v921_v22  ;;  %v870_v22 = vld [vmem:[#allocation10 + $0x40] sm:$0xff] }
 0x27d   :  { %1740 = vmatprep.subr.bf16.mxu1 %v1739_v40  ;;  %v920_v40 = vld [vmem:[#allocation10 + $0x1d0] sm:$0xff]  ;;  %v874_v37 = vld [vmem:[#allocation10 + $0x60] sm:$0xff] }
 0x27e   :  { %v1841_v33 = vpack.c.bf16 %v924_v41, %v920_v40  ;;  %v883_v40 = vld [vmem:[#allocation10 + $0xa8] sm:$0xff] }
 0x27f   :  { %1838 = vmatpush1.bf16.msra.mxu0 %v1837_v38 }
 0x280   :  { %1742 = vmatpush1.bf16.msra.mxu1 %v1741_v52  ;;  %v933_v52 = vld [vmem:[#allocation10 + $0x238] sm:$0xff]  ;;  %1840 = vmatprep.subr.bf16.mxu0 %v1839_v39  ;;  %v879_v39 = vld [vmem:[#allocation10 + $0x88] sm:$0xff] }
 0x281   :  { %1744 = vmatprep.subr.bf16.mxu1 %v1743_v42  ;;  %v1843_v48 = vpack.c.bf16 %v933_v52, %v929_v28  ;;  %v928_v42 = vld [vmem:[#allocation10 + $0x210] sm:$0xff]  ;;  %v1753_v28 = vpack.c.bf16 %v874_v37, %v870_v22  ;;  %v951_v22 = vld [vmem:[#allocation10 + $0x2c8] sm:$0xff] }
 0x282   :  { %v1845_v46 = vpack.c.bf16 %v932_v43, %v928_v42  ;;  %v882_v42 = vld [vmem:[#allocation10 + $0xa0] sm:$0xff]  ;;  %v887_v43 = vld [vmem:[#allocation10 + $0xc8] sm:$0xff] }
 0x283   :  { %1842 = vmatpush1.bf16.msra.mxu0 %v1841_v33  ;;  %v1755_v33 = vpack.c.bf16 %v883_v40, %v879_v39  ;;  %v955_v37 = vld [vmem:[#allocation10 + $0x2e8] sm:$0xff]  ;;  %v950_v40 = vld [vmem:[#allocation10 + $0x2c0] sm:$0xff] }
 0x284   :  { %1746 = vmatpush1.bf16.msra.mxu1 %v1745_v45  ;;  %v941_v45 = vld [vmem:[#allocation10 + $0x278] sm:$0xff]  ;;  %1844 = vmatprep.subr.bf16.mxu0 %v1843_v48  ;;  %v878_v48 = vld [vmem:[#allocation10 + $0x80] sm:$0xff]  ;;  %v1791_v39 = vpack.c.bf16 %v955_v37, %v951_v22 }
 0x285   :  { %1748 = vmatprep.subr.bf16.mxu1 %v1747_v50  ;;  %v1847_v47 = vpack.c.bf16 %v941_v45, %v937_v44  ;;  %v940_v50 = vld [vmem:[#allocation10 + $0x270] sm:$0xff]  ;;  %v891_v44 = vld [vmem:[#allocation10 + $0xe8] sm:$0xff]  ;;  %v1757_v45 = vpack.c.bf16 %v882_v42, %v878_v48  ;;  %v958_v42 = vld [vmem:[#allocation10 + $0x300] sm:$0xff] }
 0x286   :  { %v1849_v54 = vpack.c.bf16 %v940_v50, %v936_v49  ;;  %v890_v49 = vld [vmem:[#allocation10 + $0xe0] sm:$0xff]  ;;  %v895_v50 = vld [vmem:[#allocation10 + $0x108] sm:$0xff] }
 0x287   :  { %1846 = vmatpush1.bf16.msra.mxu0 %v1845_v46  ;;  %v1759_v46 = vpack.c.bf16 %v891_v44, %v887_v43  ;;  %v1763_v53 = vpack.c.bf16 %v899_v51, %v895_v50  ;;  %v962_v43 = vld [vmem:[#allocation10 + $0x320] sm:$0xff]  ;;  %v967_v44 = vld [vmem:[#allocation10 + $0x348] sm:$0xff] }
 0x288   :  { %1848 = vmatprep.subr.bf16.mxu0 %v1847_v47  ;;  %v886_v47 = vld [vmem:[#allocation10 + $0xc0] sm:$0xff]  ;;  %v975_v51 = vld [vmem:[#allocation10 + $0x388] sm:$0xff] }
 0x289   :  { %v970_v50 = vld [vmem:[#allocation10 + $0x360] sm:$0xff] }
 0x28b   :  { %1850 = vmatpush1.bf16.msra.mxu0 %v1849_v54  ;;  %v894_v54 = vld [vmem:[#allocation10 + $0x100] sm:$0xff] }
 0x28c   :  { %1852 = vmatprep.subr.bf16.mxu0 %v1851_v55  ;;  %v898_v55 = vld [vmem:[#allocation10 + $0x120] sm:$0xff] }
 0x28d   :  { %v1765_v58 = vpack.c.bf16 %v898_v55, %v894_v54  ;;  %v974_v55 = vld [vmem:[#allocation10 + $0x380] sm:$0xff] }
 0x28f   :  { %1854 = vmatpush1.bf16.msra.mxu0 %v1853_v60  ;;  %v902_v60 = vld [vmem:[#allocation10 + $0x140] sm:$0xff] }
 0x290   :  { %1856 = vmatprep.subr.bf16.mxu0 %v1855_v61  ;;  %v906_v61 = vld [vmem:[#allocation10 + $0x160] sm:$0xff] }
 0x291   :  { %v1769_v1 = vpack.c.bf16 %v906_v61, %v902_v60  ;;  %v983_v61 = vld [vmem:[#allocation10 + $0x3c8] sm:$0xff] }
 0x293   :  { %1858 = vmatpush1.bf16.msra.mxu0 %v1857_v3  ;;  %v910_v3 = vld [vmem:[#allocation10 + $0x180] sm:$0xff] }
 0x294   :  { %1860 = vmatprep.subr.bf16.mxu0 %v1859_v4  ;;  %v914_v4 = vld [vmem:[#allocation10 + $0x1a0] sm:$0xff] }
 0x295   :  { %v1773_v7 = vpack.c.bf16 %v914_v4, %v910_v3  ;;  %v982_v3 = vld [vmem:[#allocation10 + $0x3c0] sm:$0xff] }
 0x296   :  { %v986_v4 = vld [vmem:[#allocation10 + $0x3e0] sm:$0xff] }
 0x297   :  { %1862 = vmatpush1.bf16.msra.mxu0 %v1861_v9  ;;  %v918_v9 = vld [vmem:[#allocation10 + $0x1c0] sm:$0xff]  ;;  %v1809_v6 = vpack.c.bf16 %v986_v4, %v982_v3 }
 0x298   :  { %1864 = vmatprep.subr.bf16.mxu0 %v1863_v10  ;;  %v922_v10 = vld [vmem:[#allocation10 + $0x1e0] sm:$0xff] }
 0x299   :  { %v1777_v14 = vpack.c.bf16 %v922_v10, %v918_v9  ;;  %v1190_v10 = vld [vmem:[#allocation11 + $0x80] sm:$0xff] }
 0x29a   :  { %v1875_v13 = vpack.c.bf16 %v1191_v11, %v1190_v10  ;;  %v1188_v11 = vld [vmem:[#allocation11 + $0x70] sm:$0xff] }
 0x29b   :  { %1866 = vmatpush1.bf16.msra.mxu0 %v1865_v16  ;;  %v926_v16 = vld [vmem:[#allocation10 + $0x200] sm:$0xff] }
 0x29c   :  { %1868 = vmatprep.subr.bf16.mxu0 %v1867_v17  ;;  %v930_v17 = vld [vmem:[#allocation10 + $0x220] sm:$0xff] }
 0x29d   :  { %v1781_v25 = vpack.c.bf16 %v930_v17, %v926_v16 }
 0x33a   :  { %v1473_v18 = vpop.f32.mrb[4].mxu1 }
 0x33b   :  { %v1474_v27 = vpop.f32.mrb[5].mxu1 }
 0x33c   :  { %v1475_v31 = vadd.f32 %v1474_v27, %v1473_v18  ;;  %v935_v18 = vld [vmem:[#allocation10 + $0x248] sm:$0xff]  ;;  %v934_v27 = vld [vmem:[#allocation10 + $0x240] sm:$0xff] }
 0x33e   :  { %v729_v34 = vadd.f32 %v1475_v31, %v1439_v26  ;;  %v1476_v35 = vpop.f32.mrb[6].mxu1  ;;  %v947_v31 = vld [vmem:[#allocation10 + $0x2a8] sm:$0xff] }
 0x33f   :  { %v1477_v38 = vpop.f32.mrb[7].mxu1 }
 0x340   :  { %1395 = vst [vmem:[#allocation14] sm:$0xff] %v729_v34  ;;  %v1478_v41 = vadd.f32 %v1477_v38, %v1476_v35  ;;  %846 = vmatmul.mubr.f32.vlgmr.msra.gmra.mrb[8].mxu1 %v729_v34  ;;  %v1787_v34 = vpack.c.bf16 %v947_v31, %v943_v30  ;;  %v942_v35 = vld [vmem:[#allocation10 + $0x280] sm:$0xff]  ;;  %v1193_v30 = vld [vmem:[#allocation11 + $0x98] sm:$0xff] }
 0x341   :  { %851 = vmatprep.mubr.f32.mxu1 %v2162_v0  ;;  %1750 = vmatpush1.bf16.msra.mxu1 %v1749_v32  ;;  %v1761_v0 = vpack.c.bf16 %v890_v49, %v886_v47  ;;  %v1785_v32 = vpack.c.bf16 %v938_v29, %v934_v27  ;;  %v966_v49 = vld [vmem:[#allocation10 + $0x340] sm:$0xff]  ;;  %v1192_v29 = vld [vmem:[#allocation11 + $0x90] sm:$0xff] }
 0x342   :  { %v734_v52 = vadd.f32 %v1478_v41, %v1439_v26  ;;  %1752 = vmatprep.subr.bf16.mxu1 %v1751_v36  ;;  %v1783_v26 = vpack.c.bf16 %v939_v19, %v935_v18  ;;  %v946_v36 = vld [vmem:[#allocation10 + $0x2a0] sm:$0xff]  ;;  %v1879_v37 = vpack.c.bf16 %v1193_v30, %v1192_v29 }
 0x343   :  { %v1789_v38 = vpack.c.bf16 %v946_v36, %v942_v35  ;;  %v954_v41 = vld [vmem:[#allocation10 + $0x2e0] sm:$0xff] }
 0x344   :  { %1396 = vst [vmem:[#allocation14 + $0x8] sm:$0xff] %v734_v52  ;;  %852 = vmatmul.mubr.f32.gmra.mrb[10].mxu1 %v734_v52  ;;  %v963_v52 = vld [vmem:[#allocation10 + $0x328] sm:$0xff] }
 0x345   :  { %1754 = vmatpush1.bf16.msra.mxu1 %v1753_v28  ;;  %v959_v28 = vld [vmem:[#allocation10 + $0x308] sm:$0xff] }
 0x346   :  { %1756 = vmatprep.subr.bf16.mxu1 %v1755_v33  ;;  %v1793_v33 = vpack.c.bf16 %v954_v41, %v950_v40  ;;  %v1795_v48 = vpack.c.bf16 %v963_v52, %v959_v28  ;;  %v1194_v41 = vld [vmem:[#allocation11 + $0xa0] sm:$0xff]  ;;  %v1195_v28 = vld [vmem:[#allocation11 + $0xa8] sm:$0xff] }
 0x349   :  { %1758 = vmatpush1.bf16.msra.mxu1 %v1757_v45  ;;  %v971_v45 = vld [vmem:[#allocation10 + $0x368] sm:$0xff] }
 0x34a   :  { %1760 = vmatprep.subr.bf16.mxu1 %v1759_v46  ;;  %v1797_v46 = vpack.c.bf16 %v962_v43, %v958_v42  ;;  %v1799_v47 = vpack.c.bf16 %v971_v45, %v967_v44  ;;  %v1883_v42 = vpack.c.bf16 %v1195_v28, %v1194_v41  ;;  %v1178_v43 = vld [vmem:[#allocation11 + $0x20] sm:$0xff]  ;;  %v1179_v44 = vld [vmem:[#allocation11 + $0x28] sm:$0xff]  ;;  %v1196_v45 = vld [vmem:[#allocation11 + $0xb0] sm:$0xff] }
 0x34d   :  { %1762 = vmatpush1.bf16.msra.mxu1 %v1761_v0  ;;  %v979_v0 = vld [vmem:[#allocation10 + $0x3a8] sm:$0xff] }
 0x34e   :  { %1764 = vmatprep.subr.bf16.mxu1 %v1763_v53  ;;  %v1801_v53 = vpack.c.bf16 %v970_v50, %v966_v49  ;;  %v1803_v54 = vpack.c.bf16 %v979_v0, %v975_v51  ;;  %v1180_v50 = vld [vmem:[#allocation11 + $0x30] sm:$0xff]  ;;  %v1181_v51 = vld [vmem:[#allocation11 + $0x38] sm:$0xff]  ;;  %v1198_v0 = vld [vmem:[#allocation11 + $0xc0] sm:$0xff] }
 0x351   :  { %1766 = vmatpush1.bf16.msra.mxu1 %v1765_v58  ;;  %v1805_v58 = vpack.c.bf16 %v978_v56, %v974_v55  ;;  %v1182_v56 = vld [vmem:[#allocation11 + $0x40] sm:$0xff] }
 0x352   :  { %1768 = vmatprep.subr.bf16.mxu1 %v1767_v59  ;;  %v980_v59 = vld [vmem:[#allocation10 + $0x3b0] sm:$0xff] }
 0x353   :  { %v1869_v60 = vpack.c.bf16 %v980_v59, %v976_v57  ;;  %v1183_v57 = vld [vmem:[#allocation11 + $0x48] sm:$0xff]  ;;  %v1201_v59 = vld [vmem:[#allocation11 + $0xd8] sm:$0xff] }
 0x355   :  { %1770 = vmatpush1.bf16.msra.mxu1 %v1769_v1  ;;  %1870 = vmatpush1.bf16.msra.mxu0 %v1869_v60  ;;  %v1807_v1 = vpack.c.bf16 %v987_v62, %v983_v61  ;;  %v1893_v60 = vpack.c.bf16 %v1183_v57, %v1182_v56  ;;  %v1184_v62 = vld [vmem:[#allocation11 + $0x50] sm:$0xff] }
 0x356   :  { %1772 = vmatprep.subr.bf16.mxu1 %v1771_v2  ;;  %v989_v2 = vld [vmem:[#allocation10 + $0x3f8] sm:$0xff] }
 0x357   :  { %v1871_v5 = vpack.c.bf16 %v989_v2, %v985_v63  ;;  %v1185_v63 = vld [vmem:[#allocation11 + $0x58] sm:$0xff]  ;;  %v1203_v2 = vld [vmem:[#allocation11 + $0xe8] sm:$0xff] }
 0x358   :  { %v1897_v3 = vpack.c.bf16 %v1185_v63, %v1184_v62 }
 0x359   :  { %1774 = vmatpush1.bf16.msra.mxu1 %v1773_v7  ;;  %v984_v7 = vld [vmem:[#allocation10 + $0x3d0] sm:$0xff]  ;;  %1872 = vmatprep.subr.bf16.mxu0 %v1871_v5  ;;  %v1186_v5 = vld [vmem:[#allocation11 + $0x60] sm:$0xff] }
 0x35a   :  { %1776 = vmatprep.subr.bf16.mxu1 %v1775_v8  ;;  %v988_v8 = vld [vmem:[#allocation10 + $0x3f0] sm:$0xff] }
 0x35b   :  { %v1873_v9 = vpack.c.bf16 %v988_v8, %v984_v7  ;;  %v1204_v8 = vld [vmem:[#allocation11 + $0xf0] sm:$0xff] }
 0x35d   :  { %1778 = vmatpush1.bf16.msra.mxu1 %v1777_v14  ;;  %1874 = vmatpush1.bf16.msra.mxu0 %v1873_v9  ;;  %v769_v14 = vld [vmem:[%s2454_s8] sm:$0x3]  ;;  %v1205_v9 = vld [vmem:[#allocation11 + $0xf8] sm:$0xff] }
 0x35e   :  { %1780 = vmatprep.subr.bf16.mxu1 %v1779_v15  ;;  %v774_v15 = vrot.slane %v769_v14, %v2335_v21  ;;  %v778_v16 = vrot.slane %v769_v14, %v2343_v23  ;;  %v1903_v10 = vpack.c.bf16 %v1205_v9, %v1204_v8  ;;  %v1217_v8 = vld [vmem:[#allocation11 + $0x158] sm:$0xff]  ;;  %v1234_v9 = vld [vmem:[#allocation11 + $0x1e0] sm:$0xff] }
 0x361   :  { %1782 = vmatpush1.bf16.msra.mxu1 %v1781_v25  ;;  %v1174_v25 = vld [vmem:[#allocation11] sm:$0xff] }
 0x362   :  { %1784 = vmatprep.subr.bf16.mxu1 %v1783_v26  ;;  %v1175_v26 = vld [vmem:[#allocation11 + $0x8] sm:$0xff] }
 0x365   :  { %1786 = vmatpush1.bf16.msra.mxu1 %v1785_v32 }
 0x366   :  { %1788 = vmatprep.subr.bf16.mxu1 %v1787_v34  ;;  %v1877_v34 = vpack.c.bf16 %v1175_v26, %v1174_v25 }
 0x369   :  { %1790 = vmatpush1.bf16.msra.mxu1 %v1789_v38  ;;  %v1176_v38 = vld [vmem:[#allocation11 + $0x10] sm:$0xff] }
 0x36a   :  { %1792 = vmatprep.subr.bf16.mxu1 %v1791_v39  ;;  %v1177_v39 = vld [vmem:[#allocation11 + $0x18] sm:$0xff] }
 0x36d   :  { %1794 = vmatpush1.bf16.msra.mxu1 %v1793_v33  ;;  %v1881_v33 = vpack.c.bf16 %v1177_v39, %v1176_v38 }
 0x36e   :  { %1796 = vmatprep.subr.bf16.mxu1 %v1795_v48 }
 0x371   :  { %1798 = vmatpush1.bf16.msra.mxu1 %v1797_v46  ;;  %v1197_v46 = vld [vmem:[#allocation11 + $0xb8] sm:$0xff] }
 0x372   :  { %1800 = vmatprep.subr.bf16.mxu1 %v1799_v47  ;;  %v1885_v47 = vpack.c.bf16 %v1179_v44, %v1178_v43  ;;  %v1887_v49 = vpack.c.bf16 %v1197_v46, %v1196_v45  ;;  %v1227_v45 = vld [vmem:[#allocation11 + $0x1a8] sm:$0xff] }
 0x375   :  { %1802 = vmatpush1.bf16.msra.mxu1 %v1801_v53  ;;  %v1199_v53 = vld [vmem:[#allocation11 + $0xc8] sm:$0xff] }
 0x376   :  { %1804 = vmatprep.subr.bf16.mxu1 %v1803_v54  ;;  %v1889_v54 = vpack.c.bf16 %v1181_v51, %v1180_v50  ;;  %v1891_v55 = vpack.c.bf16 %v1199_v53, %v1198_v0  ;;  %v1210_v51 = vld [vmem:[#allocation11 + $0x120] sm:$0xff]  ;;  %v1211_v0 = vld [vmem:[#allocation11 + $0x128] sm:$0xff] }
 0x377   :  { %v1917_v56 = vpack.c.bf16 %v1211_v0, %v1210_v51 }
 0x379   :  { %1806 = vmatpush1.bf16.msra.mxu1 %v1805_v58  ;;  %v1200_v58 = vld [vmem:[#allocation11 + $0xd0] sm:$0xff] }
 0x37a   :  { %1808 = vmatprep.subr.bf16.mxu1 %v1807_v1  ;;  %v1895_v61 = vpack.c.bf16 %v1201_v59, %v1200_v58  ;;  %v1202_v1 = vld [vmem:[#allocation11 + $0xe0] sm:$0xff]  ;;  %v1212_v58 = vld [vmem:[#allocation11 + $0x130] sm:$0xff]  ;;  %v1213_v59 = vld [vmem:[#allocation11 + $0x138] sm:$0xff] }
 0x37b   :  { %v1899_v4 = vpack.c.bf16 %v1203_v2, %v1202_v1  ;;  %v1921_v62 = vpack.c.bf16 %v1213_v59, %v1212_v58  ;;  %v1214_v1 = vld [vmem:[#allocation11 + $0x140] sm:$0xff]  ;;  %v1215_v2 = vld [vmem:[#allocation11 + $0x148] sm:$0xff] }
 0x37d   :  { %1810 = vmatpush1.bf16.msra.mxu1 %v1809_v6  ;;  %v1187_v6 = vld [vmem:[#allocation11 + $0x68] sm:$0xff] }
 0x37e   :  { %1876 = vmatprep.subr.bf16.mxu1 %v1875_v13  ;;  %v1901_v7 = vpack.c.bf16 %v1187_v6, %v1186_v5  ;;  %v1189_v13 = vld [vmem:[#allocation11 + $0x78] sm:$0xff]  ;;  %v1925_v5 = vpack.c.bf16 %v1215_v2, %v1214_v1 }
 0x37f   :  { %v1905_v14 = vpack.c.bf16 %v1189_v13, %v1188_v11 }
 0x413   :  { %v847_v17 = vpop.f32.mrb[8].mxu1 }
 0x414   :  { %v848_v18 = vadd.f32 %v847_v17, %v774_v15  ;;  %v849_v19 = vpop.f32.mrb[9].mxu1 }
 0x415   :  { %v850_v27 = vadd.f32 %v849_v19, %v778_v16 }
 0x416   :  { %v858_v35 = vmax.f32 %v848_v18, 0.0  ;;  %v2388_v18 = vld [vmem:[%s2456_s10] sm:$0xf]  ;;  %s2163_s10 = smov [#allocation14]  }
 0x417   :  { %v859_v31 = vmax.f32 %v850_v27, 0.0  ;;  %v853_v32 = vpop.f32.mrb[10].mxu1  ;;  %v995_v19 = vrot.slane %v2388_v18, %v2335_v21  ;;  %v999_v25 = vrot.slane %v2388_v18, %v2343_v23  ;;  %s1416_s29 = sshll.u32 %s2163_s10, 4  ;;  %s1417_s29 = int_to_ptr.vmem [resolvable:$true] %s1416_s29 }
 0x418   :  { %v854_v36 = vadd.f32 %v853_v32, %v774_v15  ;;  %v855_v22 = vpop.f32.mrb[11].mxu1  ;;  %v1222_v15 = vld [vmem:[#allocation11 + $0x180] sm:$0xff]  ;;  %s2094_s16 = scalar_lea.vmem %s1417_s29, 256  ;;  %p2099_p7 = scmp.lt.s32.totalorder %s1417_s29, %s1417_s29 }
 0x419   :  { %v856_v40 = vadd.f32 %v855_v22, %v778_v16  ;;  %1076 = vmatprep.mubr.f32.mxu1 %v859_v31  ;;  %1153 = vmatprep.mubr.f32.mxu0 %v859_v31  ;;  %v1223_v16 = vld [vmem:[#allocation11 + $0x188] sm:$0xff]  ;;  %v1206_v32 = vld [vmem:[#allocation11 + $0x100] sm:$0xff]  ;;  %v1224_v22 = vld [vmem:[#allocation11 + $0x190] sm:$0xff]  ;;  %p2095_p6 = scmp.ne.s32.totalorder %s1417_s29, %s2094_s16  ;;  %p2100_p8 = scmp.lt.s32.totalorder %s2094_s16, %s2094_s16 }
 0x41a   :  { %1077 = vmatmul.mubr.f32.vlgmr.msra.gmra.mrb[12].mxu1 %v858_v35  ;;  %1154 = vmatmul.mubr.f32.vlgmr.msra.gmra.mrb[8].mxu0 %v858_v35  ;;  %v860_v48 = vmax.f32 %v854_v36, 0.0  ;;  %v1907_v17 = vpack.c.bf16 %v1223_v16, %v1222_v15  ;;  %v2399_v36 = vrot.slane %v2388_v18, %v150_v24  ;;  %v1226_v24 = vld [vmem:[#allocation11 + $0x1a0] sm:$0xff]  ;;  %v1219_v15 = vld [vmem:[#allocation11 + $0x168] sm:$0xff]  ;;  %v1236_v16 = vld [vmem:[#allocation11 + $0x1f0] sm:$0xff] }
 0x41b   :  { %v861_v52 = vmax.f32 %v856_v40, 0.0  ;;  %1878 = vmatpush3.bf16.msra.mxu1 %v1877_v34  ;;  %v1207_v34 = vld [vmem:[#allocation11 + $0x108] sm:$0xff]  ;;  %v1915_v50 = vpack.c.bf16 %v1227_v45, %v1226_v24  ;;  %p2101_p9 = por %p2100_p8, %p2099_p7 }
 0x41c   :  { %1880 = vmatprep.subr.bf16.mxu1 %v1879_v37  ;;  %v1225_v37 = vld [vmem:[#allocation11 + $0x198] sm:$0xff]  ;;  %v1909_v23 = vpack.c.bf16 %v1207_v34, %v1206_v32 }
 0x41d   :  { %1082 = vmatprep.mubr.f32.mxu1 %v861_v52  ;;  %1159 = vmatprep.mubr.f32.mxu0 %v861_v52  ;;  %p2102_p10 = pnand %p2101_p9, %p2095_p6 }
 0x41e   :  { %1083 = vmatmul.mubr.f32.gmra.mrb[14].mxu1 %v860_v48  ;;  %1160 = vmatmul.mubr.f32.gmra.mrb[10].mxu0 %v860_v48  ;;  %v1208_v48 = vld [vmem:[#allocation11 + $0x110] sm:$0xff] }
 0x41f   :  { %1882 = vmatpush3.bf16.msra.mxu1 %v1881_v33  ;;  %v1911_v33 = vpack.c.bf16 %v1225_v37, %v1224_v22 }
 0x420   :  { %1884 = vmatprep.subr.bf16.mxu1 %v1883_v42  ;;  %v1209_v42 = vld [vmem:[#allocation11 + $0x118] sm:$0xff] }
 0x423   :  { %1886 = vmatpush3.bf16.msra.mxu1 %v1885_v47  ;;  %v1913_v47 = vpack.c.bf16 %v1209_v42, %v1208_v48 }
 0x424   :  { %1888 = vmatprep.subr.bf16.mxu1 %v1887_v49 }
 0x427   :  { %1890 = vmatpush3.bf16.msra.mxu1 %v1889_v54  ;;  %v1228_v54 = vld [vmem:[#allocation11 + $0x1b0] sm:$0xff] }
 0x428   :  { %1892 = vmatprep.subr.bf16.mxu1 %v1891_v55  ;;  %v1229_v55 = vld [vmem:[#allocation11 + $0x1b8] sm:$0xff] }
 0x429   :  { %v1919_v57 = vpack.c.bf16 %v1229_v55, %v1228_v54 }
 0x42b   :  { %1894 = vmatpush3.bf16.msra.mxu1 %v1893_v60  ;;  %v1230_v60 = vld [vmem:[#allocation11 + $0x1c0] sm:$0xff] }
 0x42c   :  { %1896 = vmatprep.subr.bf16.mxu1 %v1895_v61  ;;  %v1231_v61 = vld [vmem:[#allocation11 + $0x1c8] sm:$0xff] }
 0x42d   :  { %v1923_v63 = vpack.c.bf16 %v1231_v61, %v1230_v60 }
 0x42f   :  { %1898 = vmatpush3.bf16.msra.mxu1 %v1897_v3  ;;  %v1232_v3 = vld [vmem:[#allocation11 + $0x1d0] sm:$0xff] }
 0x430   :  { %1900 = vmatprep.subr.bf16.mxu1 %v1899_v4  ;;  %v1233_v4 = vld [vmem:[#allocation11 + $0x1d8] sm:$0xff] }
 0x431   :  { %v1927_v6 = vpack.c.bf16 %v1233_v4, %v1232_v3 }
 0x433   :  { %1902 = vmatpush3.bf16.msra.mxu1 %v1901_v7  ;;  %v1216_v7 = vld [vmem:[#allocation11 + $0x150] sm:$0xff] }
 0x434   :  { %1904 = vmatprep.subr.bf16.mxu1 %v1903_v10  ;;  %v1235_v10 = vld [vmem:[#allocation11 + $0x1e8] sm:$0xff]  ;;  %v1929_v11 = vpack.c.bf16 %v1217_v8, %v1216_v7 }
 0x435   :  { %v1931_v13 = vpack.c.bf16 %v1235_v10, %v1234_v9 }
 0x437   :  { %1906 = vmatpush3.bf16.msra.mxu1 %v1905_v14  ;;  %v1218_v14 = vld [vmem:[#allocation11 + $0x160] sm:$0xff] }
 0x438   :  { %1908 = vmatprep.subr.bf16.mxu1 %v1907_v17  ;;  %v1237_v17 = vld [vmem:[#allocation11 + $0x1f8] sm:$0xff] }
 0x4ed   :  { %v1078_v26 = vpop.f32.mrb[12].mxu1  ;;  %v2394_v27 = vpop.f32.mrb[8].mxu0 }
 0x4ee   :  { %v1079_v29 = vadd.f32 %v1078_v26, %v995_v19  ;;  %v1080_v30 = vpop.f32.mrb[13].mxu1  ;;  %v1157_v31 = vpop.f32.mrb[9].mxu0  ;;  %v1935_v26 = vpack.c.bf16 %v1237_v17, %v1236_v16 }
 0x4ef   :  { %v1081_v35 = vadd.f32 %v1080_v30, %v999_v25  ;;  %v1158_v43 = vadd.f32 %v1157_v31, %v2399_v36  ;;  %v1221_v30 = vld [vmem:[#allocation11 + $0x178] sm:$0xff] }
 0x4f0   :  { %v1166_v40 = vmax.f32 %v1079_v29, 0.0  ;;  %v1220_v29 = vld [vmem:[#allocation11 + $0x170] sm:$0xff] }
 0x4f1   :  { %v1167_v21 = vmax.f32 %v1081_v35, 0.0  ;;  %v1084_v38 = vpop.f32.mrb[14].mxu1  ;;  %v2401_v39 = vpop.f32.mrb[10].mxu0  ;;  %v1169_v53 = vmax.f32 %v1158_v43, 0.0  ;;  %v1937_v31 = vpack.c.bf16 %v1221_v30, %v1220_v29 }
 0x4f2   :  { %v1085_v41 = vadd.f32 %v1084_v38, %v995_v19  ;;  %v1086_v28 = vpop.f32.mrb[15].mxu1  ;;  %v2403_v52 = vpop.f32.mrb[11].mxu0  ;;  %v1933_v19 = vpack.c.bf16 %v1219_v15, %v1218_v14 }
 0x4f3   :  { %v1087_v44 = vadd.f32 %v1086_v28, %v999_v25  ;;  %1309 = vmatprep.mubr.f32.mxu1 %v1167_v21  ;;  %v1003_v25 = vrot.slane %v2388_v18, %v146_v12  ;;  %v1164_v34 = vadd.f32 %v2403_v52, %v2399_v36 }
 0x4f4   :  { %1310 = vmatmul.mubr.f32.vlgmr.msra.gmra.mrb[16].mxu1 %v1166_v40  ;;  %v1170_v49 = vmax.f32 %v1085_v41, 0.0 }
 0x4f5   :  { %v1171_v46 = vmax.f32 %v1087_v44, 0.0  ;;  %1910 = vmatpush3.bf16.msra.mxu1 %v1909_v23  ;;  %v1156_v32 = vadd.f32 %v2394_v27, %v1003_v25  ;;  %v1162_v22 = vadd.f32 %v2401_v39, %v1003_v25  ;;  %v1173_v37 = vmax.f32 %v1164_v34, 0.0 }
 0x4f6   :  { %1912 = vmatprep.subr.bf16.mxu1 %v1911_v33 }
 0x4f7   :  { %1314 = vmatprep.mubr.f32.mxu1 %v1171_v46  ;;  %v1168_v35 = vmax.f32 %v1156_v32, 0.0  ;;  %v1172_v20 = vmax.f32 %v1162_v22, 0.0 }
 0x4f8   :  { %1315 = vmatmul.mubr.f32.gmra.mrb[18].mxu1 %v1170_v49 }
 0x4f9   :  { %1914 = vmatpush3.bf16.msra.mxu1 %v1913_v47  ;;  %1384 = vmatprep.mubr.f32.mxu1 %v1169_v53 }
 0x4fa   :  { %1916 = vmatprep.subr.bf16.mxu1 %v1915_v50 }
 0x4fd   :  { %1918 = vmatpush3.bf16.msra.mxu1 %v1917_v56 }
 0x4fe   :  { %1920 = vmatprep.subr.bf16.mxu1 %v1919_v57 }
 0x501   :  { %1922 = vmatpush3.bf16.msra.mxu1 %v1921_v62 }
 0x502   :  { %1924 = vmatprep.subr.bf16.mxu1 %v1923_v63 }
 0x505   :  { %1926 = vmatpush3.bf16.msra.mxu1 %v1925_v5 }
 0x506   :  { %1928 = vmatprep.subr.bf16.mxu1 %v1927_v6 }
 0x509   :  { %1930 = vmatpush3.bf16.msra.mxu1 %v1929_v11 }
 0x50a   :  { %1932 = vmatprep.subr.bf16.mxu1 %v1931_v13 }
 0x50d   :  { %1934 = vmatpush3.bf16.msra.mxu1 %v1933_v19 }
 0x50e   :  { %1936 = vmatprep.subr.bf16.mxu1 %v1935_v26 }
 0x511   :  { %1938 = vmatpush3.bf16.msra.mxu1 %v1937_v31 }
 0x514   :  { %1385 = vmatmul.mubr.f32.vlgmr.msra.gmra.mrb[20].mxu1 %v1168_v35 }
 0x515   :  { %1389 = vmatprep.mubr.f32.mxu1 %v1173_v37 }
 0x518   :  { %1390 = vmatmul.mubr.f32.gmra.mrb[22].mxu1 %v1172_v20 }
 0x519   :  { %2105 = shalt.err (!%p2102_p10)
}
 0x51a   :  { %s2106_s20 = scalar_lea.hbm %s2460_s14, 256 }
 0x51b   :  { %p2107_p11 = scmp.ne.s32.totalorder %s2460_s14, %s2106_s20  ;;  %p2110_p12 = scmp.lt.u32.totalorder %s2106_s20, %s2460_s14 }
 0x51d   :  { %p2112_p13 = pnand %p2110_p12, %p2107_p11 }
 0x51f   :  { %2115 = shalt.err (!%p2112_p13)
}
 0x520   :  { %1422 = dma.vmem_to_hbm [thread:$0]  %s1417_s29, 256, %s2460_s14, [#allocation15], %s2156_s1, %s2156_s1, %s2157_s15  }
 0x521   :  { %v1440_v39 = vld [vmem:[%s2458_s12] ss:$0 sm:$0xff]  ;;  %s2164_s11 = smov [#allocation13]  }
 0x522   :  { %s1404_s30 = sshll.u32 %s2164_s11, 4  ;;  %s1405_s30 = int_to_ptr.vmem [resolvable:$true] %s1404_s30 }
 0x523   :  { %s2116_s14 = scalar_lea.vmem %s1405_s30, 256  ;;  %p2121_p1 = scmp.lt.s32.totalorder %s1405_s30, %s1405_s30 }
 0x524   :  { %p2117_p0 = scmp.ne.s32.totalorder %s1405_s30, %s2116_s14  ;;  %p2122_p2 = scmp.lt.s32.totalorder %s2116_s14, %s2116_s14 }
 0x526   :  { %p2123_p3 = por %p2122_p2, %p2121_p1 }
 0x528   :  { %p2124_p4 = pnand %p2123_p3, %p2117_p0 }
 0x5c7   :  { %v1511_v12 = vpop.f32.mrb[16].mxu1 }
 0x5c8   :  { %v1512_v18 = vpop.f32.mrb[17].mxu1 }
 0x5c9   :  { %v1513_v27 = vadd.f32 %v1512_v18, %v1511_v12 }
 0x5cb   :  { %v1514_v36 = vpop.f32.mrb[18].mxu1  ;;  %v1312_v41 = vadd.f32 %v1513_v27, %v1440_v39 }
 0x5cc   :  { %v1515_v21 = vpop.f32.mrb[19].mxu1 }
 0x5cd   :  { %v1516_v38 = vadd.f32 %v1515_v21, %v1514_v36 }
 0x5cf   :  { %v1317_v42 = vadd.f32 %v1516_v38, %v1440_v39 }
 0x5e7   :  { %v1549_v23 = vpop.f32.mrb[20].mxu1 }
 0x5e8   :  { %v1550_v40 = vpop.f32.mrb[21].mxu1 }
 0x5e9   :  { %v1551_v28 = vadd.f32 %v1550_v40, %v1549_v23 }
 0x5eb   :  { %v1387_v52 = vadd.f32 %v1551_v28, %v1312_v41  ;;  %v1552_v33 = vpop.f32.mrb[22].mxu1 }
 0x5ec   :  { %v1553_v48 = vpop.f32.mrb[23].mxu1 }
 0x5ed   :  { %1397 = vst [vmem:[#allocation13] sm:$0xff] %v1387_v52  ;;  %v1554_v43 = vadd.f32 %v1553_v48, %v1552_v33 }
 0x5ef   :  { %v1392_v44 = vadd.f32 %v1554_v43, %v1317_v42 }
 0x5f1   :  { %1398 = vst [vmem:[#allocation13 + $0x8] sm:$0xff] %v1392_v44 }
 0x5f2   :  { %2127 = shalt.err (!%p2124_p4)
}
 0x5f3   :  { %s2128_s5 = scalar_lea.hbm %s2459_s13, 256 }
 0x5f4   :  { %p2129_p5 = scmp.ne.s32.totalorder %s2459_s13, %s2128_s5  ;;  %p2132_p6 = scmp.lt.u32.totalorder %s2128_s5, %s2459_s13 }
 0x5f6   :  { %p2134_p7 = pnand %p2132_p6, %p2129_p5 }
 0x5f8   :  { %2137 = shalt.err (!%p2134_p7)
}
 0x5f9   :  { %1410 = dma.vmem_to_hbm [thread:$0]  %s1405_s30, 256, %s2459_s13, [#allocation4], %s2156_s1, %s2156_s1, %s2157_s15  }
 0x5fa   :  { %2146 = dma.done.wait [#allocation4], 256  }
 0x5fb   :  { %2147 = vsyncadd [#allocation4], 4294967040 }
 0x5fc   :  { %2148 = dma.done.wait [#allocation15], 256  }
 0x5fd   :  { %2149 = vsyncadd [#allocation15], 4294967040 }
 0x5fe   :  { %1429 = vsyncpa [#allocation3], 1 }
 0x5ff   :  { %1430 = vsyncpa [#allocation6], 1 }
 0x600   :  { %1431 = vsyncpa [#allocation9], 1 }
 0x601   :  { %1432 = vsyncpa [#allocation12], 1 }
 0x602   :  { %1433 = vsyncpa [#allocation4], 1 }
 0x603   :  { %1434 = vsyncpa [#allocation15], 1 }

// kernel: tpu_custom_call.1
= control target key start
LH: loop header
LB: loop body
LE: loop exit
PB: predicated region body
PF: predicated region fallthrough
CT: control target
= control target key end

     0   :  { %20 = vsyncpa [#allocation3], 0  ;;  %s2446_s0 = inlined_call_operand.vmem [shape: f32[16,8], index: 0, kind: input, shape index: {}]   ;;  %s2447_s1 = inlined_call_operand.hbm [shape: f32[8,512], index: 1, kind: input, shape index: {}]   ;;  %s2448_s2 = inlined_call_operand.vmem [shape: f32[1,512], index: 2, kind: input, shape index: {}]   ;;  %s2449_s3 = inlined_call_operand.hbm [shape: f32[512,256], index: 3, kind: input, shape index: {}]   ;;  %s2450_s4 = inlined_call_operand.vmem [shape: f32[1,256], index: 4, kind: input, shape index: {}]   ;;  %s2451_s5 = inlined_call_operand.hbm [shape: f32[256,128], index: 5, kind: input, shape index: {}]   ;;  %s2452_s6 = inlined_call_operand.vmem [shape: f32[1,128], index: 6, kind: input, shape index: {}]   ;;  %s2453_s7 = inlined_call_operand.hbm [shape: f32[128,256], index: 7, kind: input, shape index: {}]   ;;  %s2454_s8 = inlined_call_operand.vmem [shape: f32[1,256], index: 8, kind: input, shape index: {}]   ;;  %s2455_s9 = inlined_call_operand.hbm [shape: f32[256,512], index: 9, kind: input, shape index: {}]   ;;  %s2456_s10 = inlined_call_operand.vmem [shape: f32[1,512], index: 10, kind: input, shape index: {}]   ;;  %s2457_s11 = inlined_call_operand.hbm [shape: f32[512,128], index: 11, kind: input, shape index: {}]   ;;  %s2458_s12 = inlined_call_operand.vmem [shape: f32[1,128], index: 12, kind: input, shape index: {}]   ;;  %s2459_s13 = inlined_call_operand.hbm [shape: f32[16,128], index: 13, kind: output, shape index: {0}]   ;;  %s2460_s14 = inlined_call_operand.hbm [shape: f32[16,128], index: 14, kind: output, shape index: {1}]  }
   0x1   :  { %21 = vsyncpa [#allocation6], 0 }
   0x2   :  { %22 = vsyncpa [#allocation9], 0 }
   0x3   :  { %23 = vsyncpa [#allocation12], 0 }
   0x4   :  { %24 = vsyncpa [#allocation4], 0 }
   0x5   :  { %25 = vsyncpa [#allocation15], 0  ;;  %s2150_s29 = smov [#allocation5]   ;;  %s1962_s17 = scalar_lea.hbm %s2449_s3, 16384 }
   0x6   :  { %s45_s30 = sshll.u32 %s2150_s29, 4  ;;  %p1963_p0 = scmp.ne.s32.totalorder %s2449_s3, %s1962_s17  ;;  %s46_s30 = int_to_ptr.vmem [resolvable:$true] %s45_s30 }
   0x7   :  { %p1966_p1 = scmp.lt.u32.totalorder %s1962_s17, %s2449_s3 }
   0x9   :  { %p1968_p2 = pnand %p1966_p1, %p1963_p0 }
   0xb   :  { %1971 = shalt.err (!%p1968_p2)
}
   0xc   :  { %s1972_s22 = scalar_lea.vmem %s46_s30, 16384  ;;  %p1977_p4 = scmp.lt.s32.totalorder %s46_s30, %s46_s30 }
   0xd   :  { %p1973_p3 = scmp.ne.s32.totalorder %s46_s30, %s1972_s22  ;;  %p1978_p5 = scmp.lt.s32.totalorder %s1972_s22, %s1972_s22 }
   0xf   :  { %p1979_p6 = por %p1978_p5, %p1977_p4 }
  0x11   :  { %p1980_p7 = pnand %p1979_p6, %p1973_p3 }
  0x13   :  { %1983 = shalt.err (!%p1980_p7)
}
  0x14   :  { %s2151_s23 = smov 256   ;;  %s2152_s24 = smov 16  }
  0x15   :  { %51 = dma.hbm_to_vmem [thread:$0]  %s2449_s3, 16384, %s46_s30, [#allocation6], %s2151_s23, %s2151_s23, %s2152_s24  }
  0x16   :  { %s2153_s27 = smov [#allocation8]   ;;  %s2154_s29 = smov [#allocation2]  }
  0x17   :  { %s73_s28 = sshll.u32 %s2153_s27, 4  ;;  %s34_s15 = sshll.u32 %s2154_s29, 4  ;;  %s74_s28 = int_to_ptr.vmem [resolvable:$true] %s73_s28  ;;  %s35_s15 = int_to_ptr.vmem [resolvable:$true] %s34_s15 }
  0x18   :  { %s1984_s18 = scalar_lea.hbm %s2453_s7, 4096 }
  0x19   :  { %p1985_p8 = scmp.ne.s32.totalorder %s2453_s7, %s1984_s18  ;;  %p1988_p9 = scmp.lt.u32.totalorder %s1984_s18, %s2453_s7 }
  0x1b   :  { %p1990_p10 = pnand %p1988_p9, %p1985_p8 }
  0x1d   :  { %1993 = shalt.err (!%p1990_p10)
}
  0x1e   :  { %s1994_s3 = scalar_lea.vmem %s74_s28, 4096  ;;  %p1999_p12 = scmp.lt.s32.totalorder %s74_s28, %s74_s28 }
  0x1f   :  { %p1995_p11 = scmp.ne.s32.totalorder %s74_s28, %s1994_s3  ;;  %p2000_p13 = scmp.lt.s32.totalorder %s1994_s3, %s1994_s3 }
  0x21   :  { %p2001_p0 = por %p2000_p13, %p1999_p12 }
  0x23   :  { %p2002_p1 = pnand %p2001_p0, %p1995_p11 }
  0x25   :  { %2005 = shalt.err (!%p2002_p1)
}
  0x26   :  { %79 = dma.hbm_to_vmem [thread:$0]  %s2453_s7, 4096, %s74_s28, [#allocation9], %s2151_s23, %s2151_s23, %s2152_s24  }
  0x27   :  { %s2006_s29 = scalar_lea.hbm %s2447_s1, 512 }
  0x28   :  { %p2007_p2 = scmp.ne.s32.totalorder %s2447_s1, %s2006_s29  ;;  %p2010_p3 = scmp.lt.u32.totalorder %s2006_s29, %s2447_s1 }
  0x2a   :  { %p2012_p4 = pnand %p2010_p3, %p2007_p2 }
  0x2c   :  { %2015 = shalt.err (!%p2012_p4)
}
  0x2d   :  { %s2016_s20 = scalar_lea.vmem %s35_s15, 512  ;;  %p2021_p6 = scmp.lt.s32.totalorder %s35_s15, %s35_s15 }
  0x2e   :  { %p2017_p5 = scmp.ne.s32.totalorder %s35_s15, %s2016_s20  ;;  %p2022_p7 = scmp.lt.s32.totalorder %s2016_s20, %s2016_s20 }
  0x30   :  { %p2023_p8 = por %p2022_p7, %p2021_p6 }
  0x32   :  { %p2024_p9 = pnand %p2023_p8, %p2017_p5 }
  0x34   :  { %2027 = shalt.err (!%p2024_p9)
}
  0x35   :  { %37 = dma.hbm_to_vmem [thread:$0]  %s2447_s1, 512, %s35_s15, [#allocation3]  }
  0x36   :  { %s2155_s24 = smov [#allocation7]   ;;  %s2028_s3 = scalar_lea.hbm %s2451_s5, 4096 }
  0x37   :  { %s59_s28 = sshll.u32 %s2155_s24, 4  ;;  %p2029_p10 = scmp.ne.s32.totalorder %s2451_s5, %s2028_s3  ;;  %s60_s28 = int_to_ptr.vmem [resolvable:$true] %s59_s28 }
  0x38   :  { %p2032_p11 = scmp.lt.u32.totalorder %s2028_s3, %s2451_s5 }
  0x3a   :  { %p2034_p12 = pnand %p2032_p11, %p2029_p10 }
  0x3c   :  { %2037 = shalt.err (!%p2034_p12)
}
  0x3d   :  { %s2038_s29 = scalar_lea.vmem %s60_s28, 4096  ;;  %p2043_p0 = scmp.lt.s32.totalorder %s60_s28, %s60_s28 }
  0x3e   :  { %p2039_p13 = scmp.ne.s32.totalorder %s60_s28, %s2038_s29  ;;  %p2044_p1 = scmp.lt.s32.totalorder %s2038_s29, %s2038_s29 }
  0x40   :  { %p2045_p2 = por %p2044_p1, %p2043_p0 }
  0x42   :  { %p2046_p3 = pnand %p2045_p2, %p2039_p13 }
  0x44   :  { %2049 = shalt.err (!%p2046_p3)
}
  0x45   :  { %s2156_s1 = smov 128   ;;  %s2157_s15 = smov 8  }
  0x46   :  { %65 = dma.hbm_to_vmem [thread:$0]  %s2451_s5, 4096, %s60_s28, [#allocation6], %s2156_s1, %s2156_s1, %s2157_s15  }
  0x47   :  { %s2158_s18 = smov [#allocation10]   ;;  %s2050_s23 = scalar_lea.hbm %s2455_s9, 16384 }
  0x48   :  { %s87_s19 = sshll.u32 %s2158_s18, 4  ;;  %p2051_p4 = scmp.ne.s32.totalorder %s2455_s9, %s2050_s23  ;;  %s88_s19 = int_to_ptr.vmem [resolvable:$true] %s87_s19 }
  0x49   :  { %p2054_p5 = scmp.lt.u32.totalorder %s2050_s23, %s2455_s9 }
  0x4b   :  { %p2056_p6 = pnand %p2054_p5, %p2051_p4 }
  0x4d   :  { %2059 = shalt.err (!%p2056_p6)
}
  0x4e   :  { %s2060_s30 = scalar_lea.vmem %s88_s19, 16384  ;;  %p2065_p8 = scmp.lt.s32.totalorder %s88_s19, %s88_s19 }
  0x4f   :  { %p2061_p7 = scmp.ne.s32.totalorder %s88_s19, %s2060_s30  ;;  %p2066_p9 = scmp.lt.s32.totalorder %s2060_s30, %s2060_s30 }
  0x51   :  { %p2067_p10 = por %p2066_p9, %p2065_p8 }
  0x53   :  { %p2068_p11 = pnand %p2067_p10, %p2061_p7 }
  0x55   :  { %2071 = shalt.err (!%p2068_p11)
}
  0x56   :  { %s2159_s5 = smov 512   ;;  %s2160_s28 = smov 32  }
  0x57   :  { %93 = dma.hbm_to_vmem [thread:$0]  %s2455_s9, 16384, %s88_s19, [#allocation9], %s2159_s5, %s2159_s5, %s2160_s28  }
  0x58   :  { %s2161_s27 = smov [#allocation11]   ;;  %s2072_s18 = scalar_lea.hbm %s2457_s11, 8192 }
  0x59   :  { %s101_s29 = sshll.u32 %s2161_s27, 4  ;;  %p2073_p12 = scmp.ne.s32.totalorder %s2457_s11, %s2072_s18  ;;  %s102_s29 = int_to_ptr.vmem [resolvable:$true] %s101_s29 }
  0x5a   :  { %p2076_p13 = scmp.lt.u32.totalorder %s2072_s18, %s2457_s11 }
  0x5c   :  { %p2078_p0 = pnand %p2076_p13, %p2073_p12 }
  0x5e   :  { %2081 = shalt.err (!%p2078_p0)
}
  0x5f   :  { %s2082_s21 = scalar_lea.vmem %s102_s29, 8192  ;;  %p2087_p2 = scmp.lt.s32.totalorder %s102_s29, %s102_s29 }
  0x60   :  { %p2083_p1 = scmp.ne.s32.totalorder %s102_s29, %s2082_s21  ;;  %p2088_p3 = scmp.lt.s32.totalorder %s2082_s21, %s2082_s21 }
  0x62   :  { %p2089_p4 = por %p2088_p3, %p2087_p2 }
  0x64   :  { %p2090_p5 = pnand %p2089_p4, %p2083_p1 }
  0x66   :  { %2093 = shalt.err (!%p2090_p5)
}
  0x67   :  { %107 = dma.hbm_to_vmem [thread:$0]  %s2457_s11, 8192, %s102_s29, [#allocation12], %s2156_s1, %s2156_s1, %s2157_s15  }
  0x68   :  { %2138 = dma.done.wait [#allocation3], 512  }
  0x69   :  { %2139 = vsyncadd [#allocation3], 4294966784 }
  0x6a   :  { %2140 = dma.done.wait [#allocation6], 20480  }
  0x6b   :  { %2141 = vsyncadd [#allocation6], 4294946816 }
  0x6c   :  { %2142 = dma.done.wait [#allocation9], 20480  }
  0x6d   :  { %2143 = vsyncadd [#allocation9], 4294946816 }
  0x6e   :  { %2144 = dma.done.wait [#allocation12], 8192  }
  0x6f   :  { %2145 = vsyncadd [#allocation12], 4294959104  ;;  %v2162_v0 = vmov 0.0   ;;  %v131_v1 = vld [vmem:[#allocation2 + $0x8] sm:$0xff]  ;;  %v130_v2 = vld [vmem:[#allocation2] sm:$0xff]  ;;  %vm156_vm0 = vcmask 64512  }
  0x70   :  { %227 = vmatprep.mubr.f32.mxu0 %v2162_v0  ;;  %304 = vmatprep.mubr.f32.mxu1 %v2162_v0  ;;  %v128_v3 = vld [vmem:[%s2446_s0] sm:$0xff]  ;;  %v133_v4 = vld [vmem:[#allocation2 + $0x18] sm:$0xff]  ;;  %v132_v5 = vld [vmem:[#allocation2 + $0x10] sm:$0xff] }
  0x71   :  { %163 = vmatprep.subr.mxu0 %v131_v1  ;;  %v129_v6 = vld [vmem:[%s2446_s0 + $0x8] sm:$0xff]  ;;  %240 = vmatprep.subr.mxu1 %v133_v4  ;;  %v328_v8 = vld [vmem:[#allocation5 + $0x18] sm:$0xff]  ;;  %v325_v9 = vld [vmem:[#allocation5] sm:$0xff] }
  0x72   :  { %164 = vmatpush1.msra.mxu0 %v130_v2  ;;  %v326_v7 = vld [vmem:[#allocation5 + $0x8] sm:$0xff]  ;;  %241 = vmatpush1.msra.mxu1 %v132_v5  ;;  %v327_v11 = vld [vmem:[#allocation5 + $0x10] sm:$0xff]  ;;  %v332_v13 = vld [vmem:[#allocation5 + $0x38] sm:$0xff] }
  0x73   :  { %1435 = vmatmul.mubr.msk.f32.vlgmr.msra.gmra.mrb[0].mxu0 %vm156_vm0, %v128_v3  ;;  %v1555_v10 = vpack.c.bf16 %v328_v8, %v326_v7  ;;  %v330_v12 = vld [vmem:[#allocation5 + $0x28] sm:$0xff]  ;;  %1437 = vmatmul.mubr.msk.f32.vlgmr.msra.gmra.mrb[0].mxu1 %vm156_vm0, %v128_v3  ;;  %v1557_v14 = vpack.c.bf16 %v327_v11, %v325_v9  ;;  %v329_v16 = vld [vmem:[#allocation5 + $0x20] sm:$0xff]  ;;  %v331_v17 = vld [vmem:[#allocation5 + $0x30] sm:$0xff] }
  0x74   :  { %233 = vmatprep.mubr.f32.mxu0 %v2162_v0  ;;  %v1559_v15 = vpack.c.bf16 %v332_v13, %v330_v12  ;;  %v334_v18 = vld [vmem:[#allocation5 + $0x48] sm:$0xff]  ;;  %310 = vmatprep.mubr.f32.mxu1 %v2162_v0  ;;  %v336_v19 = vld [vmem:[#allocation5 + $0x58] sm:$0xff]  ;;  %v1561_v20 = vpack.c.bf16 %v331_v17, %v329_v16  ;;  %v333_v22 = vld [vmem:[#allocation5 + $0x40] sm:$0xff] }
  0x75   :  { %1556 = vmatprep.subr.bf16.mxu0 %v1555_v10  ;;  %v1563_v21 = vpack.c.bf16 %v336_v19, %v334_v18  ;;  %v335_v23 = vld [vmem:[#allocation5 + $0x50] sm:$0xff]  ;;  %v338_v24 = vld [vmem:[#allocation5 + $0x68] sm:$0xff]  ;;  %v340_v25 = vld [vmem:[#allocation5 + $0x78] sm:$0xff] }
  0x76   :  { %1558 = vmatpush1.bf16.msra.mxu0 %v1557_v14  ;;  %v1565_v26 = vpack.c.bf16 %v335_v23, %v333_v22  ;;  %v1567_v27 = vpack.c.bf16 %v340_v25, %v338_v24  ;;  %v337_v28 = vld [vmem:[#allocation5 + $0x60] sm:$0xff]  ;;  %v339_v29 = vld [vmem:[#allocation5 + $0x70] sm:$0xff]  ;;  %v342_v30 = vld [vmem:[#allocation5 + $0x88] sm:$0xff] }
  0x77   :  { %1436 = vmatmul.mubr.msk.f32.gmra.mrb[2].mxu0 %vm156_vm0, %v129_v6  ;;  %1560 = vmatprep.subr.bf16.mxu0 %v1559_v15  ;;  %v344_v31 = vld [vmem:[#allocation5 + $0x98] sm:$0xff]  ;;  %v1569_v32 = vpack.c.bf16 %v339_v29, %v337_v28  ;;  %v341_v34 = vld [vmem:[#allocation5 + $0x80] sm:$0xff]  ;;  %v343_v35 = vld [vmem:[#allocation5 + $0x90] sm:$0xff] }
  0x78   :  { %1438 = vmatmul.mubr.msk.f32.gmra.mrb[2].mxu1 %vm156_vm0, %v129_v6  ;;  %v1571_v33 = vpack.c.bf16 %v344_v31, %v342_v30  ;;  %v346_v36 = vld [vmem:[#allocation5 + $0xa8] sm:$0xff]  ;;  %v348_v37 = vld [vmem:[#allocation5 + $0xb8] sm:$0xff]  ;;  %v1573_v38 = vpack.c.bf16 %v343_v35, %v341_v34  ;;  %v345_v40 = vld [vmem:[#allocation5 + $0xa0] sm:$0xff] }
  0x79   :  { %v1575_v39 = vpack.c.bf16 %v348_v37, %v346_v36  ;;  %v347_v41 = vld [vmem:[#allocation5 + $0xb0] sm:$0xff]  ;;  %v350_v42 = vld [vmem:[#allocation5 + $0xc8] sm:$0xff]  ;;  %v352_v43 = vld [vmem:[#allocation5 + $0xd8] sm:$0xff] }
  0x7a   :  { %1562 = vmatpush1.bf16.msra.mxu0 %v1561_v20  ;;  %v1577_v44 = vpack.c.bf16 %v347_v41, %v345_v40  ;;  %v1579_v45 = vpack.c.bf16 %v352_v43, %v350_v42  ;;  %v349_v46 = vld [vmem:[#allocation5 + $0xc0] sm:$0xff]  ;;  %v351_v47 = vld [vmem:[#allocation5 + $0xd0] sm:$0xff]  ;;  %v354_v48 = vld [vmem:[#allocation5 + $0xe8] sm:$0xff] }
  0x7b   :  { %1564 = vmatprep.subr.bf16.mxu0 %v1563_v21  ;;  %v356_v49 = vld [vmem:[#allocation5 + $0xf8] sm:$0xff]  ;;  %v1581_v50 = vpack.c.bf16 %v351_v47, %v349_v46  ;;  %v353_v52 = vld [vmem:[#allocation5 + $0xe0] sm:$0xff]  ;;  %v355_v53 = vld [vmem:[#allocation5 + $0xf0] sm:$0xff] }
  0x7c   :  { %v1583_v51 = vpack.c.bf16 %v356_v49, %v354_v48  ;;  %v358_v54 = vld [vmem:[#allocation5 + $0x108] sm:$0xff]  ;;  %v360_v55 = vld [vmem:[#allocation5 + $0x118] sm:$0xff]  ;;  %v1585_v56 = vpack.c.bf16 %v355_v53, %v353_v52  ;;  %v357_v58 = vld [vmem:[#allocation5 + $0x100] sm:$0xff] }
  0x7d   :  { %v1587_v57 = vpack.c.bf16 %v360_v55, %v358_v54  ;;  %v359_v59 = vld [vmem:[#allocation5 + $0x110] sm:$0xff]  ;;  %v362_v60 = vld [vmem:[#allocation5 + $0x128] sm:$0xff]  ;;  %v364_v61 = vld [vmem:[#allocation5 + $0x138] sm:$0xff] }
  0x7e   :  { %1566 = vmatpush1.bf16.msra.mxu0 %v1565_v26  ;;  %v1589_v62 = vpack.c.bf16 %v359_v59, %v357_v58  ;;  %v1591_v63 = vpack.c.bf16 %v364_v61, %v362_v60  ;;  %v361_v1 = vld [vmem:[#allocation5 + $0x120] sm:$0xff]  ;;  %v363_v2 = vld [vmem:[#allocation5 + $0x130] sm:$0xff]  ;;  %v366_v3 = vld [vmem:[#allocation5 + $0x148] sm:$0xff] }
  0x7f   :  { %1568 = vmatprep.subr.bf16.mxu0 %v1567_v27  ;;  %v368_v4 = vld [vmem:[#allocation5 + $0x158] sm:$0xff]  ;;  %v1593_v5 = vpack.c.bf16 %v363_v2, %v361_v1  ;;  %v365_v7 = vld [vmem:[#allocation5 + $0x140] sm:$0xff]  ;;  %v367_v8 = vld [vmem:[#allocation5 + $0x150] sm:$0xff] }
  0x80   :  { %v1595_v6 = vpack.c.bf16 %v368_v4, %v366_v3  ;;  %v370_v9 = vld [vmem:[#allocation5 + $0x168] sm:$0xff]  ;;  %v372_v10 = vld [vmem:[#allocation5 + $0x178] sm:$0xff]  ;;  %v1597_v11 = vpack.c.bf16 %v367_v8, %v365_v7  ;;  %v369_v13 = vld [vmem:[#allocation5 + $0x160] sm:$0xff] }
  0x81   :  { %v1599_v12 = vpack.c.bf16 %v372_v10, %v370_v9  ;;  %v371_v14 = vld [vmem:[#allocation5 + $0x170] sm:$0xff]  ;;  %v374_v15 = vld [vmem:[#allocation5 + $0x188] sm:$0xff]  ;;  %v376_v16 = vld [vmem:[#allocation5 + $0x198] sm:$0xff] }
  0x82   :  { %1570 = vmatpush1.bf16.msra.mxu0 %v1569_v32  ;;  %v1601_v17 = vpack.c.bf16 %v371_v14, %v369_v13  ;;  %v1603_v18 = vpack.c.bf16 %v376_v16, %v374_v15  ;;  %v373_v19 = vld [vmem:[#allocation5 + $0x180] sm:$0xff]  ;;  %v375_v20 = vld [vmem:[#allocation5 + $0x190] sm:$0xff]  ;;  %v378_v21 = vld [vmem:[#allocation5 + $0x1a8] sm:$0xff] }
  0x83   :  { %1572 = vmatprep.subr.bf16.mxu0 %v1571_v33  ;;  %v380_v22 = vld [vmem:[#allocation5 + $0x1b8] sm:$0xff]  ;;  %v1605_v23 = vpack.c.bf16 %v375_v20, %v373_v19  ;;  %v377_v25 = vld [vmem:[#allocation5 + $0x1a0] sm:$0xff]  ;;  %v379_v26 = vld [vmem:[#allocation5 + $0x1b0] sm:$0xff]  ;;  %v136_v19 = vlaneseq }
  0x84   :  { %v1607_v24 = vpack.c.bf16 %v380_v22, %v378_v21  ;;  %v382_v27 = vld [vmem:[#allocation5 + $0x1c8] sm:$0xff]  ;;  %v384_v28 = vld [vmem:[#allocation5 + $0x1d8] sm:$0xff]  ;;  %v1609_v29 = vpack.c.bf16 %v379_v26, %v377_v25  ;;  %v381_v31 = vld [vmem:[#allocation5 + $0x1c0] sm:$0xff] }
  0x85   :  { %v1611_v30 = vpack.c.bf16 %v384_v28, %v382_v27  ;;  %v383_v32 = vld [vmem:[#allocation5 + $0x1d0] sm:$0xff]  ;;  %v386_v34 = vld [vmem:[#allocation5 + $0x1e8] sm:$0xff]  ;;  %v388_v35 = vld [vmem:[#allocation5 + $0x1f8] sm:$0xff]  ;;  %v2332_v20 = vshrl.u32 %v136_v19, 7 }
  0x86   :  { %1574 = vmatpush1.bf16.msra.mxu0 %v1573_v38  ;;  %v1613_v33 = vpack.c.bf16 %v383_v32, %v381_v31  ;;  %v1615_v36 = vpack.c.bf16 %v388_v35, %v386_v34  ;;  %v385_v37 = vld [vmem:[#allocation5 + $0x1e0] sm:$0xff]  ;;  %v387_v38 = vld [vmem:[#allocation5 + $0x1f0] sm:$0xff]  ;;  %v390_v40 = vld [vmem:[#allocation5 + $0x208] sm:$0xff] }
  0x87   :  { %1576 = vmatprep.subr.bf16.mxu0 %v1575_v39  ;;  %v1617_v39 = vpack.c.bf16 %v387_v38, %v385_v37  ;;  %v392_v41 = vld [vmem:[#allocation5 + $0x218] sm:$0xff]  ;;  %v639_v43 = vld [vmem:[#allocation7 + $0x80] sm:$0xff]  ;;  %v624_v47 = vld [vmem:[#allocation7 + $0x8] sm:$0xff]  ;;  %v2335_v21 = vsub.s32 0, %v2332_v20 }
  0x88   :  { %v1619_v42 = vpack.c.bf16 %v392_v41, %v390_v40  ;;  %v641_v48 = vld [vmem:[#allocation7 + $0x90] sm:$0xff]  ;;  %v642_v49 = vld [vmem:[#allocation7 + $0x98] sm:$0xff]  ;;  %v643_v54 = vld [vmem:[#allocation7 + $0xa0] sm:$0xff] }
  0x89   :  { %v625_v52 = vld [vmem:[#allocation7 + $0x10] sm:$0xff]  ;;  %v626_v53 = vld [vmem:[#allocation7 + $0x18] sm:$0xff]  ;;  %v644_v55 = vld [vmem:[#allocation7 + $0xa8] sm:$0xff] }
  0x8a   :  { %1578 = vmatpush1.bf16.msra.mxu0 %v1577_v44  ;;  %v640_v44 = vld [vmem:[#allocation7 + $0x88] sm:$0xff]  ;;  %v627_v58 = vld [vmem:[#allocation7 + $0x20] sm:$0xff]  ;;  %v645_v60 = vld [vmem:[#allocation7 + $0xb0] sm:$0xff] }
  0x8b   :  { %1580 = vmatprep.subr.bf16.mxu0 %v1579_v45  ;;  %v623_v45 = vld [vmem:[#allocation7] sm:$0xff]  ;;  %v1683_v46 = vpack.c.bf16 %v640_v44, %v639_v43  ;;  %v628_v59 = vld [vmem:[#allocation7 + $0x28] sm:$0xff]  ;;  %v646_v61 = vld [vmem:[#allocation7 + $0xb8] sm:$0xff] }
  0x8c   :  { %v629_v1 = vld [vmem:[#allocation7 + $0x30] sm:$0xff]  ;;  %v630_v2 = vld [vmem:[#allocation7 + $0x38] sm:$0xff]  ;;  %v647_v3 = vld [vmem:[#allocation7 + $0xc0] sm:$0xff] }
  0x8d   :  { %1684 = vmatprep.subr.bf16.mxu1 %v1683_v46  ;;  %v648_v4 = vld [vmem:[#allocation7 + $0xc8] sm:$0xff]  ;;  %v631_v7 = vld [vmem:[#allocation7 + $0x40] sm:$0xff]  ;;  %v649_v9 = vld [vmem:[#allocation7 + $0xd0] sm:$0xff] }
  0x8e   :  { %1582 = vmatpush1.bf16.msra.mxu0 %v1581_v50  ;;  %v1685_v50 = vpack.c.bf16 %v624_v47, %v623_v45  ;;  %v632_v8 = vld [vmem:[#allocation7 + $0x48] sm:$0xff]  ;;  %v650_v10 = vld [vmem:[#allocation7 + $0xd8] sm:$0xff]  ;;  %v633_v13 = vld [vmem:[#allocation7 + $0x50] sm:$0xff] }
  0x8f   :  { %1584 = vmatprep.subr.bf16.mxu0 %v1583_v51  ;;  %v1687_v51 = vpack.c.bf16 %v642_v49, %v641_v48  ;;  %v634_v14 = vld [vmem:[#allocation7 + $0x58] sm:$0xff]  ;;  %v651_v15 = vld [vmem:[#allocation7 + $0xe0] sm:$0xff]  ;;  %v652_v16 = vld [vmem:[#allocation7 + $0xe8] sm:$0xff] }
  0x90   :  { %1686 = vmatpush3.bf16.msra.mxu1 %v1685_v50  ;;  %v2340_v22 = vld [vmem:[%s2448_s2] sm:$0xf]  ;;  %v391_v32 = vld [vmem:[#allocation5 + $0x210] sm:$0xff]  ;;  %v394_v35 = vld [vmem:[#allocation5 + $0x228] sm:$0xff] }
  0x91   :  { %1688 = vmatprep.subr.bf16.mxu1 %v1687_v51  ;;  %v139_v25 = vrot.slane %v2340_v22, %v2335_v21  ;;  %v389_v31 = vld [vmem:[#allocation5 + $0x200] sm:$0xff]  ;;  %v395_v45 = vld [vmem:[#allocation5 + $0x230] sm:$0xff]  ;;  %v398_v49 = vld [vmem:[#allocation5 + $0x248] sm:$0xff] }
  0x92   :  { %1586 = vmatpush1.bf16.msra.mxu0 %v1585_v56  ;;  %v1689_v56 = vpack.c.bf16 %v626_v53, %v625_v52  ;;  %v393_v44 = vld [vmem:[#allocation5 + $0x220] sm:$0xff]  ;;  %v400_v50 = vld [vmem:[#allocation5 + $0x258] sm:$0xff] }
  0x93   :  { %1588 = vmatprep.subr.bf16.mxu0 %v1587_v57  ;;  %v1691_v57 = vpack.c.bf16 %v644_v55, %v643_v54  ;;  %v1625_v54 = vpack.c.bf16 %v395_v45, %v393_v44  ;;  %v413_v19 = vld [vmem:[#allocation5 + $0x2c0] sm:$0xff]  ;;  %v427_v45 = vld [vmem:[#allocation5 + $0x330] sm:$0xff] }
  0x94   :  { %1690 = vmatpush3.bf16.msra.mxu1 %v1689_v56  ;;  %v425_v44 = vld [vmem:[#allocation5 + $0x320] sm:$0xff] }
  0x95   :  { %1692 = vmatprep.subr.bf16.mxu1 %v1691_v57  ;;  %v1627_v57 = vpack.c.bf16 %v400_v50, %v398_v49  ;;  %v1657_v49 = vpack.c.bf16 %v427_v45, %v425_v44  ;;  %v453_v44 = vld [vmem:[%s2450_s4] sm:$0x3] }
  0x96   :  { %1590 = vmatpush1.bf16.msra.mxu0 %v1589_v62  ;;  %v1693_v62 = vpack.c.bf16 %v628_v59, %v627_v58  ;;  %v397_v58 = vld [vmem:[#allocation5 + $0x240] sm:$0xff]  ;;  %v399_v59 = vld [vmem:[#allocation5 + $0x250] sm:$0xff]  ;;  %v458_v45 = vrot.slane %v453_v44, %v2335_v21 }
  0x97   :  { %1592 = vmatprep.subr.bf16.mxu0 %v1591_v63  ;;  %v1695_v63 = vpack.c.bf16 %v646_v61, %v645_v60  ;;  %v402_v60 = vld [vmem:[#allocation5 + $0x268] sm:$0xff]  ;;  %v404_v61 = vld [vmem:[#allocation5 + $0x278] sm:$0xff] }
  0x98   :  { %1694 = vmatpush3.bf16.msra.mxu1 %v1693_v62  ;;  %v1629_v62 = vpack.c.bf16 %v399_v59, %v397_v58  ;;  %v433_v58 = vld [vmem:[#allocation5 + $0x360] sm:$0xff]  ;;  %v435_v59 = vld [vmem:[#allocation5 + $0x370] sm:$0xff] }
  0x99   :  { %1696 = vmatprep.subr.bf16.mxu1 %v1695_v63  ;;  %v1631_v63 = vpack.c.bf16 %v404_v61, %v402_v60  ;;  %v438_v60 = vld [vmem:[#allocation5 + $0x388] sm:$0xff]  ;;  %v440_v61 = vld [vmem:[#allocation5 + $0x398] sm:$0xff] }
  0x9a   :  { %1594 = vmatpush1.bf16.msra.mxu0 %v1593_v5  ;;  %v1697_v5 = vpack.c.bf16 %v630_v2, %v629_v1  ;;  %v401_v1 = vld [vmem:[#allocation5 + $0x260] sm:$0xff]  ;;  %v403_v2 = vld [vmem:[#allocation5 + $0x270] sm:$0xff] }
  0x9b   :  { %1596 = vmatprep.subr.bf16.mxu0 %v1595_v6  ;;  %v1699_v6 = vpack.c.bf16 %v648_v4, %v647_v3  ;;  %v406_v3 = vld [vmem:[#allocation5 + $0x288] sm:$0xff]  ;;  %v408_v4 = vld [vmem:[#allocation5 + $0x298] sm:$0xff] }
  0x9c   :  { %1698 = vmatpush3.bf16.msra.mxu1 %v1697_v5  ;;  %v1633_v5 = vpack.c.bf16 %v403_v2, %v401_v1  ;;  %v437_v1 = vld [vmem:[#allocation5 + $0x380] sm:$0xff]  ;;  %v439_v2 = vld [vmem:[#allocation5 + $0x390] sm:$0xff] }
  0x9d   :  { %1700 = vmatprep.subr.bf16.mxu1 %v1699_v6  ;;  %v1635_v6 = vpack.c.bf16 %v408_v4, %v406_v3  ;;  %v442_v3 = vld [vmem:[#allocation5 + $0x3a8] sm:$0xff]  ;;  %v444_v4 = vld [vmem:[#allocation5 + $0x3b8] sm:$0xff] }
  0x9e   :  { %1598 = vmatpush1.bf16.msra.mxu0 %v1597_v11  ;;  %v1701_v11 = vpack.c.bf16 %v632_v8, %v631_v7  ;;  %v405_v7 = vld [vmem:[#allocation5 + $0x280] sm:$0xff]  ;;  %v407_v8 = vld [vmem:[#allocation5 + $0x290] sm:$0xff] }
  0x9f   :  { %1600 = vmatprep.subr.bf16.mxu0 %v1599_v12  ;;  %v1703_v12 = vpack.c.bf16 %v650_v10, %v649_v9  ;;  %v410_v9 = vld [vmem:[#allocation5 + $0x2a8] sm:$0xff]  ;;  %v412_v10 = vld [vmem:[#allocation5 + $0x2b8] sm:$0xff] }
  0xa0   :  { %1702 = vmatpush3.bf16.msra.mxu1 %v1701_v11  ;;  %v1637_v11 = vpack.c.bf16 %v407_v8, %v405_v7  ;;  %v441_v7 = vld [vmem:[#allocation5 + $0x3a0] sm:$0xff]  ;;  %v443_v8 = vld [vmem:[#allocation5 + $0x3b0] sm:$0xff] }
  0xa1   :  { %1704 = vmatprep.subr.bf16.mxu1 %v1703_v12  ;;  %v1639_v12 = vpack.c.bf16 %v412_v10, %v410_v9  ;;  %v446_v9 = vld [vmem:[#allocation5 + $0x3c8] sm:$0xff]  ;;  %v448_v10 = vld [vmem:[#allocation5 + $0x3d8] sm:$0xff] }
  0xa2   :  { %1602 = vmatpush1.bf16.msra.mxu0 %v1601_v17  ;;  %v1705_v17 = vpack.c.bf16 %v634_v14, %v633_v13  ;;  %v409_v13 = vld [vmem:[#allocation5 + $0x2a0] sm:$0xff]  ;;  %v411_v14 = vld [vmem:[#allocation5 + $0x2b0] sm:$0xff] }
  0xa3   :  { %1604 = vmatprep.subr.bf16.mxu0 %v1603_v18  ;;  %v1707_v18 = vpack.c.bf16 %v652_v16, %v651_v15  ;;  %v414_v15 = vld [vmem:[#allocation5 + $0x2c8] sm:$0xff]  ;;  %v416_v16 = vld [vmem:[#allocation5 + $0x2d8] sm:$0xff] }
  0xa4   :  { %1706 = vmatpush3.bf16.msra.mxu1 %v1705_v17  ;;  %v1641_v17 = vpack.c.bf16 %v411_v14, %v409_v13  ;;  %v1675_v13 = vpack.c.bf16 %v448_v10, %v446_v9  ;;  %v445_v14 = vld [vmem:[#allocation5 + $0x3c0] sm:$0xff] }
  0xa5   :  { %1708 = vmatprep.subr.bf16.mxu1 %v1707_v18  ;;  %v1643_v18 = vpack.c.bf16 %v416_v16, %v414_v15  ;;  %v447_v15 = vld [vmem:[#allocation5 + $0x3d0] sm:$0xff]  ;;  %v450_v16 = vld [vmem:[#allocation5 + $0x3e8] sm:$0xff]  ;;  %v745_v10 = vld [vmem:[#allocation8 + $0x40] sm:$0xff] }
  0xa6   :  { %1606 = vmatpush1.bf16.msra.mxu0 %v1605_v23  ;;  %v2343_v23 = vsub.s32 1, %v2332_v20 }
  0xa7   :  { %1608 = vmatprep.subr.bf16.mxu0 %v1607_v24  ;;  %v150_v24 = vsub.s32 3, %v2332_v20 }
  0xa8   :  { %v143_v26 = vrot.slane %v2340_v22, %v2343_v23 }
  0xa9   :  { %v2353_v28 = vrot.slane %v2340_v22, %v150_v24 }
  0xaa   :  { %1610 = vmatpush1.bf16.msra.mxu0 %v1609_v29 }
  0xab   :  { %1612 = vmatprep.subr.bf16.mxu0 %v1611_v30 }
  0xae   :  { %1614 = vmatpush1.bf16.msra.mxu0 %v1613_v33 }
  0xaf   :  { %1616 = vmatprep.subr.bf16.mxu0 %v1615_v36  ;;  %v396_v36 = vld [vmem:[#allocation5 + $0x238] sm:$0xff] }
  0xb0   :  { %v1623_v43 = vpack.c.bf16 %v396_v36, %v394_v35  ;;  %v424_v35 = vld [vmem:[#allocation5 + $0x318] sm:$0xff] }
  0xb2   :  { %1618 = vmatpush1.bf16.msra.mxu0 %v1617_v39  ;;  %v1621_v39 = vpack.c.bf16 %v391_v32, %v389_v31  ;;  %v417_v31 = vld [vmem:[#allocation5 + $0x2e0] sm:$0xff]  ;;  %v419_v32 = vld [vmem:[#allocation5 + $0x2f0] sm:$0xff] }
  0xb3   :  { %1620 = vmatprep.subr.bf16.mxu0 %v1619_v42  ;;  %v1649_v36 = vpack.c.bf16 %v419_v32, %v417_v31 }
 0x146   :  { %v229_v27 = vpop.f32.mrb[0].mxu0  ;;  %v2355_v33 = vpop.f32.mrb[0].mxu1 }
 0x147   :  { %v230_v29 = vadd.f32 %v229_v27, %v139_v25  ;;  %v231_v30 = vpop.f32.mrb[1].mxu0  ;;  %v308_v37 = vpop.f32.mrb[1].mxu1  ;;  %v420_v27 = vld [vmem:[#allocation5 + $0x2f8] sm:$0xff] }
 0x148   :  { %v232_v34 = vadd.f32 %v231_v30, %v143_v26  ;;  %v309_v41 = vadd.f32 %v308_v37, %v2353_v28 }
 0x149   :  { %v317_v42 = vmax.f32 %v230_v29, 0.0 }
 0x14a   :  { %v318_v38 = vmax.f32 %v232_v34, 0.0  ;;  %v235_v40 = vpop.f32.mrb[2].mxu0  ;;  %v320_v56 = vmax.f32 %v309_v41, 0.0  ;;  %v422_v34 = vld [vmem:[#allocation5 + $0x308] sm:$0xff]  ;;  %v428_v41 = vld [vmem:[#allocation5 + $0x338] sm:$0xff] }
 0x14b   :  { %v236_v46 = vadd.f32 %v235_v40, %v139_v25  ;;  %v237_v47 = vpop.f32.mrb[3].mxu0  ;;  %v2358_v48 = vpop.f32.mrb[2].mxu1  ;;  %v415_v25 = vld [vmem:[#allocation5 + $0x2d0] sm:$0xff]  ;;  %v1651_v37 = vpack.c.bf16 %v424_v35, %v422_v34  ;;  %v426_v40 = vld [vmem:[#allocation5 + $0x328] sm:$0xff] }
 0x14c   :  { %529 = vmatprep.mubr.f32.mxu0 %v318_v38  ;;  %v238_v51 = vadd.f32 %v237_v47, %v143_v26  ;;  %v2360_v52 = vpop.f32.mrb[3].mxu1  ;;  %v418_v26 = vld [vmem:[#allocation5 + $0x2e8] sm:$0xff]  ;;  %v1645_v29 = vpack.c.bf16 %v415_v25, %v413_v19  ;;  %v421_v38 = vld [vmem:[#allocation5 + $0x300] sm:$0xff]  ;;  %v432_v47 = vld [vmem:[#allocation5 + $0x358] sm:$0xff] }
 0x14d   :  { %530 = vmatmul.mubr.f32.vlgmr.msra.gmra.mrb[4].mxu0 %v317_v42  ;;  %v321_v53 = vmax.f32 %v236_v46, 0.0  ;;  %v1647_v30 = vpack.c.bf16 %v420_v27, %v418_v26  ;;  %v430_v46 = vld [vmem:[#allocation5 + $0x348] sm:$0xff]  ;;  %v449_v26 = vld [vmem:[#allocation5 + $0x3e0] sm:$0xff]  ;;  %v451_v27 = vld [vmem:[#allocation5 + $0x3f0] sm:$0xff] }
 0x14e   :  { %1622 = vmatpush1.bf16.msra.mxu0 %v1621_v39  ;;  %v322_v55 = vmax.f32 %v238_v51, 0.0  ;;  %v423_v39 = vld [vmem:[#allocation5 + $0x310] sm:$0xff]  ;;  %v1659_v50 = vpack.c.bf16 %v432_v47, %v430_v46  ;;  %v429_v51 = vld [vmem:[#allocation5 + $0x340] sm:$0xff]  ;;  %v462_v46 = vrot.slane %v453_v44, %v2343_v23 }
 0x14f   :  { %1624 = vmatprep.subr.bf16.mxu0 %v1623_v43  ;;  %v1653_v42 = vpack.c.bf16 %v423_v39, %v421_v38  ;;  %v1655_v43 = vpack.c.bf16 %v428_v41, %v426_v40  ;;  %v653_v39 = vld [vmem:[#allocation7 + $0xf0] sm:$0xff]  ;;  %v654_v40 = vld [vmem:[#allocation7 + $0xf8] sm:$0xff] }
 0x150   :  { %535 = vmatprep.mubr.f32.mxu0 %v322_v55  ;;  %v436_v55 = vld [vmem:[#allocation5 + $0x378] sm:$0xff]  ;;  %v1711_v41 = vpack.c.bf16 %v654_v40, %v653_v39  ;;  %v767_v44 = vld [vmem:[#allocation8 + $0xf0] sm:$0xff] }
 0x151   :  { %536 = vmatmul.mubr.f32.gmra.mrb[6].mxu0 %v321_v53  ;;  %v431_v53 = vld [vmem:[#allocation5 + $0x350] sm:$0xff] }
 0x152   :  { %1626 = vmatpush1.bf16.msra.mxu0 %v1625_v54  ;;  %606 = vmatprep.mubr.f32.mxu0 %v320_v56  ;;  %v434_v54 = vld [vmem:[#allocation5 + $0x368] sm:$0xff]  ;;  %v1661_v56 = vpack.c.bf16 %v431_v53, %v429_v51  ;;  %v737_v51 = vld [vmem:[#allocation8] sm:$0xff]  ;;  %v739_v53 = vld [vmem:[#allocation8 + $0x10] sm:$0xff] }
 0x153   :  { %1628 = vmatprep.subr.bf16.mxu0 %v1627_v57  ;;  %v1663_v57 = vpack.c.bf16 %v436_v55, %v434_v54  ;;  %v742_v55 = vld [vmem:[#allocation8 + $0x28] sm:$0xff] }
 0x156   :  { %1630 = vmatpush1.bf16.msra.mxu0 %v1629_v62  ;;  %v1665_v62 = vpack.c.bf16 %v435_v59, %v433_v58  ;;  %v1717_v59 = vpack.c.bf16 %v739_v53, %v737_v51  ;;  %v869_v51 = vld [vmem:[#allocation10 + $0x38] sm:$0xff] }
 0x157   :  { %1632 = vmatprep.subr.bf16.mxu0 %v1631_v63  ;;  %v1667_v63 = vpack.c.bf16 %v440_v61, %v438_v60 }
 0x15a   :  { %1634 = vmatpush1.bf16.msra.mxu0 %v1633_v5  ;;  %v1669_v5 = vpack.c.bf16 %v439_v2, %v437_v1  ;;  %v741_v1 = vld [vmem:[#allocation8 + $0x20] sm:$0xff]  ;;  %v743_v2 = vld [vmem:[#allocation8 + $0x30] sm:$0xff] }
 0x15b   :  { %1636 = vmatprep.subr.bf16.mxu0 %v1635_v6  ;;  %v1671_v6 = vpack.c.bf16 %v444_v4, %v442_v3  ;;  %v746_v4 = vld [vmem:[#allocation8 + $0x48] sm:$0xff] }
 0x15e   :  { %1638 = vmatpush1.bf16.msra.mxu0 %v1637_v11  ;;  %v1673_v11 = vpack.c.bf16 %v443_v8, %v441_v7  ;;  %v1721_v7 = vpack.c.bf16 %v743_v2, %v741_v1  ;;  %v885_v1 = vld [vmem:[#allocation10 + $0xb8] sm:$0xff] }
 0x15f   :  { %1640 = vmatprep.subr.bf16.mxu0 %v1639_v12  ;;  %v146_v12 = vsub.s32 2, %v2332_v20 }
 0x161   :  { %v147_v19 = vrot.slane %v2340_v22, %v146_v12  ;;  %v635_v22 = vld [vmem:[#allocation7 + $0x60] sm:$0xff] }
 0x162   :  { %1642 = vmatpush1.bf16.msra.mxu0 %v1641_v17  ;;  %v452_v17 = vld [vmem:[#allocation5 + $0x3f8] sm:$0xff] }
 0x163   :  { %1644 = vmatprep.subr.bf16.mxu0 %v1643_v18  ;;  %v1677_v18 = vpack.c.bf16 %v447_v15, %v445_v14  ;;  %v1679_v25 = vpack.c.bf16 %v452_v17, %v450_v16  ;;  %v307_v31 = vadd.f32 %v2355_v33, %v147_v19  ;;  %v313_v32 = vadd.f32 %v2358_v48, %v147_v19  ;;  %v738_v48 = vld [vmem:[#allocation8 + $0x8] sm:$0xff]  ;;  %v752_v14 = vld [vmem:[#allocation8 + $0x78] sm:$0xff]  ;;  %v749_v17 = vld [vmem:[#allocation8 + $0x60] sm:$0xff] }
 0x164   :  { %v754_v19 = vld [vmem:[#allocation8 + $0x88] sm:$0xff] }
 0x165   :  { %v319_v35 = vmax.f32 %v307_v31, 0.0  ;;  %v758_v31 = vld [vmem:[#allocation8 + $0xa8] sm:$0xff] }
 0x166   :  { %1646 = vmatpush1.bf16.msra.mxu0 %v1645_v29  ;;  %v1681_v29 = vpack.c.bf16 %v451_v27, %v449_v26 }
 0x167   :  { %1648 = vmatprep.subr.bf16.mxu0 %v1647_v30  ;;  %v315_v30 = vadd.f32 %v2360_v52, %v2353_v28  ;;  %v637_v28 = vld [vmem:[#allocation7 + $0x70] sm:$0xff]  ;;  %v638_v52 = vld [vmem:[#allocation7 + $0x78] sm:$0xff] }
 0x168   :  { %v1713_v33 = vpack.c.bf16 %v638_v52, %v637_v28  ;;  %v763_v28 = vld [vmem:[#allocation8 + $0xd0] sm:$0xff] }
 0x169   :  { %v324_v34 = vmax.f32 %v315_v30, 0.0  ;;  %v755_v30 = vld [vmem:[#allocation8 + $0x90] sm:$0xff] }
 0x16a   :  { %1650 = vmatpush1.bf16.msra.mxu0 %v1649_v36  ;;  %v323_v36 = vmax.f32 %v313_v32, 0.0  ;;  %v760_v32 = vld [vmem:[#allocation8 + $0xb8] sm:$0xff] }
 0x16b   :  { %1652 = vmatprep.subr.bf16.mxu0 %v1651_v37  ;;  %v636_v37 = vld [vmem:[#allocation7 + $0x68] sm:$0xff] }
 0x16c   :  { %v1709_v38 = vpack.c.bf16 %v636_v37, %v635_v22  ;;  %v759_v22 = vld [vmem:[#allocation8 + $0xb0] sm:$0xff]  ;;  %v762_v37 = vld [vmem:[#allocation8 + $0xc8] sm:$0xff] }
 0x16e   :  { %1654 = vmatpush1.bf16.msra.mxu0 %v1653_v42  ;;  %1710 = vmatpush3.bf16.msra.mxu1 %v1709_v38  ;;  %v740_v42 = vld [vmem:[#allocation8 + $0x18] sm:$0xff] }
 0x16f   :  { %1656 = vmatprep.subr.bf16.mxu0 %v1655_v43  ;;  %1712 = vmatprep.subr.bf16.mxu1 %v1711_v41  ;;  %v1715_v43 = vpack.c.bf16 %v740_v42, %v738_v48  ;;  %v764_v38 = vld [vmem:[#allocation8 + $0xd8] sm:$0xff]  ;;  %v761_v41 = vld [vmem:[#allocation8 + $0xc0] sm:$0xff] }
 0x170   :  { %v1739_v40 = vpack.c.bf16 %v764_v38, %v762_v37  ;;  %v1741_v52 = vpack.c.bf16 %v763_v28, %v761_v41  ;;  %v768_v48 = vld [vmem:[#allocation8 + $0xf8] sm:$0xff]  ;;  %v924_v41 = vld [vmem:[#allocation10 + $0x1f0] sm:$0xff] }
 0x171   :  { %v925_v37 = vld [vmem:[#allocation10 + $0x1f8] sm:$0xff] }
 0x172   :  { %1658 = vmatpush1.bf16.msra.mxu0 %v1657_v49  ;;  %1714 = vmatpush3.bf16.msra.mxu1 %v1713_v33  ;;  %v766_v33 = vld [vmem:[#allocation8 + $0xe8] sm:$0xff]  ;;  %v929_v28 = vld [vmem:[#allocation10 + $0x218] sm:$0xff] }
 0x173   :  { %1660 = vmatprep.subr.bf16.mxu0 %v1659_v50  ;;  %1716 = vmatprep.subr.bf16.mxu1 %v1715_v43  ;;  %v1743_v42 = vpack.c.bf16 %v768_v48, %v766_v33  ;;  %v765_v43 = vld [vmem:[#allocation8 + $0xe0] sm:$0xff] }
 0x176   :  { %1662 = vmatpush1.bf16.msra.mxu0 %v1661_v56  ;;  %v744_v56 = vld [vmem:[#allocation8 + $0x38] sm:$0xff] }
 0x177   :  { %1664 = vmatprep.subr.bf16.mxu0 %v1663_v57 }
 0x17a   :  { %1666 = vmatpush1.bf16.msra.mxu0 %v1665_v62 }
 0x17b   :  { %1668 = vmatprep.subr.bf16.mxu0 %v1667_v63  ;;  %v1719_v63 = vpack.c.bf16 %v744_v56, %v742_v55  ;;  %v868_v55 = vld [vmem:[#allocation10 + $0x30] sm:$0xff] }
 0x17e   :  { %1670 = vmatpush1.bf16.msra.mxu0 %v1669_v5  ;;  %v748_v5 = vld [vmem:[#allocation8 + $0x58] sm:$0xff] }
 0x17f   :  { %1672 = vmatprep.subr.bf16.mxu0 %v1671_v6  ;;  %v1723_v9 = vpack.c.bf16 %v748_v5, %v746_v4  ;;  %v884_v4 = vld [vmem:[#allocation10 + $0xb0] sm:$0xff]  ;;  %v889_v5 = vld [vmem:[#allocation10 + $0xd8] sm:$0xff] }
 0x182   :  { %1674 = vmatpush1.bf16.msra.mxu0 %v1673_v11  ;;  %v747_v11 = vld [vmem:[#allocation8 + $0x50] sm:$0xff] }
 0x183   :  { %1676 = vmatprep.subr.bf16.mxu0 %v1675_v13  ;;  %v750_v13 = vld [vmem:[#allocation8 + $0x68] sm:$0xff]  ;;  %v1725_v15 = vpack.c.bf16 %v747_v11, %v745_v10  ;;  %v892_v10 = vld [vmem:[#allocation10 + $0xf0] sm:$0xff]  ;;  %v897_v11 = vld [vmem:[#allocation10 + $0x118] sm:$0xff] }
 0x184   :  { %v1727_v16 = vpack.c.bf16 %v752_v14, %v750_v13  ;;  %v901_v13 = vld [vmem:[#allocation10 + $0x138] sm:$0xff] }
 0x186   :  { %1678 = vmatpush1.bf16.msra.mxu0 %v1677_v18  ;;  %v751_v18 = vld [vmem:[#allocation8 + $0x70] sm:$0xff] }
 0x187   :  { %1680 = vmatprep.subr.bf16.mxu0 %v1679_v25  ;;  %v756_v25 = vld [vmem:[#allocation8 + $0x98] sm:$0xff]  ;;  %v1729_v26 = vpack.c.bf16 %v751_v18, %v749_v17  ;;  %v900_v17 = vld [vmem:[#allocation10 + $0x130] sm:$0xff] }
 0x188   :  { %v1731_v27 = vpack.c.bf16 %v756_v25, %v754_v19  ;;  %v905_v18 = vld [vmem:[#allocation10 + $0x158] sm:$0xff] }
 0x189   :  { %v909_v19 = vld [vmem:[#allocation10 + $0x178] sm:$0xff] }
 0x18a   :  { %1682 = vmatpush1.bf16.msra.mxu0 %v1681_v29  ;;  %v753_v29 = vld [vmem:[#allocation8 + $0x80] sm:$0xff] }
 0x18d   :  { %607 = vmatmul.mubr.f32.vlgmr.msra.gmra.mrb[4].mxu0 %v319_v35  ;;  %v1735_v35 = vpack.c.bf16 %v760_v32, %v758_v31  ;;  %v917_v31 = vld [vmem:[#allocation10 + $0x1b8] sm:$0xff] }
 0x18e   :  { %612 = vmatprep.mubr.f32.mxu0 %v324_v34  ;;  %v1733_v34 = vpack.c.bf16 %v755_v30, %v753_v29  ;;  %v908_v29 = vld [vmem:[#allocation10 + $0x170] sm:$0xff]  ;;  %v913_v30 = vld [vmem:[#allocation10 + $0x198] sm:$0xff] }
 0x191   :  { %613 = vmatmul.mubr.f32.gmra.mrb[6].mxu0 %v323_v36  ;;  %v757_v36 = vld [vmem:[#allocation8 + $0xa0] sm:$0xff] }
 0x192   :  { %v1737_v39 = vpack.c.bf16 %v759_v22, %v757_v36  ;;  %v916_v36 = vld [vmem:[#allocation10 + $0x1b0] sm:$0xff]  ;;  %v921_v22 = vld [vmem:[#allocation10 + $0x1d8] sm:$0xff] }
 0x260   :  { %v608_v47 = vpop.f32.mrb[4].mxu0 }
 0x261   :  { %v1939_v49 = vadd.f32 %v608_v47, %v458_v45  ;;  %v610_v50 = vpop.f32.mrb[5].mxu0  ;;  %v867_v47 = vld [vmem:[#allocation10 + $0x28] sm:$0xff] }
 0x262   :  { %v1940_v54 = vadd.f32 %v610_v50, %v462_v46 }
 0x263   :  { %v619_v60 = vmax.f32 %v1939_v49, 0.0  ;;  %v865_v49 = vld [vmem:[#allocation10 + $0x18] sm:$0xff] }
 0x264   :  { %v620_v57 = vmax.f32 %v1940_v54, 0.0  ;;  %v614_v58 = vpop.f32.mrb[6].mxu0  ;;  %v1811_v53 = vpack.c.bf16 %v869_v51, %v865_v49  ;;  %v864_v54 = vld [vmem:[#allocation10 + $0x10] sm:$0xff]  ;;  %v945_v51 = vld [vmem:[#allocation10 + $0x298] sm:$0xff] }
 0x265   :  { %v1941_v61 = vadd.f32 %v614_v58, %v458_v45  ;;  %v616_v62 = vpop.f32.mrb[7].mxu0  ;;  %v1745_v45 = vpack.c.bf16 %v767_v44, %v765_v43  ;;  %v1813_v56 = vpack.c.bf16 %v868_v55, %v864_v54  ;;  %v877_v58 = vld [vmem:[#allocation10 + $0x78] sm:$0xff]  ;;  %v932_v43 = vld [vmem:[#allocation10 + $0x230] sm:$0xff] }
 0x266   :  { %v1942_v3 = vadd.f32 %v616_v62, %v462_v46  ;;  %726 = vmatprep.mubr.f32.mxu1 %v620_v57  ;;  %v863_v46 = vld [vmem:[#allocation10 + $0x8] sm:$0xff]  ;;  %v873_v57 = vld [vmem:[#allocation10 + $0x58] sm:$0xff]  ;;  %1812 = vmatprep.subr.bf16.mxu0 %v1811_v53  ;;  %v936_v49 = vld [vmem:[#allocation10 + $0x250] sm:$0xff] }
 0x267   :  { %727 = vmatmul.mubr.f32.vlgmr.msra.gmra.mrb[4].mxu1 %v619_v60  ;;  %v621_v8 = vmax.f32 %v1941_v61, 0.0  ;;  %v1747_v50 = vpack.c.bf16 %v867_v47, %v863_v46  ;;  %v872_v60 = vld [vmem:[#allocation10 + $0x50] sm:$0xff]  ;;  %1814 = vmatpush1.bf16.msra.mxu0 %v1813_v56  ;;  %v937_v44 = vld [vmem:[#allocation10 + $0x258] sm:$0xff] }
 0x268   :  { %v622_v6 = vmax.f32 %v1942_v3, 0.0  ;;  %1718 = vmatpush1.bf16.msra.mxu1 %v1717_v59  ;;  %v1815_v59 = vpack.c.bf16 %v877_v58, %v873_v57  ;;  %v876_v61 = vld [vmem:[#allocation10 + $0x70] sm:$0xff]  ;;  %v949_v53 = vld [vmem:[#allocation10 + $0x2b8] sm:$0xff] }
 0x269   :  { %1720 = vmatprep.subr.bf16.mxu1 %v1719_v63  ;;  %v1817_v62 = vpack.c.bf16 %v876_v61, %v872_v60  ;;  %v881_v63 = vld [vmem:[#allocation10 + $0x98] sm:$0xff]  ;;  %v880_v3 = vld [vmem:[#allocation10 + $0x90] sm:$0xff]  ;;  %v1851_v55 = vpack.c.bf16 %v949_v53, %v945_v51  ;;  %v899_v51 = vld [vmem:[#allocation10 + $0x128] sm:$0xff] }
 0x26a   :  { %731 = vmatprep.mubr.f32.mxu1 %v622_v6  ;;  %1816 = vmatprep.subr.bf16.mxu0 %v1815_v59  ;;  %v1819_v2 = vpack.c.bf16 %v885_v1, %v881_v63  ;;  %v1821_v6 = vpack.c.bf16 %v884_v4, %v880_v3  ;;  %v944_v56 = vld [vmem:[#allocation10 + $0x290] sm:$0xff]  ;;  %v953_v58 = vld [vmem:[#allocation10 + $0x2d8] sm:$0xff] }
 0x26b   :  { %732 = vmatmul.mubr.f32.gmra.mrb[6].mxu1 %v621_v8  ;;  %1818 = vmatpush1.bf16.msra.mxu0 %v1817_v62  ;;  %v948_v57 = vld [vmem:[#allocation10 + $0x2b0] sm:$0xff]  ;;  %v957_v59 = vld [vmem:[#allocation10 + $0x2f8] sm:$0xff] }
 0x26c   :  { %1722 = vmatpush1.bf16.msra.mxu1 %v1721_v7  ;;  %845 = vmatprep.mubr.f32.mxu1 %v2162_v0  ;;  %v893_v7 = vld [vmem:[#allocation10 + $0xf8] sm:$0xff]  ;;  %v1853_v60 = vpack.c.bf16 %v948_v57, %v944_v56  ;;  %v1855_v61 = vpack.c.bf16 %v957_v59, %v953_v58  ;;  %v952_v62 = vld [vmem:[#allocation10 + $0x2d0] sm:$0xff]  ;;  %v903_v56 = vld [vmem:[#allocation10 + $0x148] sm:$0xff] }
 0x26d   :  { %1724 = vmatprep.subr.bf16.mxu1 %v1723_v9  ;;  %1820 = vmatprep.subr.bf16.mxu0 %v1819_v2  ;;  %v1823_v8 = vpack.c.bf16 %v893_v7, %v889_v5  ;;  %v888_v9 = vld [vmem:[#allocation10 + $0xd0] sm:$0xff]  ;;  %v961_v1 = vld [vmem:[#allocation10 + $0x318] sm:$0xff]  ;;  %v907_v57 = vld [vmem:[#allocation10 + $0x168] sm:$0xff] }
 0x26e   :  { %v1825_v14 = vpack.c.bf16 %v892_v10, %v888_v9  ;;  %v956_v63 = vld [vmem:[#allocation10 + $0x2f0] sm:$0xff]  ;;  %v965_v2 = vld [vmem:[#allocation10 + $0x338] sm:$0xff]  ;;  %v1767_v59 = vpack.c.bf16 %v907_v57, %v903_v56  ;;  %v978_v56 = vld [vmem:[#allocation10 + $0x3a0] sm:$0xff] }
 0x26f   :  { %1822 = vmatpush1.bf16.msra.mxu0 %v1821_v6  ;;  %v1857_v3 = vpack.c.bf16 %v956_v63, %v952_v62  ;;  %v1859_v4 = vpack.c.bf16 %v965_v2, %v961_v1  ;;  %v960_v5 = vld [vmem:[#allocation10 + $0x310] sm:$0xff]  ;;  %v969_v7 = vld [vmem:[#allocation10 + $0x358] sm:$0xff]  ;;  %v911_v62 = vld [vmem:[#allocation10 + $0x188] sm:$0xff] }
 0x270   :  { %1726 = vmatpush1.bf16.msra.mxu1 %v1725_v15  ;;  %1824 = vmatprep.subr.bf16.mxu0 %v1823_v8  ;;  %v1827_v15 = vpack.c.bf16 %v901_v13, %v897_v11  ;;  %v964_v6 = vld [vmem:[#allocation10 + $0x330] sm:$0xff]  ;;  %v973_v8 = vld [vmem:[#allocation10 + $0x378] sm:$0xff]  ;;  %v915_v63 = vld [vmem:[#allocation10 + $0x1a8] sm:$0xff] }
 0x271   :  { %1728 = vmatprep.subr.bf16.mxu1 %v1727_v16  ;;  %v896_v16 = vld [vmem:[#allocation10 + $0x110] sm:$0xff]  ;;  %v1861_v9 = vpack.c.bf16 %v964_v6, %v960_v5  ;;  %v1863_v10 = vpack.c.bf16 %v973_v8, %v969_v7  ;;  %v1771_v2 = vpack.c.bf16 %v915_v63, %v911_v62  ;;  %v919_v5 = vld [vmem:[#allocation10 + $0x1c8] sm:$0xff]  ;;  %v985_v63 = vld [vmem:[#allocation10 + $0x3d8] sm:$0xff] }
 0x272   :  { %v1829_v25 = vpack.c.bf16 %v900_v17, %v896_v16  ;;  %v968_v11 = vld [vmem:[#allocation10 + $0x350] sm:$0xff]  ;;  %v923_v6 = vld [vmem:[#allocation10 + $0x1e8] sm:$0xff] }
 0x273   :  { %1826 = vmatpush1.bf16.msra.mxu0 %v1825_v14  ;;  %v972_v13 = vld [vmem:[#allocation10 + $0x370] sm:$0xff]  ;;  %v977_v14 = vld [vmem:[#allocation10 + $0x398] sm:$0xff]  ;;  %v1775_v8 = vpack.c.bf16 %v923_v6, %v919_v5  ;;  %v987_v62 = vld [vmem:[#allocation10 + $0x3e8] sm:$0xff] }
 0x274   :  { %1730 = vmatpush1.bf16.msra.mxu1 %v1729_v26  ;;  %1828 = vmatprep.subr.bf16.mxu0 %v1827_v15  ;;  %v1831_v26 = vpack.c.bf16 %v909_v19, %v905_v18  ;;  %v981_v15 = vld [vmem:[#allocation10 + $0x3b8] sm:$0xff]  ;;  %v1865_v16 = vpack.c.bf16 %v972_v13, %v968_v11  ;;  %v862_v19 = vld [vmem:[#allocation10] sm:$0xff]  ;;  %v927_v11 = vld [vmem:[#allocation10 + $0x208] sm:$0xff] }
 0x275   :  { %1732 = vmatprep.subr.bf16.mxu1 %v1731_v27  ;;  %v904_v27 = vld [vmem:[#allocation10 + $0x150] sm:$0xff]  ;;  %v1867_v17 = vpack.c.bf16 %v981_v15, %v977_v14  ;;  %v931_v13 = vld [vmem:[#allocation10 + $0x228] sm:$0xff] }
 0x276   :  { %v1833_v32 = vpack.c.bf16 %v908_v29, %v904_v27  ;;  %v871_v29 = vld [vmem:[#allocation10 + $0x48] sm:$0xff]  ;;  %v1779_v15 = vpack.c.bf16 %v931_v13, %v927_v11  ;;  %v976_v57 = vld [vmem:[#allocation10 + $0x390] sm:$0xff] }
 0x277   :  { %1830 = vmatpush1.bf16.msra.mxu0 %v1829_v25  ;;  %v866_v25 = vld [vmem:[#allocation10 + $0x20] sm:$0xff]  ;;  %v1191_v11 = vld [vmem:[#allocation11 + $0x88] sm:$0xff] }
 0x278   :  { %1734 = vmatpush1.bf16.msra.mxu1 %v1733_v34  ;;  %1832 = vmatprep.subr.bf16.mxu0 %v1831_v26  ;;  %v1835_v34 = vpack.c.bf16 %v917_v31, %v913_v30  ;;  %v1439_v26 = vld [vmem:[%s2452_s6] ss:$0 sm:$0xff]  ;;  %v875_v30 = vld [vmem:[#allocation10 + $0x68] sm:$0xff] }
 0x279   :  { %1736 = vmatprep.subr.bf16.mxu1 %v1735_v35  ;;  %v912_v35 = vld [vmem:[#allocation10 + $0x190] sm:$0xff] }
 0x27a   :  { %v1837_v38 = vpack.c.bf16 %v916_v36, %v912_v35  ;;  %v1751_v36 = vpack.c.bf16 %v875_v30, %v871_v29  ;;  %v938_v29 = vld [vmem:[#allocation10 + $0x260] sm:$0xff]  ;;  %v943_v30 = vld [vmem:[#allocation10 + $0x288] sm:$0xff] }
 0x27b   :  { %1834 = vmatpush1.bf16.msra.mxu0 %v1833_v32  ;;  %v1749_v32 = vpack.c.bf16 %v866_v25, %v862_v19  ;;  %v939_v19 = vld [vmem:[#allocation10 + $0x268] sm:$0xff] }
 0x27c   :  { %1738 = vmatpush1.bf16.msra.mxu1 %v1737_v39  ;;  %1836 = vmatprep.subr.bf16.mxu0 %v1835_v34  ;;  %v1839_v39 = vpack.c.bf16 %v925_v37, %v921_v22  ;;  %v870_v22 = vld [vmem:[#allocation10 + $0x40] sm:$0xff] }
 0x27d   :  { %1740 = vmatprep.subr.bf16.mxu1 %v1739_v40  ;;  %v920_v40 = vld [vmem:[#allocation10 + $0x1d0] sm:$0xff]  ;;  %v874_v37 = vld [vmem:[#allocation10 + $0x60] sm:$0xff] }
 0x27e   :  { %v1841_v33 = vpack.c.bf16 %v924_v41, %v920_v40  ;;  %v883_v40 = vld [vmem:[#allocation10 + $0xa8] sm:$0xff] }
 0x27f   :  { %1838 = vmatpush1.bf16.msra.mxu0 %v1837_v38 }
 0x280   :  { %1742 = vmatpush1.bf16.msra.mxu1 %v1741_v52  ;;  %v933_v52 = vld [vmem:[#allocation10 + $0x238] sm:$0xff]  ;;  %1840 = vmatprep.subr.bf16.mxu0 %v1839_v39  ;;  %v879_v39 = vld [vmem:[#allocation10 + $0x88] sm:$0xff] }
 0x281   :  { %1744 = vmatprep.subr.bf16.mxu1 %v1743_v42  ;;  %v1843_v48 = vpack.c.bf16 %v933_v52, %v929_v28  ;;  %v928_v42 = vld [vmem:[#allocation10 + $0x210] sm:$0xff]  ;;  %v1753_v28 = vpack.c.bf16 %v874_v37, %v870_v22  ;;  %v951_v22 = vld [vmem:[#allocation10 + $0x2c8] sm:$0xff] }
 0x282   :  { %v1845_v46 = vpack.c.bf16 %v932_v43, %v928_v42  ;;  %v882_v42 = vld [vmem:[#allocation10 + $0xa0] sm:$0xff]  ;;  %v887_v43 = vld [vmem:[#allocation10 + $0xc8] sm:$0xff] }
 0x283   :  { %1842 = vmatpush1.bf16.msra.mxu0 %v1841_v33  ;;  %v1755_v33 = vpack.c.bf16 %v883_v40, %v879_v39  ;;  %v955_v37 = vld [vmem:[#allocation10 + $0x2e8] sm:$0xff]  ;;  %v950_v40 = vld [vmem:[#allocation10 + $0x2c0] sm:$0xff] }
 0x284   :  { %1746 = vmatpush1.bf16.msra.mxu1 %v1745_v45  ;;  %v941_v45 = vld [vmem:[#allocation10 + $0x278] sm:$0xff]  ;;  %1844 = vmatprep.subr.bf16.mxu0 %v1843_v48  ;;  %v878_v48 = vld [vmem:[#allocation10 + $0x80] sm:$0xff]  ;;  %v1791_v39 = vpack.c.bf16 %v955_v37, %v951_v22 }
 0x285   :  { %1748 = vmatprep.subr.bf16.mxu1 %v1747_v50  ;;  %v1847_v47 = vpack.c.bf16 %v941_v45, %v937_v44  ;;  %v940_v50 = vld [vmem:[#allocation10 + $0x270] sm:$0xff]  ;;  %v891_v44 = vld [vmem:[#allocation10 + $0xe8] sm:$0xff]  ;;  %v1757_v45 = vpack.c.bf16 %v882_v42, %v878_v48  ;;  %v958_v42 = vld [vmem:[#allocation10 + $0x300] sm:$0xff] }
 0x286   :  { %v1849_v54 = vpack.c.bf16 %v940_v50, %v936_v49  ;;  %v890_v49 = vld [vmem:[#allocation10 + $0xe0] sm:$0xff]  ;;  %v895_v50 = vld [vmem:[#allocation10 + $0x108] sm:$0xff] }
 0x287   :  { %1846 = vmatpush1.bf16.msra.mxu0 %v1845_v46  ;;  %v1759_v46 = vpack.c.bf16 %v891_v44, %v887_v43  ;;  %v1763_v53 = vpack.c.bf16 %v899_v51, %v895_v50  ;;  %v962_v43 = vld [vmem:[#allocation10 + $0x320] sm:$0xff]  ;;  %v967_v44 = vld [vmem:[#allocation10 + $0x348] sm:$0xff] }
 0x288   :  { %1848 = vmatprep.subr.bf16.mxu0 %v1847_v47  ;;  %v886_v47 = vld [vmem:[#allocation10 + $0xc0] sm:$0xff]  ;;  %v975_v51 = vld [vmem:[#allocation10 + $0x388] sm:$0xff] }
 0x289   :  { %v970_v50 = vld [vmem:[#allocation10 + $0x360] sm:$0xff] }
 0x28b   :  { %1850 = vmatpush1.bf16.msra.mxu0 %v1849_v54  ;;  %v894_v54 = vld [vmem:[#allocation10 + $0x100] sm:$0xff] }
 0x28c   :  { %1852 = vmatprep.subr.bf16.mxu0 %v1851_v55  ;;  %v898_v55 = vld [vmem:[#allocation10 + $0x120] sm:$0xff] }
 0x28d   :  { %v1765_v58 = vpack.c.bf16 %v898_v55, %v894_v54  ;;  %v974_v55 = vld [vmem:[#allocation10 + $0x380] sm:$0xff] }
 0x28f   :  { %1854 = vmatpush1.bf16.msra.mxu0 %v1853_v60  ;;  %v902_v60 = vld [vmem:[#allocation10 + $0x140] sm:$0xff] }
 0x290   :  { %1856 = vmatprep.subr.bf16.mxu0 %v1855_v61  ;;  %v906_v61 = vld [vmem:[#allocation10 + $0x160] sm:$0xff] }
 0x291   :  { %v1769_v1 = vpack.c.bf16 %v906_v61, %v902_v60  ;;  %v983_v61 = vld [vmem:[#allocation10 + $0x3c8] sm:$0xff] }
 0x293   :  { %1858 = vmatpush1.bf16.msra.mxu0 %v1857_v3  ;;  %v910_v3 = vld [vmem:[#allocation10 + $0x180] sm:$0xff] }
 0x294   :  { %1860 = vmatprep.subr.bf16.mxu0 %v1859_v4  ;;  %v914_v4 = vld [vmem:[#allocation10 + $0x1a0] sm:$0xff] }
 0x295   :  { %v1773_v7 = vpack.c.bf16 %v914_v4, %v910_v3  ;;  %v982_v3 = vld [vmem:[#allocation10 + $0x3c0] sm:$0xff] }
 0x296   :  { %v986_v4 = vld [vmem:[#allocation10 + $0x3e0] sm:$0xff] }
 0x297   :  { %1862 = vmatpush1.bf16.msra.mxu0 %v1861_v9  ;;  %v918_v9 = vld [vmem:[#allocation10 + $0x1c0] sm:$0xff]  ;;  %v1809_v6 = vpack.c.bf16 %v986_v4, %v982_v3 }
 0x298   :  { %1864 = vmatprep.subr.bf16.mxu0 %v1863_v10  ;;  %v922_v10 = vld [vmem:[#allocation10 + $0x1e0] sm:$0xff] }
 0x299   :  { %v1777_v14 = vpack.c.bf16 %v922_v10, %v918_v9  ;;  %v1190_v10 = vld [vmem:[#allocation11 + $0x80] sm:$0xff] }
 0x29a   :  { %v1875_v13 = vpack.c.bf16 %v1191_v11, %v1190_v10  ;;  %v1188_v11 = vld [vmem:[#allocation11 + $0x70] sm:$0xff] }
 0x29b   :  { %1866 = vmatpush1.bf16.msra.mxu0 %v1865_v16  ;;  %v926_v16 = vld [vmem:[#allocation10 + $0x200] sm:$0xff] }
 0x29c   :  { %1868 = vmatprep.subr.bf16.mxu0 %v1867_v17  ;;  %v930_v17 = vld [vmem:[#allocation10 + $0x220] sm:$0xff] }
 0x29d   :  { %v1781_v25 = vpack.c.bf16 %v930_v17, %v926_v16 }
 0x33a   :  { %v1473_v18 = vpop.f32.mrb[4].mxu1 }
 0x33b   :  { %v1474_v27 = vpop.f32.mrb[5].mxu1 }
 0x33c   :  { %v1475_v31 = vadd.f32 %v1474_v27, %v1473_v18  ;;  %v935_v18 = vld [vmem:[#allocation10 + $0x248] sm:$0xff]  ;;  %v934_v27 = vld [vmem:[#allocation10 + $0x240] sm:$0xff] }
 0x33e   :  { %v729_v34 = vadd.f32 %v1475_v31, %v1439_v26  ;;  %v1476_v35 = vpop.f32.mrb[6].mxu1  ;;  %v947_v31 = vld [vmem:[#allocation10 + $0x2a8] sm:$0xff] }
 0x33f   :  { %v1477_v38 = vpop.f32.mrb[7].mxu1 }
 0x340   :  { %1395 = vst [vmem:[#allocation14] sm:$0xff] %v729_v34  ;;  %v1478_v41 = vadd.f32 %v1477_v38, %v1476_v35  ;;  %846 = vmatmul.mubr.f32.vlgmr.msra.gmra.mrb[8].mxu1 %v729_v34  ;;  %v1787_v34 = vpack.c.bf16 %v947_v31, %v943_v30  ;;  %v942_v35 = vld [vmem:[#allocation10 + $0x280] sm:$0xff]  ;;  %v1193_v30 = vld [vmem:[#allocation11 + $0x98] sm:$0xff] }
 0x341   :  { %851 = vmatprep.mubr.f32.mxu1 %v2162_v0  ;;  %1750 = vmatpush1.bf16.msra.mxu1 %v1749_v32  ;;  %v1761_v0 = vpack.c.bf16 %v890_v49, %v886_v47  ;;  %v1785_v32 = vpack.c.bf16 %v938_v29, %v934_v27  ;;  %v966_v49 = vld [vmem:[#allocation10 + $0x340] sm:$0xff]  ;;  %v1192_v29 = vld [vmem:[#allocation11 + $0x90] sm:$0xff] }
 0x342   :  { %v734_v52 = vadd.f32 %v1478_v41, %v1439_v26  ;;  %1752 = vmatprep.subr.bf16.mxu1 %v1751_v36  ;;  %v1783_v26 = vpack.c.bf16 %v939_v19, %v935_v18  ;;  %v946_v36 = vld [vmem:[#allocation10 + $0x2a0] sm:$0xff]  ;;  %v1879_v37 = vpack.c.bf16 %v1193_v30, %v1192_v29 }
 0x343   :  { %v1789_v38 = vpack.c.bf16 %v946_v36, %v942_v35  ;;  %v954_v41 = vld [vmem:[#allocation10 + $0x2e0] sm:$0xff] }
 0x344   :  { %1396 = vst [vmem:[#allocation14 + $0x8] sm:$0xff] %v734_v52  ;;  %852 = vmatmul.mubr.f32.gmra.mrb[10].mxu1 %v734_v52  ;;  %v963_v52 = vld [vmem:[#allocation10 + $0x328] sm:$0xff] }
 0x345   :  { %1754 = vmatpush1.bf16.msra.mxu1 %v1753_v28  ;;  %v959_v28 = vld [vmem:[#allocation10 + $0x308] sm:$0xff] }
 0x346   :  { %1756 = vmatprep.subr.bf16.mxu1 %v1755_v33  ;;  %v1793_v33 = vpack.c.bf16 %v954_v41, %v950_v40  ;;  %v1795_v48 = vpack.c.bf16 %v963_v52, %v959_v28  ;;  %v1194_v41 = vld [vmem:[#allocation11 + $0xa0] sm:$0xff]  ;;  %v1195_v28 = vld [vmem:[#allocation11 + $0xa8] sm:$0xff] }
 0x349   :  { %1758 = vmatpush1.bf16.msra.mxu1 %v1757_v45  ;;  %v971_v45 = vld [vmem:[#allocation10 + $0x368] sm:$0xff] }
 0x34a   :  { %1760 = vmatprep.subr.bf16.mxu1 %v1759_v46  ;;  %v1797_v46 = vpack.c.bf16 %v962_v43, %v958_v42  ;;  %v1799_v47 = vpack.c.bf16 %v971_v45, %v967_v44  ;;  %v1883_v42 = vpack.c.bf16 %v1195_v28, %v1194_v41  ;;  %v1178_v43 = vld [vmem:[#allocation11 + $0x20] sm:$0xff]  ;;  %v1179_v44 = vld [vmem:[#allocation11 + $0x28] sm:$0xff]  ;;  %v1196_v45 = vld [vmem:[#allocation11 + $0xb0] sm:$0xff] }
 0x34d   :  { %1762 = vmatpush1.bf16.msra.mxu1 %v1761_v0  ;;  %v979_v0 = vld [vmem:[#allocation10 + $0x3a8] sm:$0xff] }
 0x34e   :  { %1764 = vmatprep.subr.bf16.mxu1 %v1763_v53  ;;  %v1801_v53 = vpack.c.bf16 %v970_v50, %v966_v49  ;;  %v1803_v54 = vpack.c.bf16 %v979_v0, %v975_v51  ;;  %v1180_v50 = vld [vmem:[#allocation11 + $0x30] sm:$0xff]  ;;  %v1181_v51 = vld [vmem:[#allocation11 + $0x38] sm:$0xff]  ;;  %v1198_v0 = vld [vmem:[#allocation11 + $0xc0] sm:$0xff] }
 0x351   :  { %1766 = vmatpush1.bf16.msra.mxu1 %v1765_v58  ;;  %v1805_v58 = vpack.c.bf16 %v978_v56, %v974_v55  ;;  %v1182_v56 = vld [vmem:[#allocation11 + $0x40] sm:$0xff] }
 0x352   :  { %1768 = vmatprep.subr.bf16.mxu1 %v1767_v59  ;;  %v980_v59 = vld [vmem:[#allocation10 + $0x3b0] sm:$0xff] }
 0x353   :  { %v1869_v60 = vpack.c.bf16 %v980_v59, %v976_v57  ;;  %v1183_v57 = vld [vmem:[#allocation11 + $0x48] sm:$0xff]  ;;  %v1201_v59 = vld [vmem:[#allocation11 + $0xd8] sm:$0xff] }
 0x355   :  { %1770 = vmatpush1.bf16.msra.mxu1 %v1769_v1  ;;  %1870 = vmatpush1.bf16.msra.mxu0 %v1869_v60  ;;  %v1807_v1 = vpack.c.bf16 %v987_v62, %v983_v61  ;;  %v1893_v60 = vpack.c.bf16 %v1183_v57, %v1182_v56  ;;  %v1184_v62 = vld [vmem:[#allocation11 + $0x50] sm:$0xff] }
 0x356   :  { %1772 = vmatprep.subr.bf16.mxu1 %v1771_v2  ;;  %v989_v2 = vld [vmem:[#allocation10 + $0x3f8] sm:$0xff] }
 0x357   :  { %v1871_v5 = vpack.c.bf16 %v989_v2, %v985_v63  ;;  %v1185_v63 = vld [vmem:[#allocation11 + $0x58] sm:$0xff]  ;;  %v1203_v2 = vld [vmem:[#allocation11 + $0xe8] sm:$0xff] }
 0x358   :  { %v1897_v3 = vpack.c.bf16 %v1185_v63, %v1184_v62 }
 0x359   :  { %1774 = vmatpush1.bf16.msra.mxu1 %v1773_v7  ;;  %v984_v7 = vld [vmem:[#allocation10 + $0x3d0] sm:$0xff]  ;;  %1872 = vmatprep.subr.bf16.mxu0 %v1871_v5  ;;  %v1186_v5 = vld [vmem:[#allocation11 + $0x60] sm:$0xff] }
 0x35a   :  { %1776 = vmatprep.subr.bf16.mxu1 %v1775_v8  ;;  %v988_v8 = vld [vmem:[#allocation10 + $0x3f0] sm:$0xff] }
 0x35b   :  { %v1873_v9 = vpack.c.bf16 %v988_v8, %v984_v7  ;;  %v1204_v8 = vld [vmem:[#allocation11 + $0xf0] sm:$0xff] }
 0x35d   :  { %1778 = vmatpush1.bf16.msra.mxu1 %v1777_v14  ;;  %1874 = vmatpush1.bf16.msra.mxu0 %v1873_v9  ;;  %v769_v14 = vld [vmem:[%s2454_s8] sm:$0x3]  ;;  %v1205_v9 = vld [vmem:[#allocation11 + $0xf8] sm:$0xff] }
 0x35e   :  { %1780 = vmatprep.subr.bf16.mxu1 %v1779_v15  ;;  %v774_v15 = vrot.slane %v769_v14, %v2335_v21  ;;  %v778_v16 = vrot.slane %v769_v14, %v2343_v23  ;;  %v1903_v10 = vpack.c.bf16 %v1205_v9, %v1204_v8  ;;  %v1217_v8 = vld [vmem:[#allocation11 + $0x158] sm:$0xff]  ;;  %v1234_v9 = vld [vmem:[#allocation11 + $0x1e0] sm:$0xff] }
 0x361   :  { %1782 = vmatpush1.bf16.msra.mxu1 %v1781_v25  ;;  %v1174_v25 = vld [vmem:[#allocation11] sm:$0xff] }
 0x362   :  { %1784 = vmatprep.subr.bf16.mxu1 %v1783_v26  ;;  %v1175_v26 = vld [vmem:[#allocation11 + $0x8] sm:$0xff] }
 0x365   :  { %1786 = vmatpush1.bf16.msra.mxu1 %v1785_v32 }
 0x366   :  { %1788 = vmatprep.subr.bf16.mxu1 %v1787_v34  ;;  %v1877_v34 = vpack.c.bf16 %v1175_v26, %v1174_v25 }
 0x369   :  { %1790 = vmatpush1.bf16.msra.mxu1 %v1789_v38  ;;  %v1176_v38 = vld [vmem:[#allocation11 + $0x10] sm:$0xff] }
 0x36a   :  { %1792 = vmatprep.subr.bf16.mxu1 %v1791_v39  ;;  %v1177_v39 = vld [vmem:[#allocation11 + $0x18] sm:$0xff] }
 0x36d   :  { %1794 = vmatpush1.bf16.msra.mxu1 %v1793_v33  ;;  %v1881_v33 = vpack.c.bf16 %v1177_v39, %v1176_v38 }
 0x36e   :  { %1796 = vmatprep.subr.bf16.mxu1 %v1795_v48 }
 0x371   :  { %1798 = vmatpush1.bf16.msra.mxu1 %v1797_v46  ;;  %v1197_v46 = vld [vmem:[#allocation11 + $0xb8] sm:$0xff] }
 0x372   :  { %1800 = vmatprep.subr.bf16.mxu1 %v1799_v47  ;;  %v1885_v47 = vpack.c.bf16 %v1179_v44, %v1178_v43  ;;  %v1887_v49 = vpack.c.bf16 %v1197_v46, %v1196_v45  ;;  %v1227_v45 = vld [vmem:[#allocation11 + $0x1a8] sm:$0xff] }
 0x375   :  { %1802 = vmatpush1.bf16.msra.mxu1 %v1801_v53  ;;  %v1199_v53 = vld [vmem:[#allocation11 + $0xc8] sm:$0xff] }
 0x376   :  { %1804 = vmatprep.subr.bf16.mxu1 %v1803_v54  ;;  %v1889_v54 = vpack.c.bf16 %v1181_v51, %v1180_v50  ;;  %v1891_v55 = vpack.c.bf16 %v1199_v53, %v1198_v0  ;;  %v1210_v51 = vld [vmem:[#allocation11 + $0x120] sm:$0xff]  ;;  %v1211_v0 = vld [vmem:[#allocation11 + $0x128] sm:$0xff] }
 0x377   :  { %v1917_v56 = vpack.c.bf16 %v1211_v0, %v1210_v51 }
 0x379   :  { %1806 = vmatpush1.bf16.msra.mxu1 %v1805_v58  ;;  %v1200_v58 = vld [vmem:[#allocation11 + $0xd0] sm:$0xff] }
 0x37a   :  { %1808 = vmatprep.subr.bf16.mxu1 %v1807_v1  ;;  %v1895_v61 = vpack.c.bf16 %v1201_v59, %v1200_v58  ;;  %v1202_v1 = vld [vmem:[#allocation11 + $0xe0] sm:$0xff]  ;;  %v1212_v58 = vld [vmem:[#allocation11 + $0x130] sm:$0xff]  ;;  %v1213_v59 = vld [vmem:[#allocation11 + $0x138] sm:$0xff] }
 0x37b   :  { %v1899_v4 = vpack.c.bf16 %v1203_v2, %v1202_v1  ;;  %v1921_v62 = vpack.c.bf16 %v1213_v59, %v1212_v58  ;;  %v1214_v1 = vld [vmem:[#allocation11 + $0x140] sm:$0xff]  ;;  %v1215_v2 = vld [vmem:[#allocation11 + $0x148] sm:$0xff] }
 0x37d   :  { %1810 = vmatpush1.bf16.msra.mxu1 %v1809_v6  ;;  %v1187_v6 = vld [vmem:[#allocation11 + $0x68] sm:$0xff] }
 0x37e   :  { %1876 = vmatprep.subr.bf16.mxu1 %v1875_v13  ;;  %v1901_v7 = vpack.c.bf16 %v1187_v6, %v1186_v5  ;;  %v1189_v13 = vld [vmem:[#allocation11 + $0x78] sm:$0xff]  ;;  %v1925_v5 = vpack.c.bf16 %v1215_v2, %v1214_v1 }
 0x37f   :  { %v1905_v14 = vpack.c.bf16 %v1189_v13, %v1188_v11 }
 0x413   :  { %v847_v17 = vpop.f32.mrb[8].mxu1 }
 0x414   :  { %v848_v18 = vadd.f32 %v847_v17, %v774_v15  ;;  %v849_v19 = vpop.f32.mrb[9].mxu1 }
 0x415   :  { %v850_v27 = vadd.f32 %v849_v19, %v778_v16 }
 0x416   :  { %v858_v35 = vmax.f32 %v848_v18, 0.0  ;;  %v2388_v18 = vld [vmem:[%s2456_s10] sm:$0xf]  ;;  %s2163_s10 = smov [#allocation14]  }
 0x417   :  { %v859_v31 = vmax.f32 %v850_v27, 0.0  ;;  %v853_v32 = vpop.f32.mrb[10].mxu1  ;;  %v995_v19 = vrot.slane %v2388_v18, %v2335_v21  ;;  %v999_v25 = vrot.slane %v2388_v18, %v2343_v23  ;;  %s1416_s29 = sshll.u32 %s2163_s10, 4  ;;  %s1417_s29 = int_to_ptr.vmem [resolvable:$true] %s1416_s29 }
 0x418   :  { %v854_v36 = vadd.f32 %v853_v32, %v774_v15  ;;  %v855_v22 = vpop.f32.mrb[11].mxu1  ;;  %v1222_v15 = vld [vmem:[#allocation11 + $0x180] sm:$0xff]  ;;  %s2094_s16 = scalar_lea.vmem %s1417_s29, 256  ;;  %p2099_p7 = scmp.lt.s32.totalorder %s1417_s29, %s1417_s29 }
 0x419   :  { %v856_v40 = vadd.f32 %v855_v22, %v778_v16  ;;  %1076 = vmatprep.mubr.f32.mxu1 %v859_v31  ;;  %1153 = vmatprep.mubr.f32.mxu0 %v859_v31  ;;  %v1223_v16 = vld [vmem:[#allocation11 + $0x188] sm:$0xff]  ;;  %v1206_v32 = vld [vmem:[#allocation11 + $0x100] sm:$0xff]  ;;  %v1224_v22 = vld [vmem:[#allocation11 + $0x190] sm:$0xff]  ;;  %p2095_p6 = scmp.ne.s32.totalorder %s1417_s29, %s2094_s16  ;;  %p2100_p8 = scmp.lt.s32.totalorder %s2094_s16, %s2094_s16 }
 0x41a   :  { %1077 = vmatmul.mubr.f32.vlgmr.msra.gmra.mrb[12].mxu1 %v858_v35  ;;  %1154 = vmatmul.mubr.f32.vlgmr.msra.gmra.mrb[8].mxu0 %v858_v35  ;;  %v860_v48 = vmax.f32 %v854_v36, 0.0  ;;  %v1907_v17 = vpack.c.bf16 %v1223_v16, %v1222_v15  ;;  %v2399_v36 = vrot.slane %v2388_v18, %v150_v24  ;;  %v1226_v24 = vld [vmem:[#allocation11 + $0x1a0] sm:$0xff]  ;;  %v1219_v15 = vld [vmem:[#allocation11 + $0x168] sm:$0xff]  ;;  %v1236_v16 = vld [vmem:[#allocation11 + $0x1f0] sm:$0xff] }
 0x41b   :  { %v861_v52 = vmax.f32 %v856_v40, 0.0  ;;  %1878 = vmatpush3.bf16.msra.mxu1 %v1877_v34  ;;  %v1207_v34 = vld [vmem:[#allocation11 + $0x108] sm:$0xff]  ;;  %v1915_v50 = vpack.c.bf16 %v1227_v45, %v1226_v24  ;;  %p2101_p9 = por %p2100_p8, %p2099_p7 }
 0x41c   :  { %1880 = vmatprep.subr.bf16.mxu1 %v1879_v37  ;;  %v1225_v37 = vld [vmem:[#allocation11 + $0x198] sm:$0xff]  ;;  %v1909_v23 = vpack.c.bf16 %v1207_v34, %v1206_v32 }
 0x41d   :  { %1082 = vmatprep.mubr.f32.mxu1 %v861_v52  ;;  %1159 = vmatprep.mubr.f32.mxu0 %v861_v52  ;;  %p2102_p10 = pnand %p2101_p9, %p2095_p6 }
 0x41e   :  { %1083 = vmatmul.mubr.f32.gmra.mrb[14].mxu1 %v860_v48  ;;  %1160 = vmatmul.mubr.f32.gmra.mrb[10].mxu0 %v860_v48  ;;  %v1208_v48 = vld [vmem:[#allocation11 + $0x110] sm:$0xff] }
 0x41f   :  { %1882 = vmatpush3.bf16.msra.mxu1 %v1881_v33  ;;  %v1911_v33 = vpack.c.bf16 %v1225_v37, %v1224_v22 }
 0x420   :  { %1884 = vmatprep.subr.bf16.mxu1 %v1883_v42  ;;  %v1209_v42 = vld [vmem:[#allocation11 + $0x118] sm:$0xff] }
 0x423   :  { %1886 = vmatpush3.bf16.msra.mxu1 %v1885_v47  ;;  %v1913_v47 = vpack.c.bf16 %v1209_v42, %v1208_v48 }
 0x424   :  { %1888 = vmatprep.subr.bf16.mxu1 %v1887_v49 }
 0x427   :  { %1890 = vmatpush3.bf16.msra.mxu1 %v1889_v54  ;;  %v1228_v54 = vld [vmem:[#allocation11 + $0x1b0] sm:$0xff] }
 0x428   :  { %1892 = vmatprep.subr.bf16.mxu1 %v1891_v55  ;;  %v1229_v55 = vld [vmem:[#allocation11 + $0x1b8] sm:$0xff] }
 0x429   :  { %v1919_v57 = vpack.c.bf16 %v1229_v55, %v1228_v54 }
 0x42b   :  { %1894 = vmatpush3.bf16.msra.mxu1 %v1893_v60  ;;  %v1230_v60 = vld [vmem:[#allocation11 + $0x1c0] sm:$0xff] }
 0x42c   :  { %1896 = vmatprep.subr.bf16.mxu1 %v1895_v61  ;;  %v1231_v61 = vld [vmem:[#allocation11 + $0x1c8] sm:$0xff] }
 0x42d   :  { %v1923_v63 = vpack.c.bf16 %v1231_v61, %v1230_v60 }
 0x42f   :  { %1898 = vmatpush3.bf16.msra.mxu1 %v1897_v3  ;;  %v1232_v3 = vld [vmem:[#allocation11 + $0x1d0] sm:$0xff] }
 0x430   :  { %1900 = vmatprep.subr.bf16.mxu1 %v1899_v4  ;;  %v1233_v4 = vld [vmem:[#allocation11 + $0x1d8] sm:$0xff] }
 0x431   :  { %v1927_v6 = vpack.c.bf16 %v1233_v4, %v1232_v3 }
 0x433   :  { %1902 = vmatpush3.bf16.msra.mxu1 %v1901_v7  ;;  %v1216_v7 = vld [vmem:[#allocation11 + $0x150] sm:$0xff] }
 0x434   :  { %1904 = vmatprep.subr.bf16.mxu1 %v1903_v10  ;;  %v1235_v10 = vld [vmem:[#allocation11 + $0x1e8] sm:$0xff]  ;;  %v1929_v11 = vpack.c.bf16 %v1217_v8, %v1216_v7 }
 0x435   :  { %v1931_v13 = vpack.c.bf16 %v1235_v10, %v1234_v9 }
 0x437   :  { %1906 = vmatpush3.bf16.msra.mxu1 %v1905_v14  ;;  %v1218_v14 = vld [vmem:[#allocation11 + $0x160] sm:$0xff] }
 0x438   :  { %1908 = vmatprep.subr.bf16.mxu1 %v1907_v17  ;;  %v1237_v17 = vld [vmem:[#allocation11 + $0x1f8] sm:$0xff] }
 0x4ed   :  { %v1078_v26 = vpop.f32.mrb[12].mxu1  ;;  %v2394_v27 = vpop.f32.mrb[8].mxu0 }
 0x4ee   :  { %v1079_v29 = vadd.f32 %v1078_v26, %v995_v19  ;;  %v1080_v30 = vpop.f32.mrb[13].mxu1  ;;  %v1157_v31 = vpop.f32.mrb[9].mxu0  ;;  %v1935_v26 = vpack.c.bf16 %v1237_v17, %v1236_v16 }
 0x4ef   :  { %v1081_v35 = vadd.f32 %v1080_v30, %v999_v25  ;;  %v1158_v43 = vadd.f32 %v1157_v31, %v2399_v36  ;;  %v1221_v30 = vld [vmem:[#allocation11 + $0x178] sm:$0xff] }
 0x4f0   :  { %v1166_v40 = vmax.f32 %v1079_v29, 0.0  ;;  %v1220_v29 = vld [vmem:[#allocation11 + $0x170] sm:$0xff] }
 0x4f1   :  { %v1167_v21 = vmax.f32 %v1081_v35, 0.0  ;;  %v1084_v38 = vpop.f32.mrb[14].mxu1  ;;  %v2401_v39 = vpop.f32.mrb[10].mxu0  ;;  %v1169_v53 = vmax.f32 %v1158_v43, 0.0  ;;  %v1937_v31 = vpack.c.bf16 %v1221_v30, %v1220_v29 }
 0x4f2   :  { %v1085_v41 = vadd.f32 %v1084_v38, %v995_v19  ;;  %v1086_v28 = vpop.f32.mrb[15].mxu1  ;;  %v2403_v52 = vpop.f32.mrb[11].mxu0  ;;  %v1933_v19 = vpack.c.bf16 %v1219_v15, %v1218_v14 }
 0x4f3   :  { %v1087_v44 = vadd.f32 %v1086_v28, %v999_v25  ;;  %1309 = vmatprep.mubr.f32.mxu1 %v1167_v21  ;;  %v1003_v25 = vrot.slane %v2388_v18, %v146_v12  ;;  %v1164_v34 = vadd.f32 %v2403_v52, %v2399_v36 }
 0x4f4   :  { %1310 = vmatmul.mubr.f32.vlgmr.msra.gmra.mrb[16].mxu1 %v1166_v40  ;;  %v1170_v49 = vmax.f32 %v1085_v41, 0.0 }
 0x4f5   :  { %v1171_v46 = vmax.f32 %v1087_v44, 0.0  ;;  %1910 = vmatpush3.bf16.msra.mxu1 %v1909_v23  ;;  %v1156_v32 = vadd.f32 %v2394_v27, %v1003_v25  ;;  %v1162_v22 = vadd.f32 %v2401_v39, %v1003_v25  ;;  %v1173_v37 = vmax.f32 %v1164_v34, 0.0 }
 0x4f6   :  { %1912 = vmatprep.subr.bf16.mxu1 %v1911_v33 }
 0x4f7   :  { %1314 = vmatprep.mubr.f32.mxu1 %v1171_v46  ;;  %v1168_v35 = vmax.f32 %v1156_v32, 0.0  ;;  %v1172_v20 = vmax.f32 %v1162_v22, 0.0 }
 0x4f8   :  { %1315 = vmatmul.mubr.f32.gmra.mrb[18].mxu1 %v1170_v49 }
 0x4f9   :  { %1914 = vmatpush3.bf16.msra.mxu1 %v1913_v47  ;;  %1384 = vmatprep.mubr.f32.mxu1 %v1169_v53 }
 0x4fa   :  { %1916 = vmatprep.subr.bf16.mxu1 %v1915_v50 }
 0x4fd   :  { %1918 = vmatpush3.bf16.msra.mxu1 %v1917_v56 }
 0x4fe   :  { %1920 = vmatprep.subr.bf16.mxu1 %v1919_v57 }
 0x501   :  { %1922 = vmatpush3.bf16.msra.mxu1 %v1921_v62 }
 0x502   :  { %1924 = vmatprep.subr.bf16.mxu1 %v1923_v63 }
 0x505   :  { %1926 = vmatpush3.bf16.msra.mxu1 %v1925_v5 }
 0x506   :  { %1928 = vmatprep.subr.bf16.mxu1 %v1927_v6 }
 0x509   :  { %1930 = vmatpush3.bf16.msra.mxu1 %v1929_v11 }
 0x50a   :  { %1932 = vmatprep.subr.bf16.mxu1 %v1931_v13 }
 0x50d   :  { %1934 = vmatpush3.bf16.msra.mxu1 %v1933_v19 }
 0x50e   :  { %1936 = vmatprep.subr.bf16.mxu1 %v1935_v26 }
 0x511   :  { %1938 = vmatpush3.bf16.msra.mxu1 %v1937_v31 }
 0x514   :  { %1385 = vmatmul.mubr.f32.vlgmr.msra.gmra.mrb[20].mxu1 %v1168_v35 }
 0x515   :  { %1389 = vmatprep.mubr.f32.mxu1 %v1173_v37 }
 0x518   :  { %1390 = vmatmul.mubr.f32.gmra.mrb[22].mxu1 %v1172_v20 }
 0x519   :  { %2105 = shalt.err (!%p2102_p10)
}
 0x51a   :  { %s2106_s20 = scalar_lea.hbm %s2460_s14, 256 }
 0x51b   :  { %p2107_p11 = scmp.ne.s32.totalorder %s2460_s14, %s2106_s20  ;;  %p2110_p12 = scmp.lt.u32.totalorder %s2106_s20, %s2460_s14 }
 0x51d   :  { %p2112_p13 = pnand %p2110_p12, %p2107_p11 }
 0x51f   :  { %2115 = shalt.err (!%p2112_p13)
}
 0x520   :  { %1422 = dma.vmem_to_hbm [thread:$0]  %s1417_s29, 256, %s2460_s14, [#allocation15], %s2156_s1, %s2156_s1, %s2157_s15  }
 0x521   :  { %v1440_v39 = vld [vmem:[%s2458_s12] ss:$0 sm:$0xff]  ;;  %s2164_s11 = smov [#allocation13]  }
 0x522   :  { %s1404_s30 = sshll.u32 %s2164_s11, 4  ;;  %s1405_s30 = int_to_ptr.vmem [resolvable:$true] %s1404_s30 }
 0x523   :  { %s2116_s14 = scalar_lea.vmem %s1405_s30, 256  ;;  %p2121_p1 = scmp.lt.s32.totalorder %s1405_s30, %s1405_s30 }
 0x524   :  { %p2117_p0 = scmp.ne.s32.totalorder %s1405_s30, %s2116_s14  ;;  %p2122_p2 = scmp.lt.s32.totalorder %s2116_s14, %s2116_s14 }
 0x526   :  { %p2123_p3 = por %p2122_p2, %p2121_p1 }
 0x528   :  { %p2124_p4 = pnand %p2123_p3, %p2117_p0 }
 0x5c7   :  { %v1511_v12 = vpop.f32.mrb[16].mxu1 }
 0x5c8   :  { %v1512_v18 = vpop.f32.mrb[17].mxu1 }
 0x5c9   :  { %v1513_v27 = vadd.f32 %v1512_v18, %v1511_v12 }
 0x5cb   :  { %v1514_v36 = vpop.f32.mrb[18].mxu1  ;;  %v1312_v41 = vadd.f32 %v1513_v27, %v1440_v39 }
 0x5cc   :  { %v1515_v21 = vpop.f32.mrb[19].mxu1 }
 0x5cd   :  { %v1516_v38 = vadd.f32 %v1515_v21, %v1514_v36 }
 0x5cf   :  { %v1317_v42 = vadd.f32 %v1516_v38, %v1440_v39 }
 0x5e7   :  { %v1549_v23 = vpop.f32.mrb[20].mxu1 }
 0x5e8   :  { %v1550_v40 = vpop.f32.mrb[21].mxu1 }
 0x5e9   :  { %v1551_v28 = vadd.f32 %v1550_v40, %v1549_v23 }
 0x5eb   :  { %v1387_v52 = vadd.f32 %v1551_v28, %v1312_v41  ;;  %v1552_v33 = vpop.f32.mrb[22].mxu1 }
 0x5ec   :  { %v1553_v48 = vpop.f32.mrb[23].mxu1 }
 0x5ed   :  { %1397 = vst [vmem:[#allocation13] sm:$0xff] %v1387_v52  ;;  %v1554_v43 = vadd.f32 %v1553_v48, %v1552_v33 }
 0x5ef   :  { %v1392_v44 = vadd.f32 %v1554_v43, %v1317_v42 }
 0x5f1   :  { %1398 = vst [vmem:[#allocation13 + $0x8] sm:$0xff] %v1392_v44 }
 0x5f2   :  { %2127 = shalt.err (!%p2124_p4)
}
 0x5f3   :  { %s2128_s5 = scalar_lea.hbm %s2459_s13, 256 }
 0x5f4   :  { %p2129_p5 = scmp.ne.s32.totalorder %s2459_s13, %s2128_s5  ;;  %p2132_p6 = scmp.lt.u32.totalorder %s2128_s5, %s2459_s13 }
 0x5f6   :  { %p2134_p7 = pnand %p2132_p6, %p2129_p5 }
 0x5f8   :  { %2137 = shalt.err (!%p2134_p7)
}
 0x5f9   :  { %1410 = dma.vmem_to_hbm [thread:$0]  %s1405_s30, 256, %s2459_s13, [#allocation4], %s2156_s1, %s2156_s1, %s2157_s15  }
 0x5fa   :  { %2146 = dma.done.wait [#allocation4], 256  }
 0x5fb   :  { %2147 = vsyncadd [#allocation4], 4294967040 }
 0x5fc   :  { %2148 = dma.done.wait [#allocation15], 256  }
 0x5fd   :  { %2149 = vsyncadd [#allocation15], 4294967040 }
 0x5fe   :  { %1429 = vsyncpa [#allocation3], 1 }
 0x5ff   :  { %1430 = vsyncpa [#allocation6], 1 }
 0x600   :  { %1431 = vsyncpa [#allocation9], 1 }
 0x601   :  { %1432 = vsyncpa [#allocation12], 1 }
 0x602   :  { %1433 = vsyncpa [#allocation4], 1 }
 0x603   :  { %1434 = vsyncpa [#allocation15], 1 }

</bundles_post_ra>
